<compile_context>
chip_gen: v7x
topology: tpu7x:2x2x1
jax: 0.10.0
libtpu: 0.0.40
codegen_flags: <defaults>
</compile_context>

<pallas_src>
import math
import functools

import jax
import jax.numpy as jnp
from jax import lax
from jax.experimental import pallas as pl
from jax.experimental.pallas import tpu as pltpu

# Pin f32 matmul precision so the in-kernel dots, the interpret-mode execution
# and the pure-JAX reference all use the accurate f32 path (tight tolerance).
jax.config.update("jax_default_matmul_precision", "highest")


# ----------------------------------------------------------------------------
# Fused Head kernel: per-head in_proj -> per-(batch, head) attention
#                    -> merged-head single out_proj -> one full-block store
# ----------------------------------------------------------------------------
def _head_kernel(x_ref, wq_ref, wk_ref, wv_ref, bq_ref, bk_ref, bv_ref,
                 wo_ref, bo_ref, o_ref, o_acc_ref, *, L, N, H, D):
    # x_ref:          (N*L, E)   batch-major flattened input
    # wq/wk/wv_ref:   (H, E, D)  per-head in-proj weights, (in, out) orientation
    #                            (softmax scale pre-folded into wq/bq)
    # bq/bk/bv_ref:   (H, 1, D)
    # wo_ref:         (E, E)     out-proj weight, (in, out) orientation
    # bo_ref:         (1, E)
    # o_ref:          (N*L, E)   output
    # o_acc_ref:      (N*L, E)   f32 VMEM scratch: merged per-head attn outputs
    x = x_ref[...]

    # Statically unrolled loops; every slice below is either a leading-axis
    # index (weights) or an aligned sublane/row slice (activations) — no
    # lane-dim extractions anywhere.
    for h in range(H):
        wq = wq_ref[h]                     # (E, D)
        wk = wk_ref[h]
        wv = wv_ref[h]
        q_h = jnp.dot(x, wq, preferred_element_type=jnp.float32) + bq_ref[h]  # (M, D)
        k_h = jnp.dot(x, wk, preferred_element_type=jnp.float32) + bk_ref[h]
        v_h = jnp.dot(x, wv, preferred_element_type=jnp.float32) + bv_ref[h]

        for n in range(N):
            r0 = n * L
            qn = q_h[r0:r0 + L, :]         # (L, D) sublane slices
            kn = k_h[r0:r0 + L, :]
            vn = v_h[r0:r0 + L, :]

            # scores = q . k^T (contraction on last dims, no materialized .T)
            s = lax.dot_general(qn, kn, (((1,), (1,)), ((), ())),
                                preferred_element_type=jnp.float32)  # (L, L)
            m = jnp.max(s, axis=-1, keepdims=True)
            p = jnp.exp(s - m)
            p = p / jnp.sum(p, axis=-1, keepdims=True)   # exact divide (no approx)

            o_nh = jnp.dot(p, vn, preferred_element_type=jnp.float32)  # (L, D)

            # Assemble merged heads in VMEM at this head's lane offset.
            o_acc_ref[r0:r0 + L, h * D:(h + 1) * D] = o_nh

    # One (M, E) @ (E, E) out-projection over the merged heads, then a single
    # full-block (lane-dense as the shape allows) store of the output.
    o_all = o_acc_ref[...]
    y = jnp.dot(o_all, wo_ref[...], preferred_element_type=jnp.float32) + bo_ref[...]
    o_ref[...] = y.astype(o_ref.dtype)


# ----------------------------------------------------------------------------
# One-time parameter preparation (done at parameter-load time, not per call)
# ----------------------------------------------------------------------------
def prepare_head_params(params, n_head):
    E = params["out_proj_weight"].shape[0]
    H = n_head
    D = E // H
    scale = 1.0 / math.sqrt(D)

    w_in = params["in_proj_weight"]            # (3E, E), PyTorch (out, in)
    b_in = params["in_proj_bias"]              # (3E,)
    w_q, w_k, w_v = w_in[0:E], w_in[E:2 * E], w_in[2 * E:3 * E]
    b_q, b_k, b_v = b_in[0:E], b_in[E:2 * E], b_in[2 * E:3 * E]

    def per_head_w(w, s=1.0):                  # (E_out, E_in) -> (H, E_in, D)
        return jnp.transpose(w.reshape(H, D, E), (0, 2, 1)) * s

    def per_head_b(b, s=1.0):                  # (E,) -> (H, 1, D)
        return b.reshape(H, 1, D) * s

    return {
        # softmax scale folded into the q projection (no in-kernel multiply)
        "wq3": per_head_w(w_q, scale),
        "wk3": per_head_w(w_k),
        "wv3": per_head_w(w_v),
        "bq3": per_head_b(b_q, scale),
        "bk3": per_head_b(b_k),
        "bv3": per_head_b(b_v),
        "wo_t": jnp.transpose(params["out_proj_weight"]),   # (E_in, E_out)
        "bo": params["out_proj_bias"].reshape(1, E),
    }


# ----------------------------------------------------------------------------
# Head forward wrapper (jitted; single pallas_call)
# ----------------------------------------------------------------------------
@functools.partial(jax.jit, static_argnames=("n_head",))
def head_forward(x, kparams, n_head):
    # x: (L, N, E)  — PyTorch nn.MultiheadAttention default layout.
    L, N, E = x.shape
    H = n_head
    D = E // H
    M = N * L

    # Batch-major flatten so every (batch, head) tile is an aligned sublane
    # slice inside the kernel (fuses under jit).
    xb = jnp.transpose(x, (1, 0, 2)).reshape(M, E)

    kern = functools.partial(_head_kernel, L=L, N=N, H=H, D=D)

    out = pl.pallas_call(
        kern,
        out_shape=jax.ShapeDtypeStruct((M, E), x.dtype),
        grid=(1,),
        in_specs=[
            pl.BlockSpec((M, E), lambda i: (0, 0)),
            pl.BlockSpec((H, E, D), lambda i: (0, 0, 0)),
            pl.BlockSpec((H, E, D), lambda i: (0, 0, 0)),
            pl.BlockSpec((H, E, D), lambda i: (0, 0, 0)),
            pl.BlockSpec((H, 1, D), lambda i: (0, 0, 0)),
            pl.BlockSpec((H, 1, D), lambda i: (0, 0, 0)),
            pl.BlockSpec((H, 1, D), lambda i: (0, 0, 0)),
            pl.BlockSpec((E, E), lambda i: (0, 0)),
            pl.BlockSpec((1, E), lambda i: (0, 0)),
        ],
        out_specs=pl.BlockSpec((M, E), lambda i: (0, 0)),
        scratch_shapes=[pltpu.VMEM((M, E), jnp.float32)],
        compiler_params=pltpu.CompilerParams(dimension_semantics=("arbitrary",)),
    )(xb, kparams["wq3"], kparams["wk3"], kparams["wv3"],
      kparams["bq3"], kparams["bk3"], kparams["bv3"],
      kparams["wo_t"], kparams["bo"])

    # (N*L, E) -> (L, N, E)  (fuses under jit)
    return out.reshape(N, L, E).transpose(1, 0, 2)


# ----------------------------------------------------------------------------
# Pure-JAX reference for correctness checking (PyTorch MHA semantics)
# ----------------------------------------------------------------------------
def head_forward_ref(x, params, n_head):
    L, N, E = x.shape
    H = n_head
    D = E // H
    scale = 1.0 / math.sqrt(D)
    qkv = x.reshape(L * N, E) @ params["in_proj_weight"].T + params["in_proj_bias"]
    q, k, v = jnp.split(qkv, 3, axis=-1)
    rs = lambda t: t.reshape(L, N, H, D).transpose(1, 2, 0, 3)          # (N, H, L, D)
    qh, kh, vh = rs(q), rs(k), rs(v)
    s = jnp.einsum("nhld,nhmd->nhlm", qh, kh) * scale
    p = jax.nn.softmax(s, axis=-1)
    o = jnp.einsum("nhlm,nhmd->nhld", p, vh)                            # (N, H, L, D)
    o = o.transpose(2, 0, 1, 3).reshape(L * N, E)
    out = o @ params["out_proj_weight"].T + params["out_proj_bias"]
    return out.reshape(L, N, E)


if __name__ == "__main__":
    n_embd, n_head = 32, 4
    L, N = 8, 2

    key = jax.random.PRNGKey(0)
    kx, k1, k2, k3, k4 = jax.random.split(key, 5)

    x = jax.random.normal(kx, (L, N, n_embd), dtype=jnp.float32)

    # Deterministic synthetic nn.MultiheadAttention parameters.
    scale_init = 1.0 / math.sqrt(n_embd)
    params = {
        "in_proj_weight": scale_init * jax.random.normal(k1, (3 * n_embd, n_embd), jnp.float32),
        "in_proj_bias":   0.1 * jax.random.normal(k2, (3 * n_embd,), jnp.float32),
        "out_proj_weight": scale_init * jax.random.normal(k3, (n_embd, n_embd), jnp.float32),
        "out_proj_bias":  0.1 * jax.random.normal(k4, (n_embd,), jnp.float32),
    }

    # One-time parameter prep (head split / transposes / scale fold).
    kparams = prepare_head_params(params, n_head)

    out = head_forward(x, kparams, n_head)
    out = jax.block_until_ready(out)

    ref = head_forward_ref(x, params, n_head)
    assert out.shape == (L, N, n_embd)
    assert jnp.allclose(out, ref, atol=2e-3, rtol=2e-3), "mismatch vs reference"

    print("KERNEL_OK")
</pallas_src>

<mosaic_0001>
module attributes {stable_mosaic.version = 11 : i64} {
  func.func @_head_kernel(%arg0: i32, %arg1: memref<16x32xf32, #tpu.memory_space<vmem>>, %arg2: memref<4x32x8xf32, #tpu.memory_space<vmem>>, %arg3: memref<4x32x8xf32, #tpu.memory_space<vmem>>, %arg4: memref<4x32x8xf32, #tpu.memory_space<vmem>>, %arg5: memref<4x1x8xf32, #tpu.memory_space<vmem>>, %arg6: memref<4x1x8xf32, #tpu.memory_space<vmem>>, %arg7: memref<4x1x8xf32, #tpu.memory_space<vmem>>, %arg8: memref<32x32xf32, #tpu.memory_space<vmem>>, %arg9: memref<1x32xf32, #tpu.memory_space<vmem>>, %arg10: memref<16x32xf32, #tpu.memory_space<vmem>>, %arg11: memref<16x32xf32, #tpu.memory_space<vmem>>) attributes {dimension_semantics = [#tpu.dimension_semantics<arbitrary>], iteration_bounds = array<i64: 1>, scalar_prefetch = 0 : i64, scratch_operands = 1 : i64, tpu.core_type = #tpu.core_type<tc>, window_params = [{pipeline_mode = #tpu.pipeline_mode<synchronous>, transform_indices = @transform_0, window_bounds = array<i64: 16, 32>}, {pipeline_mode = #tpu.pipeline_mode<synchronous>, transform_indices = @transform_1, window_bounds = array<i64: 4, 32, 8>}, {pipeline_mode = #tpu.pipeline_mode<synchronous>, transform_indices = @transform_2, window_bounds = array<i64: 4, 32, 8>}, {pipeline_mode = #tpu.pipeline_mode<synchronous>, transform_indices = @transform_3, window_bounds = array<i64: 4, 32, 8>}, {pipeline_mode = #tpu.pipeline_mode<synchronous>, transform_indices = @transform_4, window_bounds = array<i64: 4, 1, 8>}, {pipeline_mode = #tpu.pipeline_mode<synchronous>, transform_indices = @transform_5, window_bounds = array<i64: 4, 1, 8>}, {pipeline_mode = #tpu.pipeline_mode<synchronous>, transform_indices = @transform_6, window_bounds = array<i64: 4, 1, 8>}, {pipeline_mode = #tpu.pipeline_mode<synchronous>, transform_indices = @transform_7, window_bounds = array<i64: 32, 32>}, {pipeline_mode = #tpu.pipeline_mode<synchronous>, transform_indices = @transform_8, window_bounds = array<i64: 1, 32>}, {pipeline_mode = #tpu.pipeline_mode<synchronous>, transform_indices = @transform_9, window_bounds = array<i64: 16, 32>}]} {
    %c0 = arith.constant 0 : index
    %c0_0 = arith.constant 0 : index
    %0 = vector.load %arg1[%c0, %c0_0] : memref<16x32xf32, #tpu.memory_space<vmem>>, vector<16x32xf32>
    %c0_1 = arith.constant 0 : index
    %c0_2 = arith.constant 0 : index
    %c0_3 = arith.constant 0 : index
    %1 = vector.load %arg2[%c0_1, %c0_2, %c0_3] : memref<4x32x8xf32, #tpu.memory_space<vmem>>, vector<1x32x8xf32>
    %2 = vector.shape_cast %1 : vector<1x32x8xf32> to vector<32x8xf32>
    %c0_4 = arith.constant 0 : index
    %c0_5 = arith.constant 0 : index
    %c0_6 = arith.constant 0 : index
    %3 = vector.load %arg3[%c0_4, %c0_5, %c0_6] : memref<4x32x8xf32, #tpu.memory_space<vmem>>, vector<1x32x8xf32>
    %4 = vector.shape_cast %3 : vector<1x32x8xf32> to vector<32x8xf32>
    %c0_7 = arith.constant 0 : index
    %c0_8 = arith.constant 0 : index
    %c0_9 = arith.constant 0 : index
    %5 = vector.load %arg4[%c0_7, %c0_8, %c0_9] : memref<4x32x8xf32, #tpu.memory_space<vmem>>, vector<1x32x8xf32>
    %6 = vector.shape_cast %5 : vector<1x32x8xf32> to vector<32x8xf32>
    %cst = arith.constant dense<0.000000e+00> : vector<16x8xf32>
    %7 = tpu.matmul %0, %2, %cst {dimension_numbers = #tpu.dot_dimension_numbers<[1], [0], [0], [1], [0, 0, 1, 1], [], []>, precision = #tpu.contract_precision<fp32>} : vector<16x32xf32>, vector<32x8xf32>, vector<16x8xf32> -> vector<16x8xf32>
    %c0_10 = arith.constant 0 : index
    %c0_11 = arith.constant 0 : index
    %c0_12 = arith.constant 0 : index
    %8 = vector.load %arg5[%c0_10, %c0_11, %c0_12] : memref<4x1x8xf32, #tpu.memory_space<vmem>>, vector<1x1x8xf32>
    %9 = vector.shape_cast %8 : vector<1x1x8xf32> to vector<1x8xf32>
    %10 = vector.broadcast %9 : vector<1x8xf32> to vector<16x8xf32>
    %11 = arith.addf %7, %10 : vector<16x8xf32>
    %cst_13 = arith.constant dense<0.000000e+00> : vector<16x8xf32>
    %12 = tpu.matmul %0, %4, %cst_13 {dimension_numbers = #tpu.dot_dimension_numbers<[1], [0], [0], [1], [0, 0, 1, 1], [], []>, precision = #tpu.contract_precision<fp32>} : vector<16x32xf32>, vector<32x8xf32>, vector<16x8xf32> -> vector<16x8xf32>
    %c0_14 = arith.constant 0 : index
    %c0_15 = arith.constant 0 : index
    %c0_16 = arith.constant 0 : index
    %13 = vector.load %arg6[%c0_14, %c0_15, %c0_16] : memref<4x1x8xf32, #tpu.memory_space<vmem>>, vector<1x1x8xf32>
    %14 = vector.shape_cast %13 : vector<1x1x8xf32> to vector<1x8xf32>
    %15 = vector.broadcast %14 : vector<1x8xf32> to vector<16x8xf32>
    %16 = arith.addf %12, %15 : vector<16x8xf32>
    %cst_17 = arith.constant dense<0.000000e+00> : vector<16x8xf32>
    %17 = tpu.matmul %0, %6, %cst_17 {dimension_numbers = #tpu.dot_dimension_numbers<[1], [0], [0], [1], [0, 0, 1, 1], [], []>, precision = #tpu.contract_precision<fp32>} : vector<16x32xf32>, vector<32x8xf32>, vector<16x8xf32> -> vector<16x8xf32>
    %c0_18 = arith.constant 0 : index
    %c0_19 = arith.constant 0 : index
    %c0_20 = arith.constant 0 : index
    %18 = vector.load %arg7[%c0_18, %c0_19, %c0_20] : memref<4x1x8xf32, #tpu.memory_space<vmem>>, vector<1x1x8xf32>
    %19 = vector.shape_cast %18 : vector<1x1x8xf32> to vector<1x8xf32>
    %20 = vector.broadcast %19 : vector<1x8xf32> to vector<16x8xf32>
    %21 = arith.addf %17, %20 : vector<16x8xf32>
    %22 = vector.extract_strided_slice %11 {offsets = [0, 0], sizes = [8, 8], strides = [1, 1]} : vector<16x8xf32> to vector<8x8xf32>
    %23 = vector.extract_strided_slice %16 {offsets = [0, 0], sizes = [8, 8], strides = [1, 1]} : vector<16x8xf32> to vector<8x8xf32>
    %24 = vector.extract_strided_slice %21 {offsets = [0, 0], sizes = [8, 8], strides = [1, 1]} : vector<16x8xf32> to vector<8x8xf32>
    %cst_21 = arith.constant dense<0.000000e+00> : vector<8x8xf32>
    %25 = tpu.matmul %22, %23, %cst_21 {dimension_numbers = #tpu.dot_dimension_numbers<[1], [1], [0], [0], [0, 0, 1, 0], [], []>, precision = #tpu.contract_precision<fp32>} : vector<8x8xf32>, vector<8x8xf32>, vector<8x8xf32> -> vector<8x8xf32>
    %cst_22 = arith.constant dense<0xFF800000> : vector<8xf32>
    %26 = vector.multi_reduction <maximumf>, %25, %cst_22 [1] : vector<8x8xf32> to vector<8xf32>
    %27 = vector.shape_cast %26 : vector<8xf32> to vector<8x1xf32>
    %28 = vector.broadcast %27 : vector<8x1xf32> to vector<8x8xf32>
    %29 = arith.subf %25, %28 : vector<8x8xf32>
    %30 = math.exp %29 : vector<8x8xf32>
    %cst_23 = arith.constant dense<0.000000e+00> : vector<8xf32>
    %31 = vector.multi_reduction <add>, %30, %cst_23 [1] : vector<8x8xf32> to vector<8xf32>
    %32 = vector.shape_cast %31 : vector<8xf32> to vector<8x1xf32>
    %33 = vector.broadcast %32 : vector<8x1xf32> to vector<8x8xf32>
    %34 = arith.divf %30, %33 : vector<8x8xf32>
    %cst_24 = arith.constant dense<0.000000e+00> : vector<8x8xf32>
    %35 = tpu.matmul %34, %24, %cst_24 {dimension_numbers = #tpu.dot_dimension_numbers<[1], [0], [0], [1], [0, 0, 1, 1], [], []>, precision = #tpu.contract_precision<fp32>} : vector<8x8xf32>, vector<8x8xf32>, vector<8x8xf32> -> vector<8x8xf32>
    %c0_25 = arith.constant 0 : index
    %c0_26 = arith.constant 0 : index
    %36 = vector.load %arg11[%c0_25, %c0_26] : memref<16x32xf32, #tpu.memory_space<vmem>>, vector<8x8xf32>
    tpu.vector_store %arg11[%c0_25, %c0_26], %35 {strides = array<i32>} : memref<16x32xf32, #tpu.memory_space<vmem>>, vector<8x8xf32>,
    %37 = vector.extract_strided_slice %11 {offsets = [8, 0], sizes = [8, 8], strides = [1, 1]} : vector<16x8xf32> to vector<8x8xf32>
    %38 = vector.extract_strided_slice %16 {offsets = [8, 0], sizes = [8, 8], strides = [1, 1]} : vector<16x8xf32> to vector<8x8xf32>
    %39 = vector.extract_strided_slice %21 {offsets = [8, 0], sizes = [8, 8], strides = [1, 1]} : vector<16x8xf32> to vector<8x8xf32>
    %cst_27 = arith.constant dense<0.000000e+00> : vector<8x8xf32>
    %40 = tpu.matmul %37, %38, %cst_27 {dimension_numbers = #tpu.dot_dimension_numbers<[1], [1], [0], [0], [0, 0, 1, 0], [], []>, precision = #tpu.contract_precision<fp32>} : vector<8x8xf32>, vector<8x8xf32>, vector<8x8xf32> -> vector<8x8xf32>
    %cst_28 = arith.constant dense<0xFF800000> : vector<8xf32>
    %41 = vector.multi_reduction <maximumf>, %40, %cst_28 [1] : vector<8x8xf32> to vector<8xf32>
    %42 = vector.shape_cast %41 : vector<8xf32> to vector<8x1xf32>
    %43 = vector.broadcast %42 : vector<8x1xf32> to vector<8x8xf32>
    %44 = arith.subf %40, %43 : vector<8x8xf32>
    %45 = math.exp %44 : vector<8x8xf32>
    %cst_29 = arith.constant dense<0.000000e+00> : vector<8xf32>
    %46 = vector.multi_reduction <add>, %45, %cst_29 [1] : vector<8x8xf32> to vector<8xf32>
    %47 = vector.shape_cast %46 : vector<8xf32> to vector<8x1xf32>
    %48 = vector.broadcast %47 : vector<8x1xf32> to vector<8x8xf32>
    %49 = arith.divf %45, %48 : vector<8x8xf32>
    %cst_30 = arith.constant dense<0.000000e+00> : vector<8x8xf32>
    %50 = tpu.matmul %49, %39, %cst_30 {dimension_numbers = #tpu.dot_dimension_numbers<[1], [0], [0], [1], [0, 0, 1, 1], [], []>, precision = #tpu.contract_precision<fp32>} : vector<8x8xf32>, vector<8x8xf32>, vector<8x8xf32> -> vector<8x8xf32>
    %c8 = arith.constant 8 : index
    %c0_31 = arith.constant 0 : index
    %51 = vector.load %arg11[%c8, %c0_31] : memref<16x32xf32, #tpu.memory_space<vmem>>, vector<8x8xf32>
    tpu.vector_store %arg11[%c8, %c0_31], %50 {strides = array<i32>} : memref<16x32xf32, #tpu.memory_space<vmem>>, vector<8x8xf32>,
    %c1 = arith.constant 1 : index
    %c0_32 = arith.constant 0 : index
    %c0_33 = arith.constant 0 : index
    %52 = vector.load %arg2[%c1, %c0_32, %c0_33] : memref<4x32x8xf32, #tpu.memory_space<vmem>>, vector<1x32x8xf32>
    %53 = vector.shape_cast %52 : vector<1x32x8xf32> to vector<32x8xf32>
    %c1_34 = arith.constant 1 : index
    %c0_35 = arith.constant 0 : index
    %c0_36 = arith.constant 0 : index
    %54 = vector.load %arg3[%c1_34, %c0_35, %c0_36] : memref<4x32x8xf32, #tpu.memory_space<vmem>>, vector<1x32x8xf32>
    %55 = vector.shape_cast %54 : vector<1x32x8xf32> to vector<32x8xf32>
    %c1_37 = arith.constant 1 : index
    %c0_38 = arith.constant 0 : index
    %c0_39 = arith.constant 0 : index
    %56 = vector.load %arg4[%c1_37, %c0_38, %c0_39] : memref<4x32x8xf32, #tpu.memory_space<vmem>>, vector<1x32x8xf32>
    %57 = vector.shape_cast %56 : vector<1x32x8xf32> to vector<32x8xf32>
    %cst_40 = arith.constant dense<0.000000e+00> : vector<16x8xf32>
    %58 = tpu.matmul %0, %53, %cst_40 {dimension_numbers = #tpu.dot_dimension_numbers<[1], [0], [0], [1], [0, 0, 1, 1], [], []>, precision = #tpu.contract_precision<fp32>} : vector<16x32xf32>, vector<32x8xf32>, vector<16x8xf32> -> vector<16x8xf32>
    %c1_41 = arith.constant 1 : index
    %c0_42 = arith.constant 0 : index
    %c0_43 = arith.constant 0 : index
    %59 = vector.load %arg5[%c1_41, %c0_42, %c0_43] : memref<4x1x8xf32, #tpu.memory_space<vmem>>, vector<1x1x8xf32>
    %60 = vector.shape_cast %59 : vector<1x1x8xf32> to vector<1x8xf32>
    %61 = vector.broadcast %60 : vector<1x8xf32> to vector<16x8xf32>
    %62 = arith.addf %58, %61 : vector<16x8xf32>
    %cst_44 = arith.constant dense<0.000000e+00> : vector<16x8xf32>
    %63 = tpu.matmul %0, %55, %cst_44 {dimension_numbers = #tpu.dot_dimension_numbers<[1], [0], [0], [1], [0, 0, 1, 1], [], []>, precision = #tpu.contract_precision<fp32>} : vector<16x32xf32>, vector<32x8xf32>, vector<16x8xf32> -> vector<16x8xf32>
    %c1_45 = arith.constant 1 : index
    %c0_46 = arith.constant 0 : index
    %c0_47 = arith.constant 0 : index
    %64 = vector.load %arg6[%c1_45, %c0_46, %c0_47] : memref<4x1x8xf32, #tpu.memory_space<vmem>>, vector<1x1x8xf32>
    %65 = vector.shape_cast %64 : vector<1x1x8xf32> to vector<1x8xf32>
    %66 = vector.broadcast %65 : vector<1x8xf32> to vector<16x8xf32>
    %67 = arith.addf %63, %66 : vector<16x8xf32>
    %cst_48 = arith.constant dense<0.000000e+00> : vector<16x8xf32>
    %68 = tpu.matmul %0, %57, %cst_48 {dimension_numbers = #tpu.dot_dimension_numbers<[1], [0], [0], [1], [0, 0, 1, 1], [], []>, precision = #tpu.contract_precision<fp32>} : vector<16x32xf32>, vector<32x8xf32>, vector<16x8xf32> -> vector<16x8xf32>
    %c1_49 = arith.constant 1 : index
    %c0_50 = arith.constant 0 : index
    %c0_51 = arith.constant 0 : index
    %69 = vector.load %arg7[%c1_49, %c0_50, %c0_51] : memref<4x1x8xf32, #tpu.memory_space<vmem>>, vector<1x1x8xf32>
    %70 = vector.shape_cast %69 : vector<1x1x8xf32> to vector<1x8xf32>
    %71 = vector.broadcast %70 : vector<1x8xf32> to vector<16x8xf32>
    %72 = arith.addf %68, %71 : vector<16x8xf32>
    %73 = vector.extract_strided_slice %62 {offsets = [0, 0], sizes = [8, 8], strides = [1, 1]} : vector<16x8xf32> to vector<8x8xf32>
    %74 = vector.extract_strided_slice %67 {offsets = [0, 0], sizes = [8, 8], strides = [1, 1]} : vector<16x8xf32> to vector<8x8xf32>
    %75 = vector.extract_strided_slice %72 {offsets = [0, 0], sizes = [8, 8], strides = [1, 1]} : vector<16x8xf32> to vector<8x8xf32>
    %cst_52 = arith.constant dense<0.000000e+00> : vector<8x8xf32>
    %76 = tpu.matmul %73, %74, %cst_52 {dimension_numbers = #tpu.dot_dimension_numbers<[1], [1], [0], [0], [0, 0, 1, 0], [], []>, precision = #tpu.contract_precision<fp32>} : vector<8x8xf32>, vector<8x8xf32>, vector<8x8xf32> -> vector<8x8xf32>
    %cst_53 = arith.constant dense<0xFF800000> : vector<8xf32>
    %77 = vector.multi_reduction <maximumf>, %76, %cst_53 [1] : vector<8x8xf32> to vector<8xf32>
    %78 = vector.shape_cast %77 : vector<8xf32> to vector<8x1xf32>
    %79 = vector.broadcast %78 : vector<8x1xf32> to vector<8x8xf32>
    %80 = arith.subf %76, %79 : vector<8x8xf32>
    %81 = math.exp %80 : vector<8x8xf32>
    %cst_54 = arith.constant dense<0.000000e+00> : vector<8xf32>
    %82 = vector.multi_reduction <add>, %81, %cst_54 [1] : vector<8x8xf32> to vector<8xf32>
    %83 = vector.shape_cast %82 : vector<8xf32> to vector<8x1xf32>
    %84 = vector.broadcast %83 : vector<8x1xf32> to vector<8x8xf32>
    %85 = arith.divf %81, %84 : vector<8x8xf32>
    %cst_55 = arith.constant dense<0.000000e+00> : vector<8x8xf32>
    %86 = tpu.matmul %85, %75, %cst_55 {dimension_numbers = #tpu.dot_dimension_numbers<[1], [0], [0], [1], [0, 0, 1, 1], [], []>, precision = #tpu.contract_precision<fp32>} : vector<8x8xf32>, vector<8x8xf32>, vector<8x8xf32> -> vector<8x8xf32>
    %c0_56 = arith.constant 0 : index
    %c8_57 = arith.constant 8 : index
    %87 = vector.load %arg11[%c0_56, %c8_57] : memref<16x32xf32, #tpu.memory_space<vmem>>, vector<8x8xf32>
    tpu.vector_store %arg11[%c0_56, %c8_57], %86 {strides = array<i32>} : memref<16x32xf32, #tpu.memory_space<vmem>>, vector<8x8xf32>,
    %88 = vector.extract_strided_slice %62 {offsets = [8, 0], sizes = [8, 8], strides = [1, 1]} : vector<16x8xf32> to vector<8x8xf32>
    %89 = vector.extract_strided_slice %67 {offsets = [8, 0], sizes = [8, 8], strides = [1, 1]} : vector<16x8xf32> to vector<8x8xf32>
    %90 = vector.extract_strided_slice %72 {offsets = [8, 0], sizes = [8, 8], strides = [1, 1]} : vector<16x8xf32> to vector<8x8xf32>
    %cst_58 = arith.constant dense<0.000000e+00> : vector<8x8xf32>
    %91 = tpu.matmul %88, %89, %cst_58 {dimension_numbers = #tpu.dot_dimension_numbers<[1], [1], [0], [0], [0, 0, 1, 0], [], []>, precision = #tpu.contract_precision<fp32>} : vector<8x8xf32>, vector<8x8xf32>, vector<8x8xf32> -> vector<8x8xf32>
    %cst_59 = arith.constant dense<0xFF800000> : vector<8xf32>
    %92 = vector.multi_reduction <maximumf>, %91, %cst_59 [1] : vector<8x8xf32> to vector<8xf32>
    %93 = vector.shape_cast %92 : vector<8xf32> to vector<8x1xf32>
    %94 = vector.broadcast %93 : vector<8x1xf32> to vector<8x8xf32>
    %95 = arith.subf %91, %94 : vector<8x8xf32>
    %96 = math.exp %95 : vector<8x8xf32>
    %cst_60 = arith.constant dense<0.000000e+00> : vector<8xf32>
    %97 = vector.multi_reduction <add>, %96, %cst_60 [1] : vector<8x8xf32> to vector<8xf32>
    %98 = vector.shape_cast %97 : vector<8xf32> to vector<8x1xf32>
    %99 = vector.broadcast %98 : vector<8x1xf32> to vector<8x8xf32>
    %100 = arith.divf %96, %99 : vector<8x8xf32>
    %cst_61 = arith.constant dense<0.000000e+00> : vector<8x8xf32>
    %101 = tpu.matmul %100, %90, %cst_61 {dimension_numbers = #tpu.dot_dimension_numbers<[1], [0], [0], [1], [0, 0, 1, 1], [], []>, precision = #tpu.contract_precision<fp32>} : vector<8x8xf32>, vector<8x8xf32>, vector<8x8xf32> -> vector<8x8xf32>
    %c8_62 = arith.constant 8 : index
    %c8_63 = arith.constant 8 : index
    %102 = vector.load %arg11[%c8_62, %c8_63] : memref<16x32xf32, #tpu.memory_space<vmem>>, vector<8x8xf32>
    tpu.vector_store %arg11[%c8_62, %c8_63], %101 {strides = array<i32>} : memref<16x32xf32, #tpu.memory_space<vmem>>, vector<8x8xf32>,
    %c2 = arith.constant 2 : index
    %c0_64 = arith.constant 0 : index
    %c0_65 = arith.constant 0 : index
    %103 = vector.load %arg2[%c2, %c0_64, %c0_65] : memref<4x32x8xf32, #tpu.memory_space<vmem>>, vector<1x32x8xf32>
    %104 = vector.shape_cast %103 : vector<1x32x8xf32> to vector<32x8xf32>
    %c2_66 = arith.constant 2 : index
    %c0_67 = arith.constant 0 : index
    %c0_68 = arith.constant 0 : index
    %105 = vector.load %arg3[%c2_66, %c0_67, %c0_68] : memref<4x32x8xf32, #tpu.memory_space<vmem>>, vector<1x32x8xf32>
    %106 = vector.shape_cast %105 : vector<1x32x8xf32> to vector<32x8xf32>
    %c2_69 = arith.constant 2 : index
    %c0_70 = arith.constant 0 : index
    %c0_71 = arith.constant 0 : index
    %107 = vector.load %arg4[%c2_69, %c0_70, %c0_71] : memref<4x32x8xf32, #tpu.memory_space<vmem>>, vector<1x32x8xf32>
    %108 = vector.shape_cast %107 : vector<1x32x8xf32> to vector<32x8xf32>
    %cst_72 = arith.constant dense<0.000000e+00> : vector<16x8xf32>
    %109 = tpu.matmul %0, %104, %cst_72 {dimension_numbers = #tpu.dot_dimension_numbers<[1], [0], [0], [1], [0, 0, 1, 1], [], []>, precision = #tpu.contract_precision<fp32>} : vector<16x32xf32>, vector<32x8xf32>, vector<16x8xf32> -> vector<16x8xf32>
    %c2_73 = arith.constant 2 : index
    %c0_74 = arith.constant 0 : index
    %c0_75 = arith.constant 0 : index
    %110 = vector.load %arg5[%c2_73, %c0_74, %c0_75] : memref<4x1x8xf32, #tpu.memory_space<vmem>>, vector<1x1x8xf32>
    %111 = vector.shape_cast %110 : vector<1x1x8xf32> to vector<1x8xf32>
    %112 = vector.broadcast %111 : vector<1x8xf32> to vector<16x8xf32>
    %113 = arith.addf %109, %112 : vector<16x8xf32>
    %cst_76 = arith.constant dense<0.000000e+00> : vector<16x8xf32>
    %114 = tpu.matmul %0, %106, %cst_76 {dimension_numbers = #tpu.dot_dimension_numbers<[1], [0], [0], [1], [0, 0, 1, 1], [], []>, precision = #tpu.contract_precision<fp32>} : vector<16x32xf32>, vector<32x8xf32>, vector<16x8xf32> -> vector<16x8xf32>
    %c2_77 = arith.constant 2 : index
    %c0_78 = arith.constant 0 : index
    %c0_79 = arith.constant 0 : index
    %115 = vector.load %arg6[%c2_77, %c0_78, %c0_79] : memref<4x1x8xf32, #tpu.memory_space<vmem>>, vector<1x1x8xf32>
    %116 = vector.shape_cast %115 : vector<1x1x8xf32> to vector<1x8xf32>
    %117 = vector.broadcast %116 : vector<1x8xf32> to vector<16x8xf32>
    %118 = arith.addf %114, %117 : vector<16x8xf32>
    %cst_80 = arith.constant dense<0.000000e+00> : vector<16x8xf32>
    %119 = tpu.matmul %0, %108, %cst_80 {dimension_numbers = #tpu.dot_dimension_numbers<[1], [0], [0], [1], [0, 0, 1, 1], [], []>, precision = #tpu.contract_precision<fp32>} : vector<16x32xf32>, vector<32x8xf32>, vector<16x8xf32> -> vector<16x8xf32>
    %c2_81 = arith.constant 2 : index
    %c0_82 = arith.constant 0 : index
    %c0_83 = arith.constant 0 : index
    %120 = vector.load %arg7[%c2_81, %c0_82, %c0_83] : memref<4x1x8xf32, #tpu.memory_space<vmem>>, vector<1x1x8xf32>
    %121 = vector.shape_cast %120 : vector<1x1x8xf32> to vector<1x8xf32>
    %122 = vector.broadcast %121 : vector<1x8xf32> to vector<16x8xf32>
    %123 = arith.addf %119, %122 : vector<16x8xf32>
    %124 = vector.extract_strided_slice %113 {offsets = [0, 0], sizes = [8, 8], strides = [1, 1]} : vector<16x8xf32> to vector<8x8xf32>
    %125 = vector.extract_strided_slice %118 {offsets = [0, 0], sizes = [8, 8], strides = [1, 1]} : vector<16x8xf32> to vector<8x8xf32>
    %126 = vector.extract_strided_slice %123 {offsets = [0, 0], sizes = [8, 8], strides = [1, 1]} : vector<16x8xf32> to vector<8x8xf32>
    %cst_84 = arith.constant dense<0.000000e+00> : vector<8x8xf32>
    %127 = tpu.matmul %124, %125, %cst_84 {dimension_numbers = #tpu.dot_dimension_numbers<[1], [1], [0], [0], [0, 0, 1, 0], [], []>, precision = #tpu.contract_precision<fp32>} : vector<8x8xf32>, vector<8x8xf32>, vector<8x8xf32> -> vector<8x8xf32>
    %cst_85 = arith.constant dense<0xFF800000> : vector<8xf32>
    %128 = vector.multi_reduction <maximumf>, %127, %cst_85 [1] : vector<8x8xf32> to vector<8xf32>
    %129 = vector.shape_cast %128 : vector<8xf32> to vector<8x1xf32>
    %130 = vector.broadcast %129 : vector<8x1xf32> to vector<8x8xf32>
    %131 = arith.subf %127, %130 : vector<8x8xf32>
    %132 = math.exp %131 : vector<8x8xf32>
    %cst_86 = arith.constant dense<0.000000e+00> : vector<8xf32>
    %133 = vector.multi_reduction <add>, %132, %cst_86 [1] : vector<8x8xf32> to vector<8xf32>
    %134 = vector.shape_cast %133 : vector<8xf32> to vector<8x1xf32>
    %135 = vector.broadcast %134 : vector<8x1xf32> to vector<8x8xf32>
    %136 = arith.divf %132, %135 : vector<8x8xf32>
    %cst_87 = arith.constant dense<0.000000e+00> : vector<8x8xf32>
    %137 = tpu.matmul %136, %126, %cst_87 {dimension_numbers = #tpu.dot_dimension_numbers<[1], [0], [0], [1], [0, 0, 1, 1], [], []>, precision = #tpu.contract_precision<fp32>} : vector<8x8xf32>, vector<8x8xf32>, vector<8x8xf32> -> vector<8x8xf32>
    %c0_88 = arith.constant 0 : index
    %c16 = arith.constant 16 : index
    %138 = vector.load %arg11[%c0_88, %c16] : memref<16x32xf32, #tpu.memory_space<vmem>>, vector<8x8xf32>
    tpu.vector_store %arg11[%c0_88, %c16], %137 {strides = array<i32>} : memref<16x32xf32, #tpu.memory_space<vmem>>, vector<8x8xf32>,
    %139 = vector.extract_strided_slice %113 {offsets = [8, 0], sizes = [8, 8], strides = [1, 1]} : vector<16x8xf32> to vector<8x8xf32>
    %140 = vector.extract_strided_slice %118 {offsets = [8, 0], sizes = [8, 8], strides = [1, 1]} : vector<16x8xf32> to vector<8x8xf32>
    %141 = vector.extract_strided_slice %123 {offsets = [8, 0], sizes = [8, 8], strides = [1, 1]} : vector<16x8xf32> to vector<8x8xf32>
    %cst_89 = arith.constant dense<0.000000e+00> : vector<8x8xf32>
    %142 = tpu.matmul %139, %140, %cst_89 {dimension_numbers = #tpu.dot_dimension_numbers<[1], [1], [0], [0], [0, 0, 1, 0], [], []>, precision = #tpu.contract_precision<fp32>} : vector<8x8xf32>, vector<8x8xf32>, vector<8x8xf32> -> vector<8x8xf32>
    %cst_90 = arith.constant dense<0xFF800000> : vector<8xf32>
    %143 = vector.multi_reduction <maximumf>, %142, %cst_90 [1] : vector<8x8xf32> to vector<8xf32>
    %144 = vector.shape_cast %143 : vector<8xf32> to vector<8x1xf32>
    %145 = vector.broadcast %144 : vector<8x1xf32> to vector<8x8xf32>
    %146 = arith.subf %142, %145 : vector<8x8xf32>
    %147 = math.exp %146 : vector<8x8xf32>
    %cst_91 = arith.constant dense<0.000000e+00> : vector<8xf32>
    %148 = vector.multi_reduction <add>, %147, %cst_91 [1] : vector<8x8xf32> to vector<8xf32>
    %149 = vector.shape_cast %148 : vector<8xf32> to vector<8x1xf32>
    %150 = vector.broadcast %149 : vector<8x1xf32> to vector<8x8xf32>
    %151 = arith.divf %147, %150 : vector<8x8xf32>
    %cst_92 = arith.constant dense<0.000000e+00> : vector<8x8xf32>
    %152 = tpu.matmul %151, %141, %cst_92 {dimension_numbers = #tpu.dot_dimension_numbers<[1], [0], [0], [1], [0, 0, 1, 1], [], []>, precision = #tpu.contract_precision<fp32>} : vector<8x8xf32>, vector<8x8xf32>, vector<8x8xf32> -> vector<8x8xf32>
    %c8_93 = arith.constant 8 : index
    %c16_94 = arith.constant 16 : index
    %153 = vector.load %arg11[%c8_93, %c16_94] : memref<16x32xf32, #tpu.memory_space<vmem>>, vector<8x8xf32>
    tpu.vector_store %arg11[%c8_93, %c16_94], %152 {strides = array<i32>} : memref<16x32xf32, #tpu.memory_space<vmem>>, vector<8x8xf32>,
    %c3 = arith.constant 3 : index
    %c0_95 = arith.constant 0 : index
    %c0_96 = arith.constant 0 : index
    %154 = vector.load %arg2[%c3, %c0_95, %c0_96] : memref<4x32x8xf32, #tpu.memory_space<vmem>>, vector<1x32x8xf32>
    %155 = vector.shape_cast %154 : vector<1x32x8xf32> to vector<32x8xf32>
    %c3_97 = arith.constant 3 : index
    %c0_98 = arith.constant 0 : index
    %c0_99 = arith.constant 0 : index
    %156 = vector.load %arg3[%c3_97, %c0_98, %c0_99] : memref<4x32x8xf32, #tpu.memory_space<vmem>>, vector<1x32x8xf32>
    %157 = vector.shape_cast %156 : vector<1x32x8xf32> to vector<32x8xf32>
    %c3_100 = arith.constant 3 : index
    %c0_101 = arith.constant 0 : index
    %c0_102 = arith.constant 0 : index
    %158 = vector.load %arg4[%c3_100, %c0_101, %c0_102] : memref<4x32x8xf32, #tpu.memory_space<vmem>>, vector<1x32x8xf32>
    %159 = vector.shape_cast %158 : vector<1x32x8xf32> to vector<32x8xf32>
    %cst_103 = arith.constant dense<0.000000e+00> : vector<16x8xf32>
    %160 = tpu.matmul %0, %155, %cst_103 {dimension_numbers = #tpu.dot_dimension_numbers<[1], [0], [0], [1], [0, 0, 1, 1], [], []>, precision = #tpu.contract_precision<fp32>} : vector<16x32xf32>, vector<32x8xf32>, vector<16x8xf32> -> vector<16x8xf32>
    %c3_104 = arith.constant 3 : index
    %c0_105 = arith.constant 0 : index
    %c0_106 = arith.constant 0 : index
    %161 = vector.load %arg5[%c3_104, %c0_105, %c0_106] : memref<4x1x8xf32, #tpu.memory_space<vmem>>, vector<1x1x8xf32>
    %162 = vector.shape_cast %161 : vector<1x1x8xf32> to vector<1x8xf32>
    %163 = vector.broadcast %162 : vector<1x8xf32> to vector<16x8xf32>
    %164 = arith.addf %160, %163 : vector<16x8xf32>
    %cst_107 = arith.constant dense<0.000000e+00> : vector<16x8xf32>
    %165 = tpu.matmul %0, %157, %cst_107 {dimension_numbers = #tpu.dot_dimension_numbers<[1], [0], [0], [1], [0, 0, 1, 1], [], []>, precision = #tpu.contract_precision<fp32>} : vector<16x32xf32>, vector<32x8xf32>, vector<16x8xf32> -> vector<16x8xf32>
    %c3_108 = arith.constant 3 : index
    %c0_109 = arith.constant 0 : index
    %c0_110 = arith.constant 0 : index
    %166 = vector.load %arg6[%c3_108, %c0_109, %c0_110] : memref<4x1x8xf32, #tpu.memory_space<vmem>>, vector<1x1x8xf32>
    %167 = vector.shape_cast %166 : vector<1x1x8xf32> to vector<1x8xf32>
    %168 = vector.broadcast %167 : vector<1x8xf32> to vector<16x8xf32>
    %169 = arith.addf %165, %168 : vector<16x8xf32>
    %cst_111 = arith.constant dense<0.000000e+00> : vector<16x8xf32>
    %170 = tpu.matmul %0, %159, %cst_111 {dimension_numbers = #tpu.dot_dimension_numbers<[1], [0], [0], [1], [0, 0, 1, 1], [], []>, precision = #tpu.contract_precision<fp32>} : vector<16x32xf32>, vector<32x8xf32>, vector<16x8xf32> -> vector<16x8xf32>
    %c3_112 = arith.constant 3 : index
    %c0_113 = arith.constant 0 : index
    %c0_114 = arith.constant 0 : index
    %171 = vector.load %arg7[%c3_112, %c0_113, %c0_114] : memref<4x1x8xf32, #tpu.memory_space<vmem>>, vector<1x1x8xf32>
    %172 = vector.shape_cast %171 : vector<1x1x8xf32> to vector<1x8xf32>
    %173 = vector.broadcast %172 : vector<1x8xf32> to vector<16x8xf32>
    %174 = arith.addf %170, %173 : vector<16x8xf32>
    %175 = vector.extract_strided_slice %164 {offsets = [0, 0], sizes = [8, 8], strides = [1, 1]} : vector<16x8xf32> to vector<8x8xf32>
    %176 = vector.extract_strided_slice %169 {offsets = [0, 0], sizes = [8, 8], strides = [1, 1]} : vector<16x8xf32> to vector<8x8xf32>
    %177 = vector.extract_strided_slice %174 {offsets = [0, 0], sizes = [8, 8], strides = [1, 1]} : vector<16x8xf32> to vector<8x8xf32>
    %cst_115 = arith.constant dense<0.000000e+00> : vector<8x8xf32>
    %178 = tpu.matmul %175, %176, %cst_115 {dimension_numbers = #tpu.dot_dimension_numbers<[1], [1], [0], [0], [0, 0, 1, 0], [], []>, precision = #tpu.contract_precision<fp32>} : vector<8x8xf32>, vector<8x8xf32>, vector<8x8xf32> -> vector<8x8xf32>
    %cst_116 = arith.constant dense<0xFF800000> : vector<8xf32>
    %179 = vector.multi_reduction <maximumf>, %178, %cst_116 [1] : vector<8x8xf32> to vector<8xf32>
    %180 = vector.shape_cast %179 : vector<8xf32> to vector<8x1xf32>
    %181 = vector.broadcast %180 : vector<8x1xf32> to vector<8x8xf32>
    %182 = arith.subf %178, %181 : vector<8x8xf32>
    %183 = math.exp %182 : vector<8x8xf32>
    %cst_117 = arith.constant dense<0.000000e+00> : vector<8xf32>
    %184 = vector.multi_reduction <add>, %183, %cst_117 [1] : vector<8x8xf32> to vector<8xf32>
    %185 = vector.shape_cast %184 : vector<8xf32> to vector<8x1xf32>
    %186 = vector.broadcast %185 : vector<8x1xf32> to vector<8x8xf32>
    %187 = arith.divf %183, %186 : vector<8x8xf32>
    %cst_118 = arith.constant dense<0.000000e+00> : vector<8x8xf32>
    %188 = tpu.matmul %187, %177, %cst_118 {dimension_numbers = #tpu.dot_dimension_numbers<[1], [0], [0], [1], [0, 0, 1, 1], [], []>, precision = #tpu.contract_precision<fp32>} : vector<8x8xf32>, vector<8x8xf32>, vector<8x8xf32> -> vector<8x8xf32>
    %c0_119 = arith.constant 0 : index
    %c24 = arith.constant 24 : index
    %189 = vector.load %arg11[%c0_119, %c24] : memref<16x32xf32, #tpu.memory_space<vmem>>, vector<8x8xf32>
    tpu.vector_store %arg11[%c0_119, %c24], %188 {strides = array<i32>} : memref<16x32xf32, #tpu.memory_space<vmem>>, vector<8x8xf32>,
    %190 = vector.extract_strided_slice %164 {offsets = [8, 0], sizes = [8, 8], strides = [1, 1]} : vector<16x8xf32> to vector<8x8xf32>
    %191 = vector.extract_strided_slice %169 {offsets = [8, 0], sizes = [8, 8], strides = [1, 1]} : vector<16x8xf32> to vector<8x8xf32>
    %192 = vector.extract_strided_slice %174 {offsets = [8, 0], sizes = [8, 8], strides = [1, 1]} : vector<16x8xf32> to vector<8x8xf32>
    %cst_120 = arith.constant dense<0.000000e+00> : vector<8x8xf32>
    %193 = tpu.matmul %190, %191, %cst_120 {dimension_numbers = #tpu.dot_dimension_numbers<[1], [1], [0], [0], [0, 0, 1, 0], [], []>, precision = #tpu.contract_precision<fp32>} : vector<8x8xf32>, vector<8x8xf32>, vector<8x8xf32> -> vector<8x8xf32>
    %cst_121 = arith.constant dense<0xFF800000> : vector<8xf32>
    %194 = vector.multi_reduction <maximumf>, %193, %cst_121 [1] : vector<8x8xf32> to vector<8xf32>
    %195 = vector.shape_cast %194 : vector<8xf32> to vector<8x1xf32>
    %196 = vector.broadcast %195 : vector<8x1xf32> to vector<8x8xf32>
    %197 = arith.subf %193, %196 : vector<8x8xf32>
    %198 = math.exp %197 : vector<8x8xf32>
    %cst_122 = arith.constant dense<0.000000e+00> : vector<8xf32>
    %199 = vector.multi_reduction <add>, %198, %cst_122 [1] : vector<8x8xf32> to vector<8xf32>
    %200 = vector.shape_cast %199 : vector<8xf32> to vector<8x1xf32>
    %201 = vector.broadcast %200 : vector<8x1xf32> to vector<8x8xf32>
    %202 = arith.divf %198, %201 : vector<8x8xf32>
    %cst_123 = arith.constant dense<0.000000e+00> : vector<8x8xf32>
    %203 = tpu.matmul %202, %192, %cst_123 {dimension_numbers = #tpu.dot_dimension_numbers<[1], [0], [0], [1], [0, 0, 1, 1], [], []>, precision = #tpu.contract_precision<fp32>} : vector<8x8xf32>, vector<8x8xf32>, vector<8x8xf32> -> vector<8x8xf32>
    %c8_124 = arith.constant 8 : index
    %c24_125 = arith.constant 24 : index
    %204 = vector.load %arg11[%c8_124, %c24_125] : memref<16x32xf32, #tpu.memory_space<vmem>>, vector<8x8xf32>
    tpu.vector_store %arg11[%c8_124, %c24_125], %203 {strides = array<i32>} : memref<16x32xf32, #tpu.memory_space<vmem>>, vector<8x8xf32>,
    %c0_126 = arith.constant 0 : index
    %c0_127 = arith.constant 0 : index
    %205 = vector.load %arg11[%c0_126, %c0_127] : memref<16x32xf32, #tpu.memory_space<vmem>>, vector<16x32xf32>
    %c0_128 = arith.constant 0 : index
    %c0_129 = arith.constant 0 : index
    %206 = vector.load %arg8[%c0_128, %c0_129] : memref<32x32xf32, #tpu.memory_space<vmem>>, vector<32x32xf32>
    %cst_130 = arith.constant dense<0.000000e+00> : vector<16x32xf32>
    %207 = tpu.matmul %205, %206, %cst_130 {dimension_numbers = #tpu.dot_dimension_numbers<[1], [0], [0], [1], [0, 0, 1, 1], [], []>, precision = #tpu.contract_precision<fp32>} : vector<16x32xf32>, vector<32x32xf32>, vector<16x32xf32> -> vector<16x32xf32>
    %c0_131 = arith.constant 0 : index
    %c0_132 = arith.constant 0 : index
    %208 = vector.load %arg9[%c0_131, %c0_132] : memref<1x32xf32, #tpu.memory_space<vmem>>, vector<1x32xf32>
    %209 = vector.broadcast %208 : vector<1x32xf32> to vector<16x32xf32>
    %210 = arith.addf %207, %209 : vector<16x32xf32>
    %c0_133 = arith.constant 0 : index
    %c0_134 = arith.constant 0 : index
    %211 = vector.load %arg10[%c0_133, %c0_134] : memref<16x32xf32, #tpu.memory_space<vmem>>, vector<16x32xf32>
    tpu.vector_store %arg10[%c0_133, %c0_134], %210 {strides = array<i32>} : memref<16x32xf32, #tpu.memory_space<vmem>>, vector<16x32xf32>,
    return
  }
  func.func @transform_0(%arg0: i32) -> (i32, i32) {
    %c0_i32 = arith.constant 0 : i32
    %c0_i32_0 = arith.constant 0 : i32
    %c0_i32_1 = arith.constant 0 : i32
    return %c0_i32, %c0_i32_0 : i32, i32
  }
  func.func @transform_1(%arg0: i32) -> (i32, i32, i32) {
    %c0_i32 = arith.constant 0 : i32
    %c0_i32_0 = arith.constant 0 : i32
    %c0_i32_1 = arith.constant 0 : i32
    %c0_i32_2 = arith.constant 0 : i32
    return %c0_i32, %c0_i32_0, %c0_i32_1 : i32, i32, i32
  }
  func.func @transform_2(%arg0: i32) -> (i32, i32, i32) {
    %c0_i32 = arith.constant 0 : i32
    %c0_i32_0 = arith.constant 0 : i32
    %c0_i32_1 = arith.constant 0 : i32
    %c0_i32_2 = arith.constant 0 : i32
    return %c0_i32, %c0_i32_0, %c0_i32_1 : i32, i32, i32
  }
  func.func @transform_3(%arg0: i32) -> (i32, i32, i32) {
    %c0_i32 = arith.constant 0 : i32
    %c0_i32_0 = arith.constant 0 : i32
    %c0_i32_1 = arith.constant 0 : i32
    %c0_i32_2 = arith.constant 0 : i32
    return %c0_i32, %c0_i32_0, %c0_i32_1 : i32, i32, i32
  }
  func.func @transform_4(%arg0: i32) -> (i32, i32, i32) {
    %c0_i32 = arith.constant 0 : i32
    %c0_i32_0 = arith.constant 0 : i32
    %c0_i32_1 = arith.constant 0 : i32
    %c0_i32_2 = arith.constant 0 : i32
    return %c0_i32, %c0_i32_0, %c0_i32_1 : i32, i32, i32
  }
  func.func @transform_5(%arg0: i32) -> (i32, i32, i32) {
    %c0_i32 = arith.constant 0 : i32
    %c0_i32_0 = arith.constant 0 : i32
    %c0_i32_1 = arith.constant 0 : i32
    %c0_i32_2 = arith.constant 0 : i32
    return %c0_i32, %c0_i32_0, %c0_i32_1 : i32, i32, i32
  }
  func.func @transform_6(%arg0: i32) -> (i32, i32, i32) {
    %c0_i32 = arith.constant 0 : i32
    %c0_i32_0 = arith.constant 0 : i32
    %c0_i32_1 = arith.constant 0 : i32
    %c0_i32_2 = arith.constant 0 : i32
    return %c0_i32, %c0_i32_0, %c0_i32_1 : i32, i32, i32
  }
  func.func @transform_7(%arg0: i32) -> (i32, i32) {
    %c0_i32 = arith.constant 0 : i32
    %c0_i32_0 = arith.constant 0 : i32
    %c0_i32_1 = arith.constant 0 : i32
    return %c0_i32, %c0_i32_0 : i32, i32
  }
  func.func @transform_8(%arg0: i32) -> (i32, i32) {
    %c0_i32 = arith.constant 0 : i32
    %c0_i32_0 = arith.constant 0 : i32
    %c0_i32_1 = arith.constant 0 : i32
    return %c0_i32, %c0_i32_0 : i32, i32
  }
  func.func @transform_9(%arg0: i32) -> (i32, i32) {
    %c0_i32 = arith.constant 0 : i32
    %c0_i32_0 = arith.constant 0 : i32
    %c0_i32_1 = arith.constant 0 : i32
    return %c0_i32, %c0_i32_0 : i32, i32
  }
}

</mosaic_0001>

<bundles_post_ra>
// kernel: head_forward.1
= control target key start
LH: loop header
LB: loop body
LE: loop exit
PB: predicated region body
PF: predicated region fallthrough
CT: control target
= control target key end

     0   :  { %vm53_vm0 = vcmask 261120   ;;  %vm17446_vm1 = vmmov 0   ;;  %vm1658_vm2 = vcmask 64512   ;;  %s17448_s18 = smov 16   ;;  %vm6024_vm3 = vcmask 130112   ;;  %s17449_s19 = smov 24   ;;  %s18431_s1 = inlined_call_operand.vmem [shape: f32[4,32,8], index: 1, kind: input, shape index: {}]   ;;  %s18432_s0 = inlined_call_operand.vmem [shape: f32[16,32], index: 0, kind: input, shape index: {}]   ;;  %s18433_s2 = inlined_call_operand.vmem [shape: f32[4,32,8], index: 2, kind: input, shape index: {}]   ;;  %s18434_s3 = inlined_call_operand.vmem [shape: f32[4,32,8], index: 3, kind: input, shape index: {}]   ;;  %s18435_s4 = inlined_call_operand.vmem [shape: f32[4,1,8], index: 4, kind: input, shape index: {}]   ;;  %s18436_s5 = inlined_call_operand.vmem [shape: f32[4,1,8], index: 5, kind: input, shape index: {}]   ;;  %s18437_s6 = inlined_call_operand.vmem [shape: f32[4,1,8], index: 6, kind: input, shape index: {}]   ;;  %s18438_s7 = inlined_call_operand.vmem [shape: f32[32,32], index: 7, kind: input, shape index: {}]   ;;  %s18439_s8 = inlined_call_operand.vmem [shape: f32[1,32], index: 8, kind: input, shape index: {}]   ;;  %s18440_s9 = inlined_call_operand.vmem [shape: f32[16,32], index: 9, kind: output, shape index: {}]  }
   0x1   :  { %v34_v0 = vld [vmem:[%s18431_s1] sm:$0xff]  ;;  %v35_v1 = vld [vmem:[%s18431_s1 + $0x8] sm:$0xff]  ;;  %v36_v2 = vld [vmem:[%s18431_s1 + $0x10] sm:$0xff]  ;;  %vm9482_vm4 = vcmask 195712   ;;  %vm12940_vm5 = vcmask 261312  }
   0x2   :  { %v61_v3 = vand.u32 4294901760, %v34_v0  ;;  %v64_v4 = vand.u32 4294901760, %v35_v1  ;;  %v37_v5 = vld [vmem:[%s18431_s1 + $0x18] sm:$0xff]  ;;  %v67_v6 = vand.u32 4294901760, %v36_v2  ;;  %v32_v7 = vld [vmem:[%s18432_s0] sm:$0xff]  ;;  %v33_v8 = vld [vmem:[%s18432_s0 + $0x8] sm:$0xff] }
   0x3   :  { %v70_v9 = vand.u32 4294901760, %v37_v5  ;;  %v55_v10 = vsel %vm53_vm0, %v32_v7, 0  ;;  %v58_v11 = vsel %vm53_vm0, %v33_v8, 0  ;;  %v38_v33 = vld [vmem:[%s18433_s2] sm:$0xff]  ;;  %v39_v37 = vld [vmem:[%s18433_s2 + $0x8] sm:$0xff]  ;;  %v40_v48 = vld [vmem:[%s18433_s2 + $0x10] sm:$0xff] }
   0x4   :  { %v17520_v12 = vpack.c.bf16 %v64_v4, %v61_v3  ;;  %v17522_v13 = vand.u32 4294901760, %v55_v10  ;;  %v17524_v14 = vand.u32 4294901760, %v58_v11  ;;  %v151_v15 = vsub.f32 %v34_v0, %v61_v3  ;;  %v41_v49 = vld [vmem:[%s18433_s2 + $0x18] sm:$0xff] }
   0x5   :  { %v17526_v16 = vpack.c.bf16 %v70_v9, %v67_v6  ;;  %v158_v17 = vsub.f32 %v35_v1, %v64_v4  ;;  %v165_v18 = vsub.f32 %v36_v2, %v67_v6  ;;  %v172_v19 = vsub.f32 %v37_v5, %v70_v9 }
   0x6   :  { %16469 = vmatprep.subr.bf16.mxu1 %v17520_v12  ;;  %16493 = vmatprep.subr.bf16.mxu0 %v17520_v12  ;;  %v17531_v20 = vsub.f32 %v55_v10, %v17522_v13  ;;  %v17534_v21 = vsub.f32 %v58_v11, %v17524_v14  ;;  %v152_v22 = vand.u32 4294901760, %v151_v15  ;;  %v596_v43 = vand.u32 4294901760, %v38_v33 }
   0x7   :  { %16471 = vmatpush3.bf16.msra.mxu1 %v17520_v12  ;;  %16495 = vmatpush3.bf16.msra.mxu0 %v17520_v12  ;;  %v159_v23 = vand.u32 4294901760, %v158_v17  ;;  %v166_v24 = vand.u32 4294901760, %v165_v18  ;;  %v173_v25 = vand.u32 4294901760, %v172_v19  ;;  %v599_v47 = vand.u32 4294901760, %v39_v37 }
   0x8   :  { %16473 = vmatprep.subr.bf16.mxu1 %v17526_v16  ;;  %16497 = vmatprep.subr.bf16.mxu0 %v17526_v16  ;;  %v17541_v26 = vand.u32 4294901760, %v17531_v20  ;;  %v17544_v27 = vand.u32 4294901760, %v17534_v21  ;;  %v153_v28 = vsub.f32 %v151_v15, %v152_v22  ;;  %v16484_v50 = vpack.c.bf16 %v158_v17, %v151_v15 }
   0x9   :  { %v160_v29 = vsub.f32 %v158_v17, %v159_v23  ;;  %v16500_v30 = vpack.c.bf16 %v159_v23, %v152_v22  ;;  %v167_v31 = vsub.f32 %v165_v18, %v166_v24  ;;  %v174_v32 = vsub.f32 %v172_v19, %v173_v25  ;;  %v43_v17 = vld [vmem:[%s18434_s3 + $0x8] sm:$0xff] }
   0xa   :  { %v132_v34 = vsub.f32 %v17531_v20, %v17541_v26  ;;  %v142_v35 = vsub.f32 %v17534_v21, %v17544_v27  ;;  %v154_v36 = vand.u32 4294901760, %v153_v28  ;;  %15171 = vmatprep.mubr.f32.mxu0 %v17541_v26  ;;  %v16504_v46 = vpack.c.bf16 %v173_v25, %v166_v24  ;;  %v44_v25 = vld [vmem:[%s18434_s3 + $0x10] sm:$0xff]  ;;  %v45_v28 = vld [vmem:[%s18434_s3 + $0x18] sm:$0xff] }
   0xb   :  { %16475 = vmatpush3.bf16.msra.mxu1 %v17526_v16  ;;  %16499 = vmatpush3.bf16.msra.mxu0 %v17526_v16  ;;  %v161_v38 = vand.u32 4294901760, %v160_v29  ;;  %v168_v39 = vand.u32 4294901760, %v167_v31  ;;  %v175_v40 = vand.u32 4294901760, %v174_v32  ;;  %v602_v51 = vand.u32 4294901760, %v40_v48 }
   0xc   :  { %v17559_v41 = vand.u32 4294901760, %v132_v34  ;;  %v17561_v42 = vand.u32 4294901760, %v142_v35  ;;  %16501 = vmatprep.subr.bf16.mxu0 %v16500_v30  ;;  %v605_v52 = vand.u32 4294901760, %v41_v49  ;;  %v17572_v53 = vsub.f32 %v38_v33, %v596_v43 }
   0xd   :  { %v16476_v44 = vpack.c.bf16 %v161_v38, %v154_v36  ;;  %v16480_v45 = vpack.c.bf16 %v175_v40, %v168_v39  ;;  %v17574_v54 = vsub.f32 %v39_v37, %v599_v47  ;;  %v16488_v55 = vpack.c.bf16 %v172_v19, %v165_v18 }
   0xe   :  { %15138 = vmatprep.mubr.f32.mxu1 %v17559_v41  ;;  %15172 = vmatmul.mubr.f32.vlgmr.msra.gmra.mrb[0].mxu0 %v17544_v27  ;;  %v687_v56 = vand.u32 4294901760, %v17572_v53  ;;  %v700_v58 = vsub.f32 %v40_v48, %v602_v51  ;;  %v707_v59 = vsub.f32 %v41_v49, %v605_v52  ;;  %v16516_v60 = vpack.c.bf16 %v599_v47, %v596_v43 }
   0xf   :  { %15139 = vmatmul.mubr.f32.vlgmr.msra.gmra.mrb[0].mxu1 %v17561_v42  ;;  %16477 = vmatprep.subr.bf16.mxu1 %v16476_v44  ;;  %v694_v57 = vand.u32 4294901760, %v17574_v54  ;;  %v16520_v1 = vpack.c.bf16 %v605_v52, %v602_v51  ;;  %v16532_v10 = vpack.c.bf16 %v17574_v54, %v17572_v53  ;;  %v1134_v19 = vand.u32 4294901760, %v43_v17 }
  0x10   :  { %16479 = vmatpush3.bf16.msra.mxu1 %v16476_v44  ;;  %16503 = vmatpush3.bf16.msra.mxu0 %v16500_v30  ;;  %v688_v61 = vsub.f32 %v17572_v53, %v687_v56  ;;  %v701_v63 = vand.u32 4294901760, %v700_v58  ;;  %v708_v0 = vand.u32 4294901760, %v707_v59  ;;  %v16536_v11 = vpack.c.bf16 %v707_v59, %v700_v58 }
  0x11   :  { %16481 = vmatprep.subr.bf16.mxu1 %v16480_v45  ;;  %16505 = vmatprep.subr.bf16.mxu0 %v16504_v46  ;;  %v695_v62 = vsub.f32 %v17574_v54, %v694_v57  ;;  %v1228_v24 = vsub.f32 %v43_v17, %v1134_v19  ;;  %v1137_v29 = vand.u32 4294901760, %v44_v25  ;;  %v1140_v30 = vand.u32 4294901760, %v45_v28 }
  0x12   :  { %15149 = vmatprep.mubr.f32.mxu1 %v17522_v13  ;;  %15182 = vmatprep.mubr.f32.mxu0 %v17522_v13  ;;  %v689_v2 = vand.u32 4294901760, %v688_v61  ;;  %v702_v4 = vsub.f32 %v700_v58, %v701_v63  ;;  %v709_v5 = vsub.f32 %v707_v59, %v708_v0  ;;  %v16552_v15 = vpack.c.bf16 %v708_v0, %v701_v63 }
  0x13   :  { %v696_v3 = vand.u32 4294901760, %v695_v62  ;;  %v1229_v32 = vand.u32 4294901760, %v1228_v24  ;;  %v16568_v33 = vpack.c.bf16 %v1140_v30, %v1137_v29  ;;  %v1235_v36 = vsub.f32 %v44_v25, %v1137_v29 }
  0x14   :  { %16483 = vmatpush3.bf16.msra.mxu1 %v16480_v45  ;;  %16507 = vmatpush3.bf16.msra.mxu0 %v16504_v46  ;;  %v703_v7 = vand.u32 4294901760, %v702_v4  ;;  %v710_v8 = vand.u32 4294901760, %v709_v5  ;;  %v1242_v37 = vsub.f32 %v45_v28, %v1140_v30  ;;  %v17445_v54 = vmov 0.0  }
  0x15   :  { %16485 = vmatprep.subr.bf16.mxu1 %v16484_v50  ;;  %16509 = vmatprep.subr.bf16.mxu0 %v17520_v12  ;;  %v16524_v6 = vpack.c.bf16 %v696_v3, %v689_v2  ;;  %v1230_v35 = vsub.f32 %v1228_v24, %v1229_v32  ;;  %v1236_v40 = vand.u32 4294901760, %v1235_v36 }
  0x16   :  { %v16528_v9 = vpack.c.bf16 %v710_v8, %v703_v7  ;;  %v1243_v43 = vand.u32 4294901760, %v1242_v37  ;;  %v16584_v51 = vpack.c.bf16 %v1242_v37, %v1235_v36 }
  0x17   :  { %15150 = vmatmul.mubr.f32.vlgmr.msra.gmra.mrb[0].mxu1 %v17524_v14  ;;  %15183 = vmatmul.mubr.f32.vlgmr.msra.gmra.mrb[0].mxu0 %v17524_v14  ;;  %v1231_v39 = vand.u32 4294901760, %v1230_v35  ;;  %v1237_v45 = vsub.f32 %v1235_v36, %v1236_v40  ;;  %v14414_v35 = vld [vmem:[%s18437_s6] ss:$0 sm:$0xff] }
  0x18   :  { %16487 = vmatpush3.bf16.msra.mxu1 %v16484_v50  ;;  %16511 = vmatpush3.bf16.msra.mxu0 %v17520_v12  ;;  %v16548_v12 = vpack.c.bf16 %v694_v57, %v687_v56  ;;  %v1244_v46 = vsub.f32 %v1242_v37, %v1243_v43  ;;  %v16600_v53 = vpack.c.bf16 %v1243_v43, %v1236_v40 }
  0x19   :  { %16489 = vmatprep.subr.bf16.mxu1 %v16488_v55  ;;  %16513 = vmatprep.subr.bf16.mxu0 %v17526_v16  ;;  %v1238_v47 = vand.u32 4294901760, %v1237_v45 }
  0x1a   :  { %15160 = vmatprep.mubr.f32.mxu1 %v17531_v20  ;;  %15193 = vmatprep.mubr.f32.mxu0 %v17522_v13  ;;  %v1245_v48 = vand.u32 4294901760, %v1244_v46 }
  0x1c   :  { %16491 = vmatpush3.bf16.msra.mxu1 %v16488_v55  ;;  %16515 = vmatpush3.bf16.msra.mxu0 %v17526_v16  ;;  %v42_v16 = vld [vmem:[%s18434_s3] sm:$0xff]  ;;  %v16576_v49 = vpack.c.bf16 %v1245_v48, %v1238_v47 }
  0x1d   :  { %16517 = vmatprep.subr.bf16.mxu1 %v16516_v60  ;;  %v1131_v18 = vand.u32 4294901760, %v42_v16  ;;  %v14412_v55 = vld [vmem:[%s18435_s4] ss:$0 sm:$0xff] }
  0x1f   :  { %15161 = vmatmul.mubr.f32.vlgmr.msra.gmra.mrb[0].mxu1 %v17534_v21  ;;  %15194 = vmatmul.mubr.f32.vlgmr.msra.gmra.mrb[0].mxu0 %v17524_v14  ;;  %v16564_v22 = vpack.c.bf16 %v1134_v19, %v1131_v18  ;;  %v1221_v23 = vsub.f32 %v42_v16, %v1131_v18 }
  0x20   :  { %16519 = vmatpush3.bf16.msra.mxu1 %v16516_v60  ;;  %15204 = vmatprep.mubr.f32.mxu1 %v17559_v41 }
  0x21   :  { %16521 = vmatprep.subr.bf16.mxu1 %v16520_v1  ;;  %15270 = vmatprep.mubr.f32.mxu0 %v17559_v41  ;;  %v1222_v31 = vand.u32 4294901760, %v1221_v23  ;;  %v16580_v50 = vpack.c.bf16 %v1228_v24, %v1221_v23 }
  0x22   :  { %16565 = vmatprep.subr.bf16.mxu0 %v16564_v22 }
  0x23   :  { %16567 = vmatpush3.bf16.msra.mxu0 %v16564_v22  ;;  %v1223_v34 = vsub.f32 %v1221_v23, %v1222_v31  ;;  %v16596_v52 = vpack.c.bf16 %v1229_v32, %v1222_v31 }
  0x24   :  { %16523 = vmatpush3.bf16.msra.mxu1 %v16520_v1  ;;  %16569 = vmatprep.subr.bf16.mxu0 %v16568_v33 }
  0x25   :  { %16525 = vmatprep.subr.bf16.mxu1 %v16524_v6  ;;  %v1224_v38 = vand.u32 4294901760, %v1223_v34 }
  0x27   :  { %15205 = vmatmul.mubr.f32.vlgmr.msra.gmra.mrb[2].mxu1 %v17561_v42  ;;  %16571 = vmatpush3.bf16.msra.mxu0 %v16568_v33  ;;  %v16572_v44 = vpack.c.bf16 %v1231_v39, %v1224_v38 }
  0x28   :  { %16527 = vmatpush3.bf16.msra.mxu1 %v16524_v6  ;;  %15215 = vmatprep.mubr.f32.mxu1 %v17522_v13  ;;  %v14413_v6 = vld [vmem:[%s18436_s5] ss:$0 sm:$0xff] }
  0x29   :  { %16529 = vmatprep.subr.bf16.mxu1 %v16528_v9  ;;  %16573 = vmatprep.subr.bf16.mxu0 %v16572_v44 }
  0x2a   :  { %15271 = vmatmul.mubr.f32.vlgmr.msra.gmra.mrb[2].mxu0 %v17561_v42 }
  0x2b   :  { %16575 = vmatpush3.bf16.msra.mxu0 %v16572_v44  ;;  %15281 = vmatprep.mubr.f32.mxu0 %v17522_v13 }
  0x2c   :  { %16531 = vmatpush3.bf16.msra.mxu1 %v16528_v9  ;;  %16577 = vmatprep.subr.bf16.mxu0 %v16576_v49 }
  0x2d   :  { %16533 = vmatprep.subr.bf16.mxu1 %v16532_v10 }
  0x2f   :  { %15216 = vmatmul.mubr.f32.vlgmr.msra.gmra.mrb[2].mxu1 %v17524_v14  ;;  %16579 = vmatpush3.bf16.msra.mxu0 %v16576_v49 }
  0x30   :  { %16535 = vmatpush3.bf16.msra.mxu1 %v16532_v10  ;;  %15226 = vmatprep.mubr.f32.mxu1 %v17531_v20 }
  0x31   :  { %16537 = vmatprep.subr.bf16.mxu1 %v16536_v11  ;;  %16581 = vmatprep.subr.bf16.mxu0 %v16580_v50 }
  0x32   :  { %15282 = vmatmul.mubr.f32.vlgmr.msra.gmra.mrb[2].mxu0 %v17524_v14 }
  0x33   :  { %16583 = vmatpush3.bf16.msra.mxu0 %v16580_v50  ;;  %15292 = vmatprep.mubr.f32.mxu0 %v17531_v20 }
  0x34   :  { %16539 = vmatpush3.bf16.msra.mxu1 %v16536_v11  ;;  %16585 = vmatprep.subr.bf16.mxu0 %v16584_v51 }
  0x35   :  { %16541 = vmatprep.subr.bf16.mxu1 %v16516_v60 }
  0x37   :  { %15227 = vmatmul.mubr.f32.vlgmr.msra.gmra.mrb[2].mxu1 %v17534_v21  ;;  %16587 = vmatpush3.bf16.msra.mxu0 %v16584_v51 }
  0x38   :  { %16543 = vmatpush3.bf16.msra.mxu1 %v16516_v60  ;;  %15237 = vmatprep.mubr.f32.mxu1 %v17541_v26 }
  0x39   :  { %16545 = vmatprep.subr.bf16.mxu1 %v16520_v1  ;;  %16589 = vmatprep.subr.bf16.mxu0 %v16564_v22 }
  0x3a   :  { %15293 = vmatmul.mubr.f32.vlgmr.msra.gmra.mrb[2].mxu0 %v17534_v21 }
  0x3b   :  { %16591 = vmatpush3.bf16.msra.mxu0 %v16564_v22  ;;  %15303 = vmatprep.mubr.f32.mxu0 %v17541_v26 }
  0x3c   :  { %16547 = vmatpush3.bf16.msra.mxu1 %v16520_v1  ;;  %16593 = vmatprep.subr.bf16.mxu0 %v16568_v33 }
  0x3d   :  { %16549 = vmatprep.subr.bf16.mxu1 %v16548_v12 }
  0x3f   :  { %15238 = vmatmul.mubr.f32.vlgmr.msra.gmra.mrb[2].mxu1 %v17544_v27  ;;  %16595 = vmatpush3.bf16.msra.mxu0 %v16568_v33 }
  0x40   :  { %16551 = vmatpush3.bf16.msra.mxu1 %v16548_v12  ;;  %15248 = vmatprep.mubr.f32.mxu1 %v17522_v13 }
  0x41   :  { %16553 = vmatprep.subr.bf16.mxu1 %v16552_v15  ;;  %16597 = vmatprep.subr.bf16.mxu0 %v16596_v52 }
  0x42   :  { %15304 = vmatmul.mubr.f32.vlgmr.msra.gmra.mrb[2].mxu0 %v17544_v27 }
  0x43   :  { %16599 = vmatpush3.bf16.msra.mxu0 %v16596_v52  ;;  %15314 = vmatprep.mubr.f32.mxu0 %v17522_v13 }
  0x44   :  { %16555 = vmatpush3.bf16.msra.mxu1 %v16552_v15  ;;  %16601 = vmatprep.subr.bf16.mxu0 %v16600_v53 }
  0x45   :  { %16557 = vmatprep.subr.bf16.mxu1 %v16516_v60 }
  0x47   :  { %15249 = vmatmul.mubr.f32.vlgmr.msra.gmra.mrb[2].mxu1 %v17524_v14  ;;  %16603 = vmatpush3.bf16.msra.mxu0 %v16600_v53 }
  0x48   :  { %16559 = vmatpush3.bf16.msra.mxu1 %v16516_v60  ;;  %15259 = vmatprep.mubr.f32.mxu1 %v17522_v13 }
  0x49   :  { %16561 = vmatprep.subr.bf16.mxu1 %v16520_v1  ;;  %16605 = vmatprep.subr.bf16.mxu0 %v16564_v22 }
  0x4a   :  { %15315 = vmatmul.mubr.f32.vlgmr.msra.gmra.mrb[2].mxu0 %v17524_v14 }
  0x4b   :  { %16607 = vmatpush3.bf16.msra.mxu0 %v16564_v22  ;;  %15325 = vmatprep.mubr.f32.mxu0 %v17522_v13 }
  0x4c   :  { %16563 = vmatpush3.bf16.msra.mxu1 %v16520_v1  ;;  %16609 = vmatprep.subr.bf16.mxu0 %v16568_v33 }
  0x4d   :  { %15328 = vmatprep.subr.mxu1 %v17445_v54 }
  0x4f   :  { %15260 = vmatmul.mubr.f32.vlgmr.msra.gmra.mrb[2].mxu1 %v17524_v14  ;;  %16611 = vmatpush3.bf16.msra.mxu0 %v16568_v33 }
  0x50   :  { %15388 = vmatprep.subr.mxu0 %v17445_v54  ;;  %15330 = vmatprep.mubr.msk.f32.mxu1 %vm17446_vm1, %v17445_v54 }
  0x52   :  { %15326 = vmatmul.mubr.f32.vlgmr.msra.gmra.mrb[2].mxu0 %v17524_v14 }
  0x53   :  { %15390 = vmatprep.mubr.msk.f32.mxu0 %vm17446_vm1, %v17445_v54 }
  0xf2   :  { %v15162_v56 = vpop.f32.mrb[0].mxu1  ;;  %v15195_v57 = vpop.f32.mrb[0].mxu0 }
  0xf3   :  { %v17092_v58 = vadd.f32 %v15162_v56, %v14412_v55  ;;  %v322_v59 = vpop.f32.mrb[1].mxu1  ;;  %v578_v60 = vpop.f32.mrb[1].mxu0 }
  0xf4   :  { %v17094_v61 = vadd.f32 %v14412_v55, %v322_v59 }
  0xf5   :  { %v17093_v62 = vadd.f32 %v17092_v58, %v15195_v57 }
  0xf6   :  { %v17095_v63 = vadd.f32 %v17094_v61, %v578_v60  ;;  %v14415_v60 = vld [vmem:[%s18431_s1 + $0x20] sm:$0xff]  ;;  %v14416_v61 = vld [vmem:[%s18431_s1 + $0x28] sm:$0xff] }
  0xf7   :  { %v2573_v0 = vsel %vm1658_vm2, %v17093_v62, 0  ;;  %v3509_v62 = vand.u32 4294901760, %v14415_v60 }
  0xf8   :  { %v1660_v1 = vsel %vm1658_vm2, %v17095_v63, 0  ;;  %v17641_v2 = vand.u32 4294901760, %v2573_v0  ;;  %v3512_v63 = vand.u32 4294901760, %v14416_v61 }
  0xf9   :  { %v17643_v3 = vand.u32 4294901760, %v1660_v1 }
  0xfa   :  { %v2645_v4 = vsub.f32 %v2573_v0, %v17641_v2  ;;  %v16612_v0 = vpack.c.bf16 %v3512_v63, %v3509_v62 }
  0xfb   :  { %v1732_v5 = vsub.f32 %v1660_v1, %v17643_v3  ;;  %v3599_v1 = vsub.f32 %v14415_v60, %v3509_v62 }
  0xfc   :  { %v2646_v7 = vand.u32 4294901760, %v2645_v4 }
  0xfd   :  { %v1733_v8 = vand.u32 4294901760, %v1732_v5 }
  0xfe   :  { %v2647_v16 = vsub.f32 %v2645_v4, %v2646_v7 }
  0xff   :  { %v1734_v19 = vsub.f32 %v1732_v5, %v1733_v8 }
 0x100   :  { %v2648_v25 = vand.u32 4294901760, %v2647_v16 }
 0x101   :  { %v1735_v29 = vand.u32 4294901760, %v1734_v19 }
 0x122   :  { %v15261_v9 = vpop.f32.mrb[2].mxu1 }
 0x123   :  { %v17096_v10 = vadd.f32 %v15261_v9, %v14413_v6  ;;  %v1113_v11 = vpop.f32.mrb[3].mxu1 }
 0x124   :  { %v17097_v12 = vadd.f32 %v14413_v6, %v1113_v11 }
 0x125   :  { %v2576_v15 = vsel %vm1658_vm2, %v17096_v10, 0  ;;  %v15327_v36 = vpop.f32.mrb[2].mxu0 }
 0x126   :  { %v2579_v17 = vand.u32 4294901760, %v2576_v15  ;;  %v1663_v18 = vsel %vm1658_vm2, %v17097_v12, 0  ;;  %v17695_v37 = vadd.f32 %v15327_v36, %v14414_v35  ;;  %v1648_v38 = vpop.f32.mrb[3].mxu0 }
 0x127   :  { %v1666_v22 = vand.u32 4294901760, %v1663_v18  ;;  %v17697_v39 = vadd.f32 %v14414_v35, %v1648_v38 }
 0x128   :  { %v2656_v23 = vsub.f32 %v2576_v15, %v2579_v17  ;;  %15389 = vmatpush3.xpose.msra.mxu0 %v2579_v17 }
 0x129   :  { %v1743_v24 = vsub.f32 %v1663_v18, %v1666_v22  ;;  %15329 = vmatpush3.xpose.msra.mxu1 %v1666_v22  ;;  %15393 = vmatprep.subr.mxu0 %v17445_v54  ;;  %v17700_v40 = vand.u32 4294901760, %v17697_v39 }
 0x12a   :  { %v2657_v28 = vand.u32 4294901760, %v2656_v23  ;;  %15333 = vmatprep.subr.mxu1 %v17445_v54 }
 0x12b   :  { %v1744_v30 = vand.u32 4294901760, %v1743_v24  ;;  %15391 = vmatmul.mubr.f32.vlgmr.msra.gmra.mrb[4].mxu0 %v2648_v25  ;;  %v2203_v36 = vsub.f32 %v17697_v39, %v17700_v40 }
 0x12c   :  { %15331 = vmatmul.mubr.f32.vlgmr.msra.gmra.mrb[4].mxu1 %v1735_v29  ;;  %v2658_v31 = vsub.f32 %v2656_v23, %v2657_v28  ;;  %15395 = vmatprep.mubr.msk.f32.mxu0 %vm17446_vm1, %v17445_v54 }
 0x12d   :  { %v1745_v32 = vsub.f32 %v1743_v24, %v1744_v30  ;;  %15335 = vmatprep.mubr.msk.f32.mxu1 %vm17446_vm1, %v17445_v54 }
 0x12e   :  { %v2659_v33 = vand.u32 4294901760, %v2658_v31 }
 0x12f   :  { %v1746_v34 = vand.u32 4294901760, %v1745_v32 }
 0x130   :  { %15394 = vmatpush3.xpose.msra.mxu0 %v2659_v33 }
 0x131   :  { %15334 = vmatpush3.xpose.msra.mxu1 %v1746_v34  ;;  %15398 = vmatprep.subr.mxu0 %v17445_v54 }
 0x132   :  { %15338 = vmatprep.subr.mxu1 %v17445_v54 }
 0x133   :  { %15396 = vmatmul.mubr.f32.vlgmr.msra.gmra.mrb[4].mxu0 %v17641_v2 }
 0x134   :  { %15336 = vmatmul.mubr.f32.vlgmr.msra.gmra.mrb[4].mxu1 %v17643_v3  ;;  %15399 = vmatpush3.xpose.msra.mxu0 %v2656_v23 }
 0x135   :  { %15339 = vmatpush3.xpose.msra.mxu1 %v1743_v24  ;;  %15400 = vmatprep.mubr.msk.f32.mxu0 %vm17446_vm1, %v17445_v54 }
 0x136   :  { %15403 = vmatprep.subr.mxu0 %v17445_v54  ;;  %15340 = vmatprep.mubr.msk.f32.mxu1 %vm17446_vm1, %v17445_v54 }
 0x137   :  { %15343 = vmatprep.subr.mxu1 %v17445_v54 }
 0x13b   :  { %15401 = vmatmul.mubr.f32.vlgmr.msra.gmra.mrb[4].mxu0 %v2645_v4  ;;  %v14418_v4 = vld [vmem:[%s18431_s1 + $0x38] sm:$0xff] }
 0x13c   :  { %15404 = vmatpush3.xpose.msra.mxu0 %v2579_v17  ;;  %15341 = vmatmul.mubr.f32.vlgmr.msra.gmra.mrb[4].mxu1 %v1732_v5  ;;  %v3518_v6 = vand.u32 4294901760, %v14418_v4 }
 0x13d   :  { %15344 = vmatpush3.xpose.msra.mxu1 %v1666_v22  ;;  %15405 = vmatprep.mubr.msk.f32.mxu0 %vm17446_vm1, %v17445_v54 }
 0x13e   :  { %15408 = vmatprep.subr.mxu0 %v17445_v54  ;;  %15345 = vmatprep.mubr.msk.f32.mxu1 %vm17446_vm1, %v17445_v54  ;;  %v3620_v15 = vsub.f32 %v14418_v4, %v3518_v6  ;;  %v14421_v4 = vld [vmem:[%s18433_s2 + $0x30] sm:$0xff] }
 0x13f   :  { %15348 = vmatprep.subr.mxu1 %v17445_v54 }
 0x140   :  { %v3621_v19 = vand.u32 4294901760, %v3620_v15 }
 0x142   :  { %v3622_v24 = vsub.f32 %v3620_v15, %v3621_v19 }
 0x143   :  { %15406 = vmatmul.mubr.f32.vlgmr.msra.gmra.mrb[4].mxu0 %v2646_v7  ;;  %v3600_v7 = vand.u32 4294901760, %v3599_v1 }
 0x144   :  { %15409 = vmatpush3.xpose.msra.mxu0 %v2657_v28  ;;  %15346 = vmatmul.mubr.f32.vlgmr.msra.gmra.mrb[4].mxu1 %v1733_v8  ;;  %v3623_v28 = vand.u32 4294901760, %v3622_v24 }
 0x145   :  { %15349 = vmatpush3.xpose.msra.mxu1 %v1744_v30  ;;  %15410 = vmatprep.mubr.msk.f32.mxu0 %vm17446_vm1, %v17445_v54  ;;  %v3601_v10 = vsub.f32 %v3599_v1, %v3600_v7 }
 0x146   :  { %15413 = vmatprep.subr.mxu0 %v17445_v54  ;;  %15350 = vmatprep.mubr.msk.f32.mxu1 %vm17446_vm1, %v17445_v54 }
 0x147   :  { %15353 = vmatprep.subr.mxu1 %v17445_v54  ;;  %v3602_v16 = vand.u32 4294901760, %v3601_v10 }
 0x14b   :  { %15411 = vmatmul.mubr.f32.vlgmr.msra.gmra.mrb[4].mxu0 %v17641_v2 }
 0x14c   :  { %15414 = vmatpush3.xpose.msra.mxu0 %v2579_v17  ;;  %15351 = vmatmul.mubr.f32.vlgmr.msra.gmra.mrb[4].mxu1 %v17643_v3 }
 0x14d   :  { %15354 = vmatpush3.xpose.msra.mxu1 %v1666_v22  ;;  %15415 = vmatprep.mubr.msk.f32.mxu0 %vm17446_vm1, %v17445_v54 }
 0x14e   :  { %15355 = vmatprep.mubr.msk.f32.mxu1 %vm17446_vm1, %v17445_v54  ;;  %15358 = vmatprep.subr.mxu1 %v17445_v54 }
 0x14f   :  { %16613 = vmatprep.subr.bf16.mxu0 %v16612_v0 }
 0x153   :  { %15416 = vmatmul.mubr.f32.vlgmr.msra.gmra.mrb[4].mxu0 %v17641_v2  ;;  %v3606_v2 = vsub.f32 %v14416_v61, %v3512_v63 }
 0x154   :  { %15356 = vmatmul.mubr.f32.vlgmr.msra.gmra.mrb[4].mxu1 %v17643_v3  ;;  %15456 = vmatprep.mubr.f32.mxu0 %v17559_v41  ;;  %v14417_v3 = vld [vmem:[%s18431_s1 + $0x30] sm:$0xff] }
 0x155   :  { %15360 = vmatprep.mubr.msk.f32.mxu1 %vm17446_vm1, %v17445_v54  ;;  %15359 = vmatpush3.msra.mxu1 %v17700_v40  ;;  %v3515_v5 = vand.u32 4294901760, %v14417_v3  ;;  %v3607_v8 = vand.u32 4294901760, %v3606_v2  ;;  %v16628_v30 = vpack.c.bf16 %v3606_v2, %v3599_v1  ;;  %v14420_v1 = vld [vmem:[%s18433_s2 + $0x28] sm:$0xff] }
 0x156   :  { %15363 = vmatprep.subr.mxu1 %v17445_v54  ;;  %16615 = vmatpush3.bf16.msra.mxu0 %v16612_v0 }
 0x157   :  { %v16616_v9 = vpack.c.bf16 %v3518_v6, %v3515_v5  ;;  %v3608_v11 = vsub.f32 %v3606_v2, %v3607_v8  ;;  %v3613_v12 = vsub.f32 %v14417_v3, %v3515_v5  ;;  %v16644_v32 = vpack.c.bf16 %v3607_v8, %v3600_v7  ;;  %v14422_v5 = vld [vmem:[%s18433_s2 + $0x38] sm:$0xff] }
 0x158   :  { %v4048_v3 = vand.u32 4294901760, %v14420_v1  ;;  %v4051_v6 = vand.u32 4294901760, %v14421_v4  ;;  %v4054_v7 = vand.u32 4294901760, %v14422_v5 }
 0x159   :  { %16617 = vmatprep.subr.bf16.mxu0 %v16616_v9  ;;  %v3609_v17 = vand.u32 4294901760, %v3608_v11  ;;  %v3614_v18 = vand.u32 4294901760, %v3613_v12  ;;  %v16632_v31 = vpack.c.bf16 %v3620_v15, %v3613_v12 }
 0x15a   :  { %16619 = vmatpush3.bf16.msra.mxu0 %v16616_v9  ;;  %v4149_v15 = vsub.f32 %v14421_v4, %v4051_v6 }
 0x15b   :  { %v16620_v22 = vpack.c.bf16 %v3609_v17, %v3602_v16  ;;  %v3615_v23 = vsub.f32 %v3613_v12, %v3614_v18  ;;  %v16648_v33 = vpack.c.bf16 %v3621_v19, %v3614_v18  ;;  %v4156_v16 = vsub.f32 %v14422_v5, %v4054_v7 }
 0x15c   :  { %v4150_v19 = vand.u32 4294901760, %v4149_v15 }
 0x15d   :  { %15457 = vmatmul.mubr.f32.vlgmr.msra.gmra.mrb[6].mxu0 %v17561_v42  ;;  %16621 = vmatprep.subr.bf16.mxu0 %v16620_v22  ;;  %v3616_v25 = vand.u32 4294901760, %v3615_v23  ;;  %v16664_v23 = vpack.c.bf16 %v4054_v7, %v4051_v6 }
 0x15e   :  { %16623 = vmatpush3.bf16.msra.mxu0 %v16620_v22  ;;  %15467 = vmatprep.mubr.f32.mxu0 %v17522_v13  ;;  %v4157_v22 = vand.u32 4294901760, %v4156_v16 }
 0x15f   :  { %v16624_v29 = vpack.c.bf16 %v3623_v28, %v3616_v25  ;;  %v4151_v28 = vsub.f32 %v4149_v15, %v4150_v19 }
 0x161   :  { %16625 = vmatprep.subr.bf16.mxu0 %v16624_v29 }
 0x162   :  { %16627 = vmatpush3.bf16.msra.mxu0 %v16624_v29  ;;  %v4158_v29 = vsub.f32 %v4156_v16, %v4157_v22 }
 0x163   :  { %16629 = vmatprep.subr.bf16.mxu0 %v16628_v30 }
 0x165   :  { %15468 = vmatmul.mubr.f32.vlgmr.msra.gmra.mrb[6].mxu0 %v17524_v14 }
 0x166   :  { %16631 = vmatpush3.bf16.msra.mxu0 %v16628_v30  ;;  %15478 = vmatprep.mubr.f32.mxu0 %v17531_v20 }
 0x167   :  { %16633 = vmatprep.subr.bf16.mxu0 %v16632_v31 }
 0x16a   :  { %16635 = vmatpush3.bf16.msra.mxu0 %v16632_v31  ;;  %v4152_v31 = vand.u32 4294901760, %v4151_v28 }
 0x16b   :  { %16637 = vmatprep.subr.bf16.mxu0 %v16612_v0 }
 0x16d   :  { %15479 = vmatmul.mubr.f32.vlgmr.msra.gmra.mrb[6].mxu0 %v17534_v21 }
 0x16e   :  { %16639 = vmatpush3.bf16.msra.mxu0 %v16612_v0  ;;  %15489 = vmatprep.mubr.f32.mxu0 %v17541_v26 }
 0x16f   :  { %16641 = vmatprep.subr.bf16.mxu0 %v16616_v9 }
 0x172   :  { %16643 = vmatpush3.bf16.msra.mxu0 %v16616_v9 }
 0x173   :  { %16645 = vmatprep.subr.bf16.mxu0 %v16644_v32 }
 0x175   :  { %15490 = vmatmul.mubr.f32.vlgmr.msra.gmra.mrb[6].mxu0 %v17544_v27 }
 0x176   :  { %16647 = vmatpush3.bf16.msra.mxu0 %v16644_v32  ;;  %15500 = vmatprep.mubr.f32.mxu0 %v17522_v13  ;;  %v4159_v32 = vand.u32 4294901760, %v4158_v29 }
 0x177   :  { %16649 = vmatprep.subr.bf16.mxu0 %v16648_v33 }
 0x17a   :  { %16651 = vmatpush3.bf16.msra.mxu0 %v16648_v33  ;;  %v16672_v33 = vpack.c.bf16 %v4159_v32, %v4152_v31 }
 0x17b   :  { %16653 = vmatprep.subr.bf16.mxu0 %v16612_v0 }
 0x17d   :  { %15501 = vmatmul.mubr.f32.vlgmr.msra.gmra.mrb[6].mxu0 %v17524_v14 }
 0x17e   :  { %16655 = vmatpush3.bf16.msra.mxu0 %v16612_v0  ;;  %15511 = vmatprep.mubr.f32.mxu0 %v17522_v13 }
 0x17f   :  { %16657 = vmatprep.subr.bf16.mxu0 %v16616_v9 }
 0x182   :  { %16659 = vmatpush3.bf16.msra.mxu0 %v16616_v9  ;;  %v4142_v9 = vsub.f32 %v14420_v1, %v4048_v3 }
 0x184   :  { %v4143_v12 = vand.u32 4294901760, %v4142_v9 }
 0x185   :  { %15512 = vmatmul.mubr.f32.vlgmr.msra.gmra.mrb[6].mxu0 %v17524_v14 }
 0x186   :  { %15588 = vmatprep.mubr.f32.mxu0 %v17559_v41  ;;  %v4144_v18 = vsub.f32 %v4142_v9, %v4143_v12 }
 0x188   :  { %v4145_v25 = vand.u32 4294901760, %v4144_v18 }
 0x226   :  { %v3020_v43 = vpop.f32.mrb[4].mxu0 }
 0x227   :  { %v2107_v44 = vpop.f32.mrb[4].mxu1  ;;  %v15417_v45 = vpop.f32.mrb[5].mxu0  ;;  %v3024_v48 = vsel %vm1658_vm2, %v3020_v43, -inf }
 0x228   :  { %v15357_v46 = vpop.f32.mrb[5].mxu1  ;;  %v2111_v47 = vsel %vm1658_vm2, %v2107_v44, -inf  ;;  %v2204_v45 = vand.u32 4294901760, %v2203_v36 }
 0x229   :  { %2112 = vmax.xlane.f32.xlu0 %v2111_v47 }
 0x22d   :  { %3025 = vmax.xlane.f32.xlu0 %v3024_v48  ;;  %v2205_v48 = vsub.f32 %v2203_v36, %v2204_v45 }
 0x2b6   :  { %v2113_v49 = vpop.xlane.xlu0 %2112 }
 0x2b7   :  { %v2114_v50 = vsub.f32 %v2107_v44, %v2113_v49 }
 0x2b9   :  { %v2115_v51 = vmul.f32 1.442695, %v2114_v50 }
 0x2ba   :  { %v3026_v52 = vpop.xlane.xlu0 %3025 }
 0x2bb   :  { %17413 = vpow2.f32 %v2115_v51  ;;  %v3027_v53 = vsub.f32 %v3020_v43, %v3026_v52  ;;  %v2206_v51 = vand.u32 4294901760, %v2205_v48 }
 0x2bd   :  { %v3028_v55 = vmul.f32 1.442695, %v3027_v53 }
 0x2bf   :  { %17415 = vpow2.f32 %v3028_v55 }
 0x2c5   :  { %v17706_v56 = vpop.eup %17413 }
 0x2c6   :  { %v2117_v57 = vsel %vm1658_vm2, %v17706_v56, 0.0 }
 0x2c7   :  { %2118 = vadd.xlane.f32.xlu1 %v2117_v57  ;;  %v3039_v57 = vand.u32 4294901760, %v17695_v37 }
 0x2c9   :  { %v17710_v58 = vpop.eup %17415  ;;  %v3116_v60 = vsub.f32 %v17695_v37, %v3039_v57 }
 0x2ca   :  { %v3030_v59 = vsel %vm1658_vm2, %v17710_v58, 0.0 }
 0x2cb   :  { %3031 = vadd.xlane.f32.xlu1 %v3030_v59  ;;  %v3117_v61 = vand.u32 4294901760, %v3116_v60 }
 0x2cd   :  { %v3118_v63 = vsub.f32 %v3116_v60, %v3117_v61 }
 0x2cf   :  { %v3119_v0 = vand.u32 4294901760, %v3118_v63 }
 0x354   :  { %v2119_v34 = vpop.xlane.xlu1 %2118 }
 0x355   :  { %17417 = vrcp.f32 %v2119_v34 }
 0x358   :  { %v3032_v39 = vpop.xlane.xlu1 %3031 }
 0x359   :  { %17419 = vrcp.f32 %v3032_v39  ;;  %v14426_v39 = vld [vmem:[%s18434_s3 + $0x38] sm:$0xff] }
 0x35f   :  { %v17418_v35 = vpop.eup %17417 }
 0x360   :  { %v2121_v38 = vmul.f32 %v17418_v35, %v17706_v56  ;;  %v16680_v35 = vpack.c.bf16 %v4156_v16, %v4149_v15 }
 0x362   :  { %v2123_v43 = vsel %vm1658_vm2, %v2121_v38, 0  ;;  %v16696_v38 = vpack.c.bf16 %v4157_v22, %v4150_v19 }
 0x363   :  { %v2191_v44 = vand.u32 4294901760, %v2123_v43  ;;  %v17420_v52 = vpop.eup %17419 }
 0x364   :  { %v3034_v53 = vmul.f32 %v17420_v52, %v17710_v58 }
 0x365   :  { %v2192_v46 = vsub.f32 %v2123_v43, %v2191_v44  ;;  %v14423_v43 = vld [vmem:[%s18434_s3 + $0x20] sm:$0xff] }
 0x366   :  { %v3036_v55 = vsel %vm1658_vm2, %v3034_v53, 0 }
 0x367   :  { %v2193_v47 = vand.u32 4294901760, %v2192_v46  ;;  %v3104_v56 = vand.u32 4294901760, %v3036_v55 }
 0x369   :  { %v2194_v49 = vsub.f32 %v2192_v46, %v2193_v47  ;;  %v3105_v59 = vsub.f32 %v3036_v55, %v3104_v56  ;;  %v4590_v55 = vand.u32 4294901760, %v14426_v39 }
 0x36b   :  { %v2195_v50 = vand.u32 4294901760, %v2194_v49  ;;  %v3106_v58 = vand.u32 4294901760, %v3105_v59 }
 0x36d   :  { %15361 = vmatmul.mubr.f32.vlgmr.msra.gmra.mrb[6].mxu1 %v2195_v50  ;;  %v3107_v62 = vsub.f32 %v3105_v59, %v3106_v58  ;;  %v17817_v50 = vpop.f32.mrb[6].mxu0 }
 0x36e   :  { %15364 = vmatpush3.msra.mxu1 %v2206_v51  ;;  %15365 = vmatprep.mubr.msk.f32.mxu1 %vm17446_vm1, %v17445_v54  ;;  %v14425_v51 = vld [vmem:[%s18434_s3 + $0x30] sm:$0xff]  ;;  %v17825_v52 = vpop.f32.mrb[7].mxu0 }
 0x36f   :  { %15368 = vmatprep.subr.mxu1 %v17445_v54  ;;  %v3108_v37 = vand.u32 4294901760, %v3107_v62  ;;  %v4587_v53 = vand.u32 4294901760, %v14425_v51  ;;  %v4692_v62 = vsub.f32 %v14426_v39, %v4590_v55 }
 0x375   :  { %15366 = vmatmul.mubr.f32.vlgmr.msra.gmra.mrb[6].mxu1 %v2191_v44 }
 0x376   :  { %15369 = vmatpush3.msra.mxu1 %v2203_v36  ;;  %15370 = vmatprep.mubr.msk.f32.mxu1 %vm17446_vm1, %v17445_v54 }
 0x377   :  { %15373 = vmatprep.subr.mxu1 %v17445_v54 }
 0x37d   :  { %15371 = vmatmul.mubr.f32.vlgmr.msra.gmra.mrb[6].mxu1 %v2192_v46 }
 0x37e   :  { %15374 = vmatpush3.msra.mxu1 %v17700_v40  ;;  %15375 = vmatprep.mubr.msk.f32.mxu1 %vm17446_vm1, %v17445_v54 }
 0x37f   :  { %15378 = vmatprep.subr.mxu1 %v17445_v54 }
 0x385   :  { %15376 = vmatmul.mubr.f32.vlgmr.msra.gmra.mrb[6].mxu1 %v2193_v47 }
 0x386   :  { %15379 = vmatpush3.msra.mxu1 %v2204_v45  ;;  %15380 = vmatprep.mubr.msk.f32.mxu1 %vm17446_vm1, %v17445_v54  ;;  %v4581_v45 = vand.u32 4294901760, %v14423_v43 }
 0x387   :  { %15383 = vmatprep.subr.mxu1 %v17445_v54 }
 0x388   :  { %v4671_v48 = vsub.f32 %v14423_v43, %v4581_v45 }
 0x38d   :  { %15381 = vmatmul.mubr.f32.vlgmr.msra.gmra.mrb[6].mxu1 %v2191_v44 }
 0x38e   :  { %15384 = vmatpush3.msra.mxu1 %v17700_v40  ;;  %15385 = vmatprep.mubr.msk.f32.mxu1 %vm17446_vm1, %v17445_v54  ;;  %v14419_v40 = vld [vmem:[%s18433_s2 + $0x20] sm:$0xff] }
 0x38f   :  { %15418 = vmatprep.subr.mxu1 %v17445_v54  ;;  %v4045_v2 = vand.u32 4294901760, %v14419_v40 }
 0x391   :  { %v4135_v8 = vsub.f32 %v14419_v40, %v4045_v2  ;;  %v16660_v10 = vpack.c.bf16 %v4048_v3, %v4045_v2  ;;  %v4693_v40 = vand.u32 4294901760, %v4692_v62 }
 0x393   :  { %v4136_v11 = vand.u32 4294901760, %v4135_v8  ;;  %v16676_v34 = vpack.c.bf16 %v4142_v9, %v4135_v8  ;;  %v4694_v3 = vsub.f32 %v4692_v62, %v4693_v40 }
 0x395   :  { %15386 = vmatmul.mubr.f32.vlgmr.msra.gmra.mrb[6].mxu1 %v2191_v44  ;;  %v4137_v17 = vsub.f32 %v4135_v8, %v4136_v11  ;;  %v16692_v36 = vpack.c.bf16 %v4143_v12, %v4136_v11  ;;  %v14424_v44 = vld [vmem:[%s18434_s3 + $0x28] sm:$0xff]  ;;  %v4695_v5 = vand.u32 4294901760, %v4694_v3 }
 0x396   :  { %15419 = vmatpush3.msra.mxu1 %v3039_v57  ;;  %15420 = vmatprep.mubr.msk.f32.mxu1 %vm17446_vm1, %v17445_v54  ;;  %v4584_v46 = vand.u32 4294901760, %v14424_v44 }
 0x397   :  { %15423 = vmatprep.subr.mxu1 %v17445_v54  ;;  %v4138_v24 = vand.u32 4294901760, %v4137_v17  ;;  %v14428_v17 = vld [vmem:[%s18435_s4 + $0x1] ss:$0 sm:$0xff] }
 0x398   :  { %v17809_v47 = vpack.c.bf16 %v4584_v46, %v4581_v45  ;;  %v4678_v49 = vsub.f32 %v14424_v44, %v4584_v46  ;;  %v17100_v18 = vadd.f32 %v17817_v50, %v14428_v17  ;;  %v17101_v19 = vadd.f32 %v14428_v17, %v17825_v52  ;;  %v14434_v17 = vld [vmem:[%s18431_s1 + $0x48] sm:$0xff] }
 0x399   :  { %15421 = vmatmul.mubr.f32.vlgmr.msra.gmra.mrb[8].mxu1 %v3108_v37  ;;  %v16668_v30 = vpack.c.bf16 %v4145_v25, %v4138_v24 }
 0x39a   :  { %15424 = vmatpush3.msra.mxu1 %v3119_v0  ;;  %15425 = vmatprep.mubr.msk.f32.mxu1 %vm17446_vm1, %v17445_v54  ;;  %v16724_v7 = vpack.c.bf16 %v4678_v49, %v4671_v48  ;;  %v6027_v22 = vsel %vm1658_vm2, %v17100_v18, 0 }
 0x39b   :  { %15428 = vmatprep.subr.mxu1 %v17445_v54  ;;  %16709 = vmatprep.subr.bf16.mxu0 %v17809_v47  ;;  %v17854_v24 = vand.u32 4294901760, %v6027_v22 }
 0x39c   :  { %16711 = vmatpush3.bf16.msra.mxu0 %v17809_v47 }
 0x39d   :  { %v6099_v28 = vsub.f32 %v6027_v22, %v17854_v24 }
 0x39f   :  { %v6100_v31 = vand.u32 4294901760, %v6099_v28 }
 0x3a1   :  { %15426 = vmatmul.mubr.f32.vlgmr.msra.gmra.mrb[8].mxu1 %v3104_v56  ;;  %v6101_v43 = vsub.f32 %v6099_v28, %v6100_v31 }
 0x3a2   :  { %15429 = vmatpush3.msra.mxu1 %v3116_v60  ;;  %15430 = vmatprep.mubr.msk.f32.mxu1 %vm17446_vm1, %v17445_v54 }
 0x3a3   :  { %15433 = vmatprep.subr.mxu1 %v17445_v54  ;;  %v6102_v50 = vand.u32 4294901760, %v6101_v43 }
 0x3a9   :  { %15431 = vmatmul.mubr.f32.vlgmr.msra.gmra.mrb[8].mxu1 %v3105_v59  ;;  %v16712_v59 = vpack.c.bf16 %v4590_v55, %v4587_v53 }
 0x3aa   :  { %15434 = vmatpush3.msra.mxu1 %v3039_v57  ;;  %15435 = vmatprep.mubr.msk.f32.mxu1 %vm17446_vm1, %v17445_v54 }
 0x3ab   :  { %15438 = vmatprep.subr.mxu1 %v17445_v54  ;;  %16713 = vmatprep.subr.bf16.mxu0 %v16712_v59 }
 0x3ac   :  { %16715 = vmatpush3.bf16.msra.mxu0 %v16712_v59 }
 0x3af   :  { %15589 = vmatmul.mubr.f32.vlgmr.msra.gmra.mrb[8].mxu0 %v17561_v42 }
 0x3b0   :  { %15599 = vmatprep.mubr.f32.mxu0 %v17522_v13 }
 0x3b1   :  { %15436 = vmatmul.mubr.f32.vlgmr.msra.gmra.mrb[8].mxu1 %v3106_v58  ;;  %v4685_v58 = vsub.f32 %v14425_v51, %v4587_v53 }
 0x3b2   :  { %15439 = vmatpush3.msra.mxu1 %v3117_v61  ;;  %15440 = vmatprep.mubr.msk.f32.mxu1 %vm17446_vm1, %v17445_v54 }
 0x3b3   :  { %15443 = vmatprep.subr.mxu1 %v17445_v54  ;;  %v4686_v37 = vand.u32 4294901760, %v4685_v58  ;;  %v16728_v8 = vpack.c.bf16 %v4692_v62, %v4685_v58 }
 0x3b5   :  { %v4687_v1 = vsub.f32 %v4685_v58, %v4686_v37 }
 0x3b7   :  { %v4688_v4 = vand.u32 4294901760, %v4687_v1 }
 0x3b9   :  { %15441 = vmatmul.mubr.f32.vlgmr.msra.gmra.mrb[8].mxu1 %v3104_v56  ;;  %v16720_v6 = vpack.c.bf16 %v4695_v5, %v4688_v4 }
 0x3ba   :  { %15444 = vmatpush3.msra.mxu1 %v3039_v57  ;;  %15445 = vmatprep.mubr.msk.f32.mxu1 %vm17446_vm1, %v17445_v54  ;;  %v4679_v57 = vand.u32 4294901760, %v4678_v49 }
 0x3bb   :  { %16661 = vmatprep.subr.bf16.mxu1 %v16660_v10 }
 0x3bc   :  { %v4680_v61 = vsub.f32 %v4678_v49, %v4679_v57 }
 0x3be   :  { %v4681_v0 = vand.u32 4294901760, %v4680_v61 }
 0x3c1   :  { %15446 = vmatmul.mubr.f32.vlgmr.msra.gmra.mrb[8].mxu1 %v3104_v56  ;;  %v4672_v56 = vand.u32 4294901760, %v4671_v48 }
 0x3c2   :  { %16663 = vmatpush3.bf16.msra.mxu1 %v16660_v10  ;;  %15522 = vmatprep.mubr.f32.mxu1 %v17559_v41 }
 0x3c3   :  { %16665 = vmatprep.subr.bf16.mxu1 %v16664_v23  ;;  %v4673_v60 = vsub.f32 %v4671_v48, %v4672_v56  ;;  %v16740_v9 = vpack.c.bf16 %v4679_v57, %v4672_v56 }
 0x3c5   :  { %v4674_v63 = vand.u32 4294901760, %v4673_v60 }
 0x3c6   :  { %16667 = vmatpush3.bf16.msra.mxu1 %v16664_v23 }
 0x3c7   :  { %16669 = vmatprep.subr.bf16.mxu1 %v16668_v30  ;;  %v16716_v2 = vpack.c.bf16 %v4681_v0, %v4674_v63 }
 0x3c9   :  { %15523 = vmatmul.mubr.f32.vlgmr.msra.gmra.mrb[10].mxu1 %v17561_v42  ;;  %16717 = vmatprep.subr.bf16.mxu0 %v16716_v2 }
 0x3ca   :  { %16671 = vmatpush3.bf16.msra.mxu1 %v16668_v30  ;;  %15533 = vmatprep.mubr.f32.mxu1 %v17522_v13  ;;  %v14430_v30 = vld [vmem:[%s18436_s5 + $0x1] ss:$0 sm:$0xff] }
 0x3cb   :  { %16673 = vmatprep.subr.bf16.mxu1 %v16672_v33  ;;  %16719 = vmatpush3.bf16.msra.mxu0 %v16716_v2 }
 0x3cc   :  { %16721 = vmatprep.subr.bf16.mxu0 %v16720_v6 }
 0x3ce   :  { %16675 = vmatpush3.bf16.msra.mxu1 %v16672_v33 }
 0x3cf   :  { %16677 = vmatprep.subr.bf16.mxu1 %v16676_v34  ;;  %16723 = vmatpush3.bf16.msra.mxu0 %v16720_v6 }
 0x3d0   :  { %16725 = vmatprep.subr.bf16.mxu0 %v16724_v7 }
 0x3d1   :  { %15534 = vmatmul.mubr.f32.vlgmr.msra.gmra.mrb[10].mxu1 %v17524_v14 }
 0x3d2   :  { %16679 = vmatpush3.bf16.msra.mxu1 %v16676_v34  ;;  %15544 = vmatprep.mubr.f32.mxu1 %v17531_v20 }
 0x3d3   :  { %16681 = vmatprep.subr.bf16.mxu1 %v16680_v35  ;;  %15600 = vmatmul.mubr.f32.vlgmr.msra.gmra.mrb[8].mxu0 %v17524_v14 }
 0x3d4   :  { %16727 = vmatpush3.bf16.msra.mxu0 %v16724_v7  ;;  %15610 = vmatprep.mubr.f32.mxu0 %v17531_v20 }
 0x3d5   :  { %16729 = vmatprep.subr.bf16.mxu0 %v16728_v8 }
 0x3d6   :  { %16683 = vmatpush3.bf16.msra.mxu1 %v16680_v35 }
 0x3d7   :  { %16685 = vmatprep.subr.bf16.mxu1 %v16660_v10 }
 0x3d8   :  { %16731 = vmatpush3.bf16.msra.mxu0 %v16728_v8 }
 0x3d9   :  { %15545 = vmatmul.mubr.f32.vlgmr.msra.gmra.mrb[10].mxu1 %v17534_v21  ;;  %16733 = vmatprep.subr.bf16.mxu0 %v17809_v47 }
 0x3da   :  { %16687 = vmatpush3.bf16.msra.mxu1 %v16660_v10  ;;  %15555 = vmatprep.mubr.f32.mxu1 %v17541_v26 }
 0x3db   :  { %16689 = vmatprep.subr.bf16.mxu1 %v16664_v23  ;;  %15611 = vmatmul.mubr.f32.vlgmr.msra.gmra.mrb[8].mxu0 %v17534_v21 }
 0x3dc   :  { %16735 = vmatpush3.bf16.msra.mxu0 %v17809_v47  ;;  %15621 = vmatprep.mubr.f32.mxu0 %v17541_v26 }
 0x3dd   :  { %16737 = vmatprep.subr.bf16.mxu0 %v16712_v59 }
 0x3de   :  { %16691 = vmatpush3.bf16.msra.mxu1 %v16664_v23 }
 0x3df   :  { %16693 = vmatprep.subr.bf16.mxu1 %v16692_v36 }
 0x3e0   :  { %16739 = vmatpush3.bf16.msra.mxu0 %v16712_v59 }
 0x3e1   :  { %15556 = vmatmul.mubr.f32.vlgmr.msra.gmra.mrb[10].mxu1 %v17544_v27  ;;  %16741 = vmatprep.subr.bf16.mxu0 %v16740_v9 }
 0x3e2   :  { %16695 = vmatpush3.bf16.msra.mxu1 %v16692_v36  ;;  %15566 = vmatprep.mubr.f32.mxu1 %v17522_v13 }
 0x3e3   :  { %16697 = vmatprep.subr.bf16.mxu1 %v16696_v38  ;;  %15622 = vmatmul.mubr.f32.vlgmr.msra.gmra.mrb[8].mxu0 %v17544_v27 }
 0x3e4   :  { %16743 = vmatpush3.bf16.msra.mxu0 %v16740_v9  ;;  %15632 = vmatprep.mubr.f32.mxu0 %v17522_v13 }
 0x3e6   :  { %16699 = vmatpush3.bf16.msra.mxu1 %v16696_v38 }
 0x3e7   :  { %16701 = vmatprep.subr.bf16.mxu1 %v16660_v10 }
 0x3e9   :  { %15567 = vmatmul.mubr.f32.vlgmr.msra.gmra.mrb[10].mxu1 %v17524_v14 }
 0x3ea   :  { %16703 = vmatpush3.bf16.msra.mxu1 %v16660_v10  ;;  %15577 = vmatprep.mubr.f32.mxu1 %v17522_v13  ;;  %v16744_v10 = vpack.c.bf16 %v4693_v40, %v4686_v37 }
 0x3eb   :  { %16705 = vmatprep.subr.bf16.mxu1 %v16664_v23 }
 0x3ec   :  { %16745 = vmatprep.subr.bf16.mxu0 %v16744_v10 }
 0x3ed   :  { %16747 = vmatpush3.bf16.msra.mxu0 %v16744_v10 }
 0x3ee   :  { %16707 = vmatpush3.bf16.msra.mxu1 %v16664_v23  ;;  %16749 = vmatprep.subr.bf16.mxu0 %v17809_v47  ;;  %v5109_v23 = vsel %vm1658_vm2, %v17101_v19, 0  ;;  %v6970_v19 = vand.u32 4294901760, %v14434_v17 }
 0x3ef   :  { %15646 = vmatprep.subr.mxu1 %v17445_v54  ;;  %v17856_v25 = vand.u32 4294901760, %v5109_v23 }
 0x3f0   :  { %15633 = vmatmul.mubr.f32.vlgmr.msra.gmra.mrb[8].mxu0 %v17524_v14 }
 0x3f1   :  { %15578 = vmatmul.mubr.f32.vlgmr.msra.gmra.mrb[10].mxu1 %v17524_v14  ;;  %16751 = vmatpush3.bf16.msra.mxu0 %v17809_v47  ;;  %v5181_v29 = vsub.f32 %v5109_v23, %v17856_v25 }
 0x3f2   :  { %15648 = vmatprep.mubr.msk.f32.mxu1 %vm17446_vm1, %v17445_v54  ;;  %15643 = vmatprep.mubr.f32.mxu0 %v17522_v13 }
 0x3f3   :  { %16753 = vmatprep.subr.bf16.mxu0 %v16712_v59  ;;  %v5182_v32 = vand.u32 4294901760, %v5181_v29 }
 0x3f5   :  { %16755 = vmatpush3.bf16.msra.mxu0 %v16712_v59  ;;  %v5183_v46 = vsub.f32 %v5181_v29, %v5182_v32  ;;  %v14432_v59 = vld [vmem:[%s18437_s6 + $0x1] ss:$0 sm:$0xff] }
 0x3f6   :  { %15706 = vmatprep.subr.mxu0 %v17445_v54 }
 0x3f7   :  { %v5184_v39 = vand.u32 4294901760, %v5183_v46 }
 0x3f8   :  { %15644 = vmatmul.mubr.f32.vlgmr.msra.gmra.mrb[8].mxu0 %v17524_v14 }
 0x3f9   :  { %15708 = vmatprep.mubr.msk.f32.mxu0 %vm17446_vm1, %v17445_v54 }
 0x468   :  { %v2567_v11 = vpop.f32.mrb[6].mxu1 }
 0x469   :  { %2571 = vst.msk [vmem:[#allocation2] sm:$0xff] %vm1658_vm2, %v2567_v11  ;;  %v15387_v12 = vpop.f32.mrb[7].mxu1 }
 0x494   :  { %v3480_v15 = vpop.f32.mrb[8].mxu1 }
 0x495   :  { %3484 = vst.msk [vmem:[#allocation2 + $0x8] sm:$0xff] %vm1658_vm2, %v3480_v15  ;;  %v15447_v16 = vpop.f32.mrb[9].mxu1 }
 0x496   :  { %v14433_v16 = vld [vmem:[%s18431_s1 + $0x40] sm:$0xff] }
 0x497   :  { %v6967_v18 = vand.u32 4294901760, %v14433_v16 }
 0x499   :  { %v16756_v22 = vpack.c.bf16 %v6970_v19, %v6967_v18  ;;  %v7057_v23 = vsub.f32 %v14433_v16, %v6967_v18 }
 0x4c4   :  { %v15579_v33 = vpop.f32.mrb[10].mxu1 }
 0x4c5   :  { %v17102_v34 = vadd.f32 %v15579_v33, %v14430_v30  ;;  %v4562_v35 = vpop.f32.mrb[11].mxu1 }
 0x4c6   :  { %v17103_v36 = vadd.f32 %v14430_v30, %v4562_v35 }
 0x4c7   :  { %v6030_v38 = vsel %vm1658_vm2, %v17102_v34, 0 }
 0x4c8   :  { %v6033_v44 = vand.u32 4294901760, %v6030_v38  ;;  %v5112_v45 = vsel %vm1658_vm2, %v17103_v36, 0 }
 0x4c9   :  { %v5115_v47 = vand.u32 4294901760, %v5112_v45 }
 0x4ca   :  { %v6110_v48 = vsub.f32 %v6030_v38, %v6033_v44  ;;  %15707 = vmatpush3.xpose.msra.mxu0 %v6033_v44 }
 0x4cb   :  { %v5192_v49 = vsub.f32 %v5112_v45, %v5115_v47  ;;  %15647 = vmatpush3.xpose.msra.mxu1 %v5115_v47  ;;  %15711 = vmatprep.subr.mxu0 %v17445_v54  ;;  %v15645_v60 = vpop.f32.mrb[8].mxu0 }
 0x4cc   :  { %v6111_v51 = vand.u32 4294901760, %v6110_v48  ;;  %15651 = vmatprep.subr.mxu1 %v17445_v54  ;;  %v17908_v58 = vadd.f32 %v15645_v60, %v14432_v59  ;;  %v5098_v61 = vpop.f32.mrb[9].mxu0 }
 0x4cd   :  { %v5193_v52 = vand.u32 4294901760, %v5192_v49  ;;  %15709 = vmatmul.mubr.f32.vlgmr.msra.gmra.mrb[10].mxu0 %v6102_v50  ;;  %v17910_v62 = vadd.f32 %v14432_v59, %v5098_v61 }
 0x4ce   :  { %15649 = vmatmul.mubr.f32.vlgmr.msra.gmra.mrb[12].mxu1 %v5184_v39  ;;  %v6112_v53 = vsub.f32 %v6110_v48, %v6111_v51  ;;  %15713 = vmatprep.mubr.msk.f32.mxu0 %vm17446_vm1, %v17445_v54 }
 0x4cf   :  { %v5194_v55 = vsub.f32 %v5192_v49, %v5193_v52  ;;  %15653 = vmatprep.mubr.msk.f32.mxu1 %vm17446_vm1, %v17445_v54  ;;  %v17913_v63 = vand.u32 4294901760, %v17910_v62 }
 0x4d0   :  { %v6113_v56 = vand.u32 4294901760, %v6112_v53 }
 0x4d1   :  { %v5195_v57 = vand.u32 4294901760, %v5194_v55  ;;  %v5652_v60 = vsub.f32 %v17910_v62, %v17913_v63 }
 0x4d2   :  { %15712 = vmatpush3.xpose.msra.mxu0 %v6113_v56 }
 0x4d3   :  { %15652 = vmatpush3.xpose.msra.mxu1 %v5195_v57  ;;  %15716 = vmatprep.subr.mxu0 %v17445_v54 }
 0x4d4   :  { %15656 = vmatprep.subr.mxu1 %v17445_v54 }
 0x4d5   :  { %15714 = vmatmul.mubr.f32.vlgmr.msra.gmra.mrb[10].mxu0 %v17854_v24 }
 0x4d6   :  { %15654 = vmatmul.mubr.f32.vlgmr.msra.gmra.mrb[12].mxu1 %v17856_v25  ;;  %15717 = vmatpush3.xpose.msra.mxu0 %v6110_v48 }
 0x4d7   :  { %15657 = vmatpush3.xpose.msra.mxu1 %v5192_v49  ;;  %15718 = vmatprep.mubr.msk.f32.mxu0 %vm17446_vm1, %v17445_v54 }
 0x4d8   :  { %15721 = vmatprep.subr.mxu0 %v17445_v54  ;;  %15658 = vmatprep.mubr.msk.f32.mxu1 %vm17446_vm1, %v17445_v54 }
 0x4d9   :  { %15661 = vmatprep.subr.mxu1 %v17445_v54 }
 0x4dd   :  { %15719 = vmatmul.mubr.f32.vlgmr.msra.gmra.mrb[10].mxu0 %v6099_v28  ;;  %v14436_v28 = vld [vmem:[%s18431_s1 + $0x58] sm:$0xff] }
 0x4de   :  { %15722 = vmatpush3.xpose.msra.mxu0 %v6033_v44  ;;  %15659 = vmatmul.mubr.f32.vlgmr.msra.gmra.mrb[12].mxu1 %v5181_v29  ;;  %v6976_v30 = vand.u32 4294901760, %v14436_v28 }
 0x4df   :  { %15662 = vmatpush3.xpose.msra.mxu1 %v5115_v47  ;;  %15723 = vmatprep.mubr.msk.f32.mxu0 %vm17446_vm1, %v17445_v54 }
 0x4e0   :  { %15726 = vmatprep.subr.mxu0 %v17445_v54  ;;  %15663 = vmatprep.mubr.msk.f32.mxu1 %vm17446_vm1, %v17445_v54  ;;  %v7078_v38 = vsub.f32 %v14436_v28, %v6976_v30  ;;  %v14439_v28 = vld [vmem:[%s18433_s2 + $0x50] sm:$0xff] }
 0x4e1   :  { %15666 = vmatprep.subr.mxu1 %v17445_v54 }
 0x4e2   :  { %v7079_v46 = vand.u32 4294901760, %v7078_v38 }
 0x4e4   :  { %v7080_v49 = vsub.f32 %v7078_v38, %v7079_v46 }
 0x4e5   :  { %15724 = vmatmul.mubr.f32.vlgmr.msra.gmra.mrb[10].mxu0 %v6100_v31  ;;  %v7058_v31 = vand.u32 4294901760, %v7057_v23 }
 0x4e6   :  { %15727 = vmatpush3.xpose.msra.mxu0 %v6111_v51  ;;  %15664 = vmatmul.mubr.f32.vlgmr.msra.gmra.mrb[12].mxu1 %v5182_v32  ;;  %v7081_v51 = vand.u32 4294901760, %v7080_v49 }
 0x4e7   :  { %15667 = vmatpush3.xpose.msra.mxu1 %v5193_v52  ;;  %15728 = vmatprep.mubr.msk.f32.mxu0 %vm17446_vm1, %v17445_v54  ;;  %v7059_v34 = vsub.f32 %v7057_v23, %v7058_v31 }
 0x4e8   :  { %15731 = vmatprep.subr.mxu0 %v17445_v54  ;;  %15668 = vmatprep.mubr.msk.f32.mxu1 %vm17446_vm1, %v17445_v54 }
 0x4e9   :  { %15671 = vmatprep.subr.mxu1 %v17445_v54  ;;  %v7060_v43 = vand.u32 4294901760, %v7059_v34 }
 0x4ed   :  { %15729 = vmatmul.mubr.f32.vlgmr.msra.gmra.mrb[10].mxu0 %v17854_v24 }
 0x4ee   :  { %15732 = vmatpush3.xpose.msra.mxu0 %v6033_v44  ;;  %15669 = vmatmul.mubr.f32.vlgmr.msra.gmra.mrb[12].mxu1 %v17856_v25 }
 0x4ef   :  { %15672 = vmatpush3.xpose.msra.mxu1 %v5115_v47  ;;  %15733 = vmatprep.mubr.msk.f32.mxu0 %vm17446_vm1, %v17445_v54 }
 0x4f0   :  { %15673 = vmatprep.mubr.msk.f32.mxu1 %vm17446_vm1, %v17445_v54  ;;  %15676 = vmatprep.subr.mxu1 %v17445_v54 }
 0x4f1   :  { %16757 = vmatprep.subr.bf16.mxu0 %v16756_v22 }
 0x4f5   :  { %15734 = vmatmul.mubr.f32.vlgmr.msra.gmra.mrb[10].mxu0 %v17854_v24  ;;  %v7064_v24 = vsub.f32 %v14434_v17, %v6970_v19 }
 0x4f6   :  { %15674 = vmatmul.mubr.f32.vlgmr.msra.gmra.mrb[12].mxu1 %v17856_v25  ;;  %15774 = vmatprep.mubr.f32.mxu0 %v17559_v41  ;;  %v14435_v25 = vld [vmem:[%s18431_s1 + $0x50] sm:$0xff] }
 0x4f7   :  { %15678 = vmatprep.mubr.msk.f32.mxu1 %vm17446_vm1, %v17445_v54  ;;  %15677 = vmatpush3.msra.mxu1 %v17913_v63  ;;  %v6973_v29 = vand.u32 4294901760, %v14435_v25  ;;  %v7065_v32 = vand.u32 4294901760, %v7064_v24  ;;  %v16772_v52 = vpack.c.bf16 %v7064_v24, %v7057_v23  ;;  %v14438_v23 = vld [vmem:[%s18433_s2 + $0x48] sm:$0xff] }
 0x4f8   :  { %15681 = vmatprep.subr.mxu1 %v17445_v54  ;;  %16759 = vmatpush3.bf16.msra.mxu0 %v16756_v22 }
 0x4f9   :  { %v16760_v33 = vpack.c.bf16 %v6976_v30, %v6973_v29  ;;  %v7066_v35 = vsub.f32 %v7064_v24, %v7065_v32  ;;  %v7071_v36 = vsub.f32 %v14435_v25, %v6973_v29  ;;  %v16788_v55 = vpack.c.bf16 %v7065_v32, %v7058_v31  ;;  %v14440_v29 = vld [vmem:[%s18433_s2 + $0x58] sm:$0xff] }
 0x4fa   :  { %v7506_v25 = vand.u32 4294901760, %v14438_v23  ;;  %v7509_v30 = vand.u32 4294901760, %v14439_v28  ;;  %v7512_v31 = vand.u32 4294901760, %v14440_v29 }
 0x4fb   :  { %16761 = vmatprep.subr.bf16.mxu0 %v16760_v33  ;;  %v7067_v44 = vand.u32 4294901760, %v7066_v35  ;;  %v7072_v45 = vand.u32 4294901760, %v7071_v36  ;;  %v16776_v53 = vpack.c.bf16 %v7078_v38, %v7071_v36 }
 0x4fc   :  { %16763 = vmatpush3.bf16.msra.mxu0 %v16760_v33  ;;  %v7607_v38 = vsub.f32 %v14439_v28, %v7509_v30 }
 0x4fd   :  { %v16764_v47 = vpack.c.bf16 %v7067_v44, %v7060_v43  ;;  %v7073_v48 = vsub.f32 %v7071_v36, %v7072_v45  ;;  %v16792_v56 = vpack.c.bf16 %v7079_v46, %v7072_v45  ;;  %v7614_v43 = vsub.f32 %v14440_v29, %v7512_v31 }
 0x4fe   :  { %v7608_v46 = vand.u32 4294901760, %v7607_v38 }
 0x4ff   :  { %15775 = vmatmul.mubr.f32.vlgmr.msra.gmra.mrb[12].mxu0 %v17561_v42  ;;  %16765 = vmatprep.subr.bf16.mxu0 %v16764_v47  ;;  %v7074_v50 = vand.u32 4294901760, %v7073_v48  ;;  %v16808_v48 = vpack.c.bf16 %v7512_v31, %v7509_v30 }
 0x500   :  { %16767 = vmatpush3.bf16.msra.mxu0 %v16764_v47  ;;  %15785 = vmatprep.mubr.f32.mxu0 %v17522_v13  ;;  %v7615_v47 = vand.u32 4294901760, %v7614_v43 }
 0x501   :  { %v16768_v39 = vpack.c.bf16 %v7081_v51, %v7074_v50  ;;  %v7609_v51 = vsub.f32 %v7607_v38, %v7608_v46 }
 0x503   :  { %16769 = vmatprep.subr.bf16.mxu0 %v16768_v39 }
 0x504   :  { %16771 = vmatpush3.bf16.msra.mxu0 %v16768_v39  ;;  %v7616_v39 = vsub.f32 %v7614_v43, %v7615_v47 }
 0x505   :  { %16773 = vmatprep.subr.bf16.mxu0 %v16772_v52 }
 0x507   :  { %15786 = vmatmul.mubr.f32.vlgmr.msra.gmra.mrb[12].mxu0 %v17524_v14 }
 0x508   :  { %16775 = vmatpush3.bf16.msra.mxu0 %v16772_v52  ;;  %15796 = vmatprep.mubr.f32.mxu0 %v17531_v20 }
 0x509   :  { %16777 = vmatprep.subr.bf16.mxu0 %v16776_v53 }
 0x50c   :  { %16779 = vmatpush3.bf16.msra.mxu0 %v16776_v53  ;;  %v7610_v53 = vand.u32 4294901760, %v7609_v51 }
 0x50d   :  { %16781 = vmatprep.subr.bf16.mxu0 %v16756_v22 }
 0x50f   :  { %15797 = vmatmul.mubr.f32.vlgmr.msra.gmra.mrb[12].mxu0 %v17534_v21 }
 0x510   :  { %16783 = vmatpush3.bf16.msra.mxu0 %v16756_v22  ;;  %15807 = vmatprep.mubr.f32.mxu0 %v17541_v26 }
 0x511   :  { %16785 = vmatprep.subr.bf16.mxu0 %v16760_v33 }
 0x514   :  { %16787 = vmatpush3.bf16.msra.mxu0 %v16760_v33 }
 0x515   :  { %16789 = vmatprep.subr.bf16.mxu0 %v16788_v55 }
 0x517   :  { %15808 = vmatmul.mubr.f32.vlgmr.msra.gmra.mrb[12].mxu0 %v17544_v27 }
 0x518   :  { %16791 = vmatpush3.bf16.msra.mxu0 %v16788_v55  ;;  %15818 = vmatprep.mubr.f32.mxu0 %v17522_v13  ;;  %v7617_v55 = vand.u32 4294901760, %v7616_v39 }
 0x519   :  { %16793 = vmatprep.subr.bf16.mxu0 %v16792_v56 }
 0x51c   :  { %16795 = vmatpush3.bf16.msra.mxu0 %v16792_v56  ;;  %v16816_v56 = vpack.c.bf16 %v7617_v55, %v7610_v53 }
 0x51d   :  { %16797 = vmatprep.subr.bf16.mxu0 %v16756_v22 }
 0x51f   :  { %15819 = vmatmul.mubr.f32.vlgmr.msra.gmra.mrb[12].mxu0 %v17524_v14 }
 0x520   :  { %16799 = vmatpush3.bf16.msra.mxu0 %v16756_v22  ;;  %15829 = vmatprep.mubr.f32.mxu0 %v17522_v13 }
 0x521   :  { %16801 = vmatprep.subr.bf16.mxu0 %v16760_v33 }
 0x524   :  { %16803 = vmatpush3.bf16.msra.mxu0 %v16760_v33  ;;  %v7600_v33 = vsub.f32 %v14438_v23, %v7506_v25 }
 0x526   :  { %v7601_v36 = vand.u32 4294901760, %v7600_v33 }
 0x527   :  { %15830 = vmatmul.mubr.f32.vlgmr.msra.gmra.mrb[12].mxu0 %v17524_v14 }
 0x528   :  { %15906 = vmatprep.mubr.f32.mxu0 %v17559_v41  ;;  %v7602_v45 = vsub.f32 %v7600_v33, %v7601_v36 }
 0x52a   :  { %v7603_v50 = vand.u32 4294901760, %v7602_v45 }
 0x5c8   :  { %v6474_v37 = vpop.f32.mrb[10].mxu0 }
 0x5c9   :  { %v5556_v0 = vpop.f32.mrb[12].mxu1  ;;  %v15735_v40 = vpop.f32.mrb[11].mxu0  ;;  %v6478_v1 = vsel %vm1658_vm2, %v6474_v37, -inf }
 0x5ca   :  { %6479 = vmax.xlane.f32.xlu1 %v6478_v1  ;;  %v15675_v2 = vpop.f32.mrb[13].mxu1  ;;  %v5560_v3 = vsel %vm1658_vm2, %v5556_v0, -inf  ;;  %v5653_v40 = vand.u32 4294901760, %v5652_v60 }
 0x5cb   :  { %5561 = vmax.xlane.f32.xlu0 %v5560_v3 }
 0x5cc   :  { %v5654_v3 = vsub.f32 %v5652_v60, %v5653_v40 }
 0x657   :  { %v6480_v4 = vpop.xlane.xlu1 %6479 }
 0x658   :  { %v6481_v5 = vsub.f32 %v6474_v37, %v6480_v4  ;;  %v5562_v6 = vpop.xlane.xlu0 %5561 }
 0x659   :  { %v5563_v7 = vsub.f32 %v5556_v0, %v5562_v6  ;;  %v5655_v6 = vand.u32 4294901760, %v5654_v3 }
 0x65a   :  { %v6482_v8 = vmul.f32 1.442695, %v6481_v5 }
 0x65b   :  { %v5564_v9 = vmul.f32 1.442695, %v5563_v7 }
 0x65c   :  { %17421 = vpow2.f32 %v6482_v8 }
 0x65d   :  { %17423 = vpow2.f32 %v5564_v9 }
 0x666   :  { %v17919_v10 = vpop.eup %17421 }
 0x667   :  { %v17921_v11 = vpop.eup %17423  ;;  %v6484_v12 = vsel %vm1658_vm2, %v17919_v10, 0.0 }
 0x668   :  { %6485 = vadd.xlane.f32.xlu1 %v6484_v12  ;;  %v5566_v15 = vsel %vm1658_vm2, %v17921_v11, 0.0  ;;  %v6493_v12 = vand.u32 4294901760, %v17908_v58 }
 0x669   :  { %5567 = vadd.xlane.f32.xlu0 %v5566_v15 }
 0x66a   :  { %v6570_v16 = vsub.f32 %v17908_v58, %v6493_v12 }
 0x66c   :  { %v6571_v17 = vand.u32 4294901760, %v6570_v16 }
 0x66e   :  { %v6572_v19 = vsub.f32 %v6570_v16, %v6571_v17 }
 0x670   :  { %v6573_v22 = vand.u32 4294901760, %v6572_v19 }
 0x6f5   :  { %v6486_v62 = vpop.xlane.xlu1 %6485 }
 0x6f6   :  { %v5568_v57 = vpop.xlane.xlu0 %5567 }
 0x6f7   :  { %17425 = vrcp.f32 %v5568_v57 }
 0x6f8   :  { %17427 = vrcp.f32 %v6486_v62  ;;  %v14444_v62 = vld [vmem:[%s18434_s3 + $0x58] sm:$0xff] }
 0x701   :  { %v17426_v59 = vpop.eup %17425 }
 0x702   :  { %v5570_v61 = vmul.f32 %v17426_v59, %v17921_v11  ;;  %v17428_v7 = vpop.eup %17427  ;;  %v16824_v59 = vpack.c.bf16 %v7614_v43, %v7607_v38 }
 0x703   :  { %v6488_v8 = vmul.f32 %v17428_v7, %v17919_v10 }
 0x704   :  { %v5572_v37 = vsel %vm1658_vm2, %v5570_v61, 0  ;;  %v16840_v61 = vpack.c.bf16 %v7615_v47, %v7608_v46 }
 0x705   :  { %v5640_v0 = vand.u32 4294901760, %v5572_v37  ;;  %v6490_v9 = vsel %vm1658_vm2, %v6488_v8, 0 }
 0x706   :  { %v6558_v11 = vand.u32 4294901760, %v6490_v9 }
 0x707   :  { %v5641_v1 = vsub.f32 %v5572_v37, %v5640_v0  ;;  %v14441_v37 = vld [vmem:[%s18434_s3 + $0x40] sm:$0xff] }
 0x708   :  { %v6559_v15 = vsub.f32 %v6490_v9, %v6558_v11  ;;  %v8048_v9 = vand.u32 4294901760, %v14444_v62 }
 0x709   :  { %v5642_v2 = vand.u32 4294901760, %v5641_v1 }
 0x70a   :  { %v6560_v10 = vand.u32 4294901760, %v6559_v15 }
 0x70b   :  { %v5643_v4 = vsub.f32 %v5641_v1, %v5642_v2 }
 0x70c   :  { %v6561_v18 = vsub.f32 %v6559_v15, %v6560_v10 }
 0x70d   :  { %v5644_v5 = vand.u32 4294901760, %v5643_v4 }
 0x70e   :  { %v6562_v58 = vand.u32 4294901760, %v6561_v18  ;;  %v8150_v18 = vsub.f32 %v14444_v62, %v8048_v9 }
 0x70f   :  { %15679 = vmatmul.mubr.f32.vlgmr.msra.gmra.mrb[14].mxu1 %v5644_v5  ;;  %v18030_v5 = vpop.f32.mrb[12].mxu0 }
 0x710   :  { %15682 = vmatpush3.msra.mxu1 %v5655_v6  ;;  %15683 = vmatprep.mubr.msk.f32.mxu1 %vm17446_vm1, %v17445_v54  ;;  %v14443_v6 = vld [vmem:[%s18434_s3 + $0x50] sm:$0xff]  ;;  %v18038_v7 = vpop.f32.mrb[13].mxu0 }
 0x711   :  { %15686 = vmatprep.subr.mxu1 %v17445_v54  ;;  %v8045_v8 = vand.u32 4294901760, %v14443_v6 }
 0x717   :  { %15684 = vmatmul.mubr.f32.vlgmr.msra.gmra.mrb[14].mxu1 %v5640_v0 }
 0x718   :  { %15687 = vmatpush3.msra.mxu1 %v5652_v60  ;;  %15688 = vmatprep.mubr.msk.f32.mxu1 %vm17446_vm1, %v17445_v54 }
 0x719   :  { %15691 = vmatprep.subr.mxu1 %v17445_v54 }
 0x71f   :  { %15689 = vmatmul.mubr.f32.vlgmr.msra.gmra.mrb[14].mxu1 %v5641_v1 }
 0x720   :  { %15692 = vmatpush3.msra.mxu1 %v17913_v63  ;;  %15693 = vmatprep.mubr.msk.f32.mxu1 %vm17446_vm1, %v17445_v54 }
 0x721   :  { %15696 = vmatprep.subr.mxu1 %v17445_v54 }
 0x727   :  { %15694 = vmatmul.mubr.f32.vlgmr.msra.gmra.mrb[14].mxu1 %v5642_v2 }
 0x728   :  { %15697 = vmatpush3.msra.mxu1 %v5653_v40  ;;  %15698 = vmatprep.mubr.msk.f32.mxu1 %vm17446_vm1, %v17445_v54  ;;  %v8039_v40 = vand.u32 4294901760, %v14441_v37 }
 0x729   :  { %15701 = vmatprep.subr.mxu1 %v17445_v54 }
 0x72a   :  { %v8129_v3 = vsub.f32 %v14441_v37, %v8039_v40 }
 0x72f   :  { %15699 = vmatmul.mubr.f32.vlgmr.msra.gmra.mrb[14].mxu1 %v5640_v0 }
 0x730   :  { %15702 = vmatpush3.msra.mxu1 %v17913_v63  ;;  %15703 = vmatprep.mubr.msk.f32.mxu1 %vm17446_vm1, %v17445_v54  ;;  %v14437_v63 = vld [vmem:[%s18433_s2 + $0x40] sm:$0xff] }
 0x731   :  { %15736 = vmatprep.subr.mxu1 %v17445_v54  ;;  %v7503_v24 = vand.u32 4294901760, %v14437_v63 }
 0x733   :  { %v7593_v32 = vsub.f32 %v14437_v63, %v7503_v24  ;;  %v16804_v34 = vpack.c.bf16 %v7506_v25, %v7503_v24  ;;  %v8151_v63 = vand.u32 4294901760, %v8150_v18 }
 0x735   :  { %v7594_v35 = vand.u32 4294901760, %v7593_v32  ;;  %v16820_v57 = vpack.c.bf16 %v7600_v33, %v7593_v32  ;;  %v8152_v25 = vsub.f32 %v8150_v18, %v8151_v63 }
 0x737   :  { %15704 = vmatmul.mubr.f32.vlgmr.msra.gmra.mrb[14].mxu1 %v5640_v0  ;;  %v7595_v44 = vsub.f32 %v7593_v32, %v7594_v35  ;;  %v16836_v60 = vpack.c.bf16 %v7601_v36, %v7594_v35  ;;  %v14442_v0 = vld [vmem:[%s18434_s3 + $0x48] sm:$0xff]  ;;  %v8153_v29 = vand.u32 4294901760, %v8152_v25 }
 0x738   :  { %15737 = vmatpush3.msra.mxu1 %v6493_v12  ;;  %15738 = vmatprep.mubr.msk.f32.mxu1 %vm17446_vm1, %v17445_v54  ;;  %v8042_v1 = vand.u32 4294901760, %v14442_v0 }
 0x739   :  { %15741 = vmatprep.subr.mxu1 %v17445_v54  ;;  %v7596_v49 = vand.u32 4294901760, %v7595_v44  ;;  %v14446_v44 = vld [vmem:[%s18435_s4 + $0x2] ss:$0 sm:$0xff] }
 0x73a   :  { %v18022_v2 = vpack.c.bf16 %v8042_v1, %v8039_v40  ;;  %v8136_v4 = vsub.f32 %v14442_v0, %v8042_v1  ;;  %v17106_v45 = vadd.f32 %v18030_v5, %v14446_v44  ;;  %v17107_v46 = vadd.f32 %v14446_v44, %v18038_v7 }
 0x73b   :  { %15739 = vmatmul.mubr.f32.vlgmr.msra.gmra.mrb[16].mxu1 %v6562_v58  ;;  %v16812_v52 = vpack.c.bf16 %v7603_v50, %v7596_v49 }
 0x73c   :  { %15742 = vmatpush3.msra.mxu1 %v6573_v22  ;;  %15743 = vmatprep.mubr.msk.f32.mxu1 %vm17446_vm1, %v17445_v54  ;;  %v16868_v31 = vpack.c.bf16 %v8136_v4, %v8129_v3  ;;  %v9485_v47 = vsel %vm1658_vm2, %v17106_v45, 0  ;;  %v14451_v45 = vld [vmem:[%s18431_s1 + $0x60] sm:$0xff] }
 0x73d   :  { %15746 = vmatprep.subr.mxu1 %v17445_v54  ;;  %16853 = vmatprep.subr.bf16.mxu0 %v18022_v2  ;;  %v18069_v49 = vand.u32 4294901760, %v9485_v47 }
 0x73e   :  { %16855 = vmatpush3.bf16.msra.mxu0 %v18022_v2 }
 0x73f   :  { %v9557_v51 = vsub.f32 %v9485_v47, %v18069_v49  ;;  %v10425_v47 = vand.u32 4294901760, %v14451_v45 }
 0x741   :  { %v9558_v53 = vand.u32 4294901760, %v9557_v51 }
 0x743   :  { %15744 = vmatmul.mubr.f32.vlgmr.msra.gmra.mrb[16].mxu1 %v6558_v11  ;;  %v9559_v37 = vsub.f32 %v9557_v51, %v9558_v53 }
 0x744   :  { %15747 = vmatpush3.msra.mxu1 %v6570_v16  ;;  %15748 = vmatprep.mubr.msk.f32.mxu1 %vm17446_vm1, %v17445_v54 }
 0x745   :  { %15751 = vmatprep.subr.mxu1 %v17445_v54  ;;  %v9560_v5 = vand.u32 4294901760, %v9559_v37 }
 0x74b   :  { %15749 = vmatmul.mubr.f32.vlgmr.msra.gmra.mrb[16].mxu1 %v6559_v15  ;;  %v16856_v15 = vpack.c.bf16 %v8048_v9, %v8045_v8 }
 0x74c   :  { %15752 = vmatpush3.msra.mxu1 %v6493_v12  ;;  %15753 = vmatprep.mubr.msk.f32.mxu1 %vm17446_vm1, %v17445_v54 }
 0x74d   :  { %15756 = vmatprep.subr.mxu1 %v17445_v54  ;;  %16857 = vmatprep.subr.bf16.mxu0 %v16856_v15 }
 0x74e   :  { %16859 = vmatpush3.bf16.msra.mxu0 %v16856_v15 }
 0x751   :  { %15907 = vmatmul.mubr.f32.vlgmr.msra.gmra.mrb[14].mxu0 %v17561_v42 }
 0x752   :  { %15917 = vmatprep.mubr.f32.mxu0 %v17522_v13 }
 0x753   :  { %15754 = vmatmul.mubr.f32.vlgmr.msra.gmra.mrb[16].mxu1 %v6560_v10  ;;  %v8143_v10 = vsub.f32 %v14443_v6, %v8045_v8 }
 0x754   :  { %15757 = vmatpush3.msra.mxu1 %v6571_v17  ;;  %15758 = vmatprep.mubr.msk.f32.mxu1 %vm17446_vm1, %v17445_v54 }
 0x755   :  { %15761 = vmatprep.subr.mxu1 %v17445_v54  ;;  %v8144_v58 = vand.u32 4294901760, %v8143_v10  ;;  %v16872_v32 = vpack.c.bf16 %v8150_v18, %v8143_v10 }
 0x757   :  { %v8145_v23 = vsub.f32 %v8143_v10, %v8144_v58 }
 0x759   :  { %v8146_v28 = vand.u32 4294901760, %v8145_v23 }
 0x75b   :  { %15759 = vmatmul.mubr.f32.vlgmr.msra.gmra.mrb[16].mxu1 %v6558_v11  ;;  %v16864_v30 = vpack.c.bf16 %v8153_v29, %v8146_v28 }
 0x75c   :  { %15762 = vmatpush3.msra.mxu1 %v6493_v12  ;;  %15763 = vmatprep.mubr.msk.f32.mxu1 %vm17446_vm1, %v17445_v54  ;;  %v8137_v12 = vand.u32 4294901760, %v8136_v4 }
 0x75d   :  { %16805 = vmatprep.subr.bf16.mxu1 %v16804_v34 }
 0x75e   :  { %v8138_v17 = vsub.f32 %v8136_v4, %v8137_v12 }
 0x760   :  { %v8139_v22 = vand.u32 4294901760, %v8138_v17 }
 0x763   :  { %15764 = vmatmul.mubr.f32.vlgmr.msra.gmra.mrb[16].mxu1 %v6558_v11  ;;  %v8130_v11 = vand.u32 4294901760, %v8129_v3 }
 0x764   :  { %16807 = vmatpush3.bf16.msra.mxu1 %v16804_v34  ;;  %15840 = vmatprep.mubr.f32.mxu1 %v17559_v41 }
 0x765   :  { %16809 = vmatprep.subr.bf16.mxu1 %v16808_v48  ;;  %v8131_v16 = vsub.f32 %v8129_v3, %v8130_v11  ;;  %v16884_v33 = vpack.c.bf16 %v8137_v12, %v8130_v11 }
 0x767   :  { %v8132_v19 = vand.u32 4294901760, %v8131_v16 }
 0x768   :  { %16811 = vmatpush3.bf16.msra.mxu1 %v16808_v48 }
 0x769   :  { %16813 = vmatprep.subr.bf16.mxu1 %v16812_v52  ;;  %v16860_v24 = vpack.c.bf16 %v8139_v22, %v8132_v19 }
 0x76b   :  { %15841 = vmatmul.mubr.f32.vlgmr.msra.gmra.mrb[18].mxu1 %v17561_v42  ;;  %16861 = vmatprep.subr.bf16.mxu0 %v16860_v24 }
 0x76c   :  { %16815 = vmatpush3.bf16.msra.mxu1 %v16812_v52  ;;  %15851 = vmatprep.mubr.f32.mxu1 %v17522_v13  ;;  %v14448_v52 = vld [vmem:[%s18436_s5 + $0x2] ss:$0 sm:$0xff] }
 0x76d   :  { %16817 = vmatprep.subr.bf16.mxu1 %v16816_v56  ;;  %16863 = vmatpush3.bf16.msra.mxu0 %v16860_v24 }
 0x76e   :  { %16865 = vmatprep.subr.bf16.mxu0 %v16864_v30 }
 0x770   :  { %16819 = vmatpush3.bf16.msra.mxu1 %v16816_v56 }
 0x771   :  { %16821 = vmatprep.subr.bf16.mxu1 %v16820_v57  ;;  %16867 = vmatpush3.bf16.msra.mxu0 %v16864_v30 }
 0x772   :  { %16869 = vmatprep.subr.bf16.mxu0 %v16868_v31 }
 0x773   :  { %15852 = vmatmul.mubr.f32.vlgmr.msra.gmra.mrb[18].mxu1 %v17524_v14 }
 0x774   :  { %16823 = vmatpush3.bf16.msra.mxu1 %v16820_v57  ;;  %15862 = vmatprep.mubr.f32.mxu1 %v17531_v20 }
 0x775   :  { %16825 = vmatprep.subr.bf16.mxu1 %v16824_v59  ;;  %15918 = vmatmul.mubr.f32.vlgmr.msra.gmra.mrb[14].mxu0 %v17524_v14 }
 0x776   :  { %16871 = vmatpush3.bf16.msra.mxu0 %v16868_v31  ;;  %15928 = vmatprep.mubr.f32.mxu0 %v17531_v20 }
 0x777   :  { %16873 = vmatprep.subr.bf16.mxu0 %v16872_v32 }
 0x778   :  { %16827 = vmatpush3.bf16.msra.mxu1 %v16824_v59 }
 0x779   :  { %16829 = vmatprep.subr.bf16.mxu1 %v16804_v34 }
 0x77a   :  { %16875 = vmatpush3.bf16.msra.mxu0 %v16872_v32 }
 0x77b   :  { %15863 = vmatmul.mubr.f32.vlgmr.msra.gmra.mrb[18].mxu1 %v17534_v21  ;;  %16877 = vmatprep.subr.bf16.mxu0 %v18022_v2 }
 0x77c   :  { %16831 = vmatpush3.bf16.msra.mxu1 %v16804_v34  ;;  %15873 = vmatprep.mubr.f32.mxu1 %v17541_v26 }
 0x77d   :  { %16833 = vmatprep.subr.bf16.mxu1 %v16808_v48  ;;  %15929 = vmatmul.mubr.f32.vlgmr.msra.gmra.mrb[14].mxu0 %v17534_v21 }
 0x77e   :  { %16879 = vmatpush3.bf16.msra.mxu0 %v18022_v2  ;;  %15939 = vmatprep.mubr.f32.mxu0 %v17541_v26 }
 0x77f   :  { %16881 = vmatprep.subr.bf16.mxu0 %v16856_v15 }
 0x780   :  { %16835 = vmatpush3.bf16.msra.mxu1 %v16808_v48 }
 0x781   :  { %16837 = vmatprep.subr.bf16.mxu1 %v16836_v60 }
 0x782   :  { %16883 = vmatpush3.bf16.msra.mxu0 %v16856_v15 }
 0x783   :  { %15874 = vmatmul.mubr.f32.vlgmr.msra.gmra.mrb[18].mxu1 %v17544_v27  ;;  %16885 = vmatprep.subr.bf16.mxu0 %v16884_v33 }
 0x784   :  { %16839 = vmatpush3.bf16.msra.mxu1 %v16836_v60  ;;  %15884 = vmatprep.mubr.f32.mxu1 %v17522_v13 }
 0x785   :  { %16841 = vmatprep.subr.bf16.mxu1 %v16840_v61  ;;  %15940 = vmatmul.mubr.f32.vlgmr.msra.gmra.mrb[14].mxu0 %v17544_v27 }
 0x786   :  { %16887 = vmatpush3.bf16.msra.mxu0 %v16884_v33  ;;  %15950 = vmatprep.mubr.f32.mxu0 %v17522_v13 }
 0x788   :  { %16843 = vmatpush3.bf16.msra.mxu1 %v16840_v61 }
 0x789   :  { %16845 = vmatprep.subr.bf16.mxu1 %v16804_v34 }
 0x78b   :  { %15885 = vmatmul.mubr.f32.vlgmr.msra.gmra.mrb[18].mxu1 %v17524_v14 }
 0x78c   :  { %16847 = vmatpush3.bf16.msra.mxu1 %v16804_v34  ;;  %15895 = vmatprep.mubr.f32.mxu1 %v17522_v13  ;;  %v16888_v34 = vpack.c.bf16 %v8151_v63, %v8144_v58 }
 0x78d   :  { %16849 = vmatprep.subr.bf16.mxu1 %v16808_v48 }
 0x78e   :  { %16889 = vmatprep.subr.bf16.mxu0 %v16888_v34 }
 0x78f   :  { %16891 = vmatpush3.bf16.msra.mxu0 %v16888_v34 }
 0x790   :  { %16851 = vmatpush3.bf16.msra.mxu1 %v16808_v48  ;;  %16893 = vmatprep.subr.bf16.mxu0 %v18022_v2  ;;  %v8567_v48 = vsel %vm1658_vm2, %v17107_v46, 0  ;;  %v14452_v46 = vld [vmem:[%s18431_s1 + $0x68] sm:$0xff] }
 0x791   :  { %15964 = vmatprep.subr.mxu1 %v17445_v54  ;;  %v18071_v50 = vand.u32 4294901760, %v8567_v48 }
 0x792   :  { %15951 = vmatmul.mubr.f32.vlgmr.msra.gmra.mrb[14].mxu0 %v17524_v14 }
 0x793   :  { %15896 = vmatmul.mubr.f32.vlgmr.msra.gmra.mrb[18].mxu1 %v17524_v14  ;;  %16895 = vmatpush3.bf16.msra.mxu0 %v18022_v2  ;;  %v8639_v39 = vsub.f32 %v8567_v48, %v18071_v50  ;;  %v10428_v48 = vand.u32 4294901760, %v14452_v46 }
 0x794   :  { %15966 = vmatprep.mubr.msk.f32.mxu1 %vm17446_vm1, %v17445_v54  ;;  %15961 = vmatprep.mubr.f32.mxu0 %v17522_v13 }
 0x795   :  { %16897 = vmatprep.subr.bf16.mxu0 %v16856_v15  ;;  %v8640_v55 = vand.u32 4294901760, %v8639_v39 }
 0x797   :  { %16899 = vmatpush3.bf16.msra.mxu0 %v16856_v15  ;;  %v8641_v1 = vsub.f32 %v8639_v39, %v8640_v55  ;;  %v14450_v15 = vld [vmem:[%s18437_s6 + $0x2] ss:$0 sm:$0xff] }
 0x798   :  { %16024 = vmatprep.subr.mxu0 %v17445_v54 }
 0x799   :  { %v8642_v62 = vand.u32 4294901760, %v8641_v1 }
 0x79a   :  { %15962 = vmatmul.mubr.f32.vlgmr.msra.gmra.mrb[14].mxu0 %v17524_v14 }
 0x79b   :  { %16026 = vmatprep.mubr.msk.f32.mxu0 %vm17446_vm1, %v17445_v54 }
 0x80a   :  { %v18058_v35 = vpop.f32.mrb[14].mxu1 }
 0x80b   :  { %v15705_v36 = vpop.f32.mrb[15].mxu1 }
 0x836   :  { %v18060_v38 = vpop.f32.mrb[16].mxu1 }
 0x837   :  { %v15765_v43 = vpop.f32.mrb[17].mxu1 }
 0x866   :  { %v15897_v56 = vpop.f32.mrb[18].mxu1 }
 0x867   :  { %v17108_v57 = vadd.f32 %v15897_v56, %v14448_v52  ;;  %v8020_v59 = vpop.f32.mrb[19].mxu1 }
 0x868   :  { %v17109_v60 = vadd.f32 %v14448_v52, %v8020_v59  ;;  %v14454_v52 = vld [vmem:[%s18431_s1 + $0x78] sm:$0xff] }
 0x869   :  { %v9488_v61 = vsel %vm1658_vm2, %v17108_v57, 0 }
 0x86a   :  { %v9491_v0 = vand.u32 4294901760, %v9488_v61  ;;  %v8570_v40 = vsel %vm1658_vm2, %v17109_v60, 0 }
 0x86b   :  { %v8573_v2 = vand.u32 4294901760, %v8570_v40 }
 0x86c   :  { %v9568_v3 = vsub.f32 %v9488_v61, %v9491_v0  ;;  %16025 = vmatpush3.xpose.msra.mxu0 %v9491_v0 }
 0x86d   :  { %v8650_v4 = vsub.f32 %v8570_v40, %v8573_v2  ;;  %15965 = vmatpush3.xpose.msra.mxu1 %v8573_v2  ;;  %16029 = vmatprep.subr.mxu0 %v17445_v54  ;;  %v15963_v16 = vpop.f32.mrb[14].mxu0 }
 0x86e   :  { %v9569_v6 = vand.u32 4294901760, %v9568_v3  ;;  %15969 = vmatprep.subr.mxu1 %v17445_v54  ;;  %v18123_v10 = vadd.f32 %v15963_v16, %v14450_v15  ;;  %v8556_v17 = vpop.f32.mrb[15].mxu0 }
 0x86f   :  { %v8651_v7 = vand.u32 4294901760, %v8650_v4  ;;  %16027 = vmatmul.mubr.f32.vlgmr.msra.gmra.mrb[16].mxu0 %v9560_v5  ;;  %v18125_v18 = vadd.f32 %v14450_v15, %v8556_v17 }
 0x870   :  { %15967 = vmatmul.mubr.f32.vlgmr.msra.gmra.mrb[20].mxu1 %v8642_v62  ;;  %v9570_v8 = vsub.f32 %v9568_v3, %v9569_v6  ;;  %16031 = vmatprep.mubr.msk.f32.mxu0 %vm17446_vm1, %v17445_v54 }
 0x871   :  { %v8652_v9 = vsub.f32 %v8650_v4, %v8651_v7  ;;  %15971 = vmatprep.mubr.msk.f32.mxu1 %vm17446_vm1, %v17445_v54  ;;  %v18128_v19 = vand.u32 4294901760, %v18125_v18 }
 0x872   :  { %v9571_v11 = vand.u32 4294901760, %v9570_v8 }
 0x873   :  { %v8653_v12 = vand.u32 4294901760, %v8652_v9 }
 0x874   :  { %16030 = vmatpush3.xpose.msra.mxu0 %v9571_v11 }
 0x875   :  { %15970 = vmatpush3.xpose.msra.mxu1 %v8653_v12  ;;  %16034 = vmatprep.subr.mxu0 %v17445_v54 }
 0x876   :  { %15974 = vmatprep.subr.mxu1 %v17445_v54 }
 0x877   :  { %16032 = vmatmul.mubr.f32.vlgmr.msra.gmra.mrb[16].mxu0 %v18069_v49 }
 0x878   :  { %15972 = vmatmul.mubr.f32.vlgmr.msra.gmra.mrb[20].mxu1 %v18071_v50  ;;  %16035 = vmatpush3.xpose.msra.mxu0 %v9568_v3 }
 0x879   :  { %15975 = vmatpush3.xpose.msra.mxu1 %v8650_v4  ;;  %16036 = vmatprep.mubr.msk.f32.mxu0 %vm17446_vm1, %v17445_v54 }
 0x87a   :  { %16039 = vmatprep.subr.mxu0 %v17445_v54  ;;  %15976 = vmatprep.mubr.msk.f32.mxu1 %vm17446_vm1, %v17445_v54 }
 0x87b   :  { %15979 = vmatprep.subr.mxu1 %v17445_v54 }
 0x87f   :  { %16037 = vmatmul.mubr.f32.vlgmr.msra.gmra.mrb[16].mxu0 %v9557_v51  ;;  %v10522_v51 = vsub.f32 %v14452_v46, %v10428_v48 }
 0x880   :  { %16040 = vmatpush3.xpose.msra.mxu0 %v9491_v0  ;;  %15977 = vmatmul.mubr.f32.vlgmr.msra.gmra.mrb[20].mxu1 %v8639_v39  ;;  %v14453_v39 = vld [vmem:[%s18431_s1 + $0x70] sm:$0xff] }
 0x881   :  { %15980 = vmatpush3.xpose.msra.mxu1 %v8573_v2  ;;  %16041 = vmatprep.mubr.msk.f32.mxu0 %vm17446_vm1, %v17445_v54  ;;  %v10523_v57 = vand.u32 4294901760, %v10522_v51 }
 0x882   :  { %16044 = vmatprep.subr.mxu0 %v17445_v54  ;;  %15981 = vmatprep.mubr.msk.f32.mxu1 %vm17446_vm1, %v17445_v54 }
 0x883   :  { %15984 = vmatprep.subr.mxu1 %v17445_v54  ;;  %v10524_v61 = vsub.f32 %v10522_v51, %v10523_v57 }
 0x885   :  { %v10525_v1 = vand.u32 4294901760, %v10524_v61 }
 0x887   :  { %16042 = vmatmul.mubr.f32.vlgmr.msra.gmra.mrb[16].mxu0 %v9558_v53  ;;  %v10431_v53 = vand.u32 4294901760, %v14453_v39 }
 0x888   :  { %16045 = vmatpush3.xpose.msra.mxu0 %v9569_v6  ;;  %15982 = vmatmul.mubr.f32.vlgmr.msra.gmra.mrb[20].mxu1 %v8640_v55  ;;  %v10434_v55 = vand.u32 4294901760, %v14454_v52 }
 0x889   :  { %15985 = vmatpush3.xpose.msra.mxu1 %v8651_v7  ;;  %16046 = vmatprep.mubr.msk.f32.mxu0 %vm17446_vm1, %v17445_v54  ;;  %v10529_v37 = vsub.f32 %v14453_v39, %v10431_v53  ;;  %v14456_v39 = vld [vmem:[%s18433_s2 + $0x68] sm:$0xff] }
 0x88a   :  { %16049 = vmatprep.subr.mxu0 %v17445_v54  ;;  %15986 = vmatprep.mubr.msk.f32.mxu1 %vm17446_vm1, %v17445_v54  ;;  %v16904_v59 = vpack.c.bf16 %v10434_v55, %v10431_v53  ;;  %v10964_v53 = vand.u32 4294901760, %v14456_v39 }
 0x88b   :  { %15989 = vmatprep.subr.mxu1 %v17445_v54 }
 0x88c   :  { %v11058_v61 = vsub.f32 %v14456_v39, %v10964_v53 }
 0x88f   :  { %16047 = vmatmul.mubr.f32.vlgmr.msra.gmra.mrb[16].mxu0 %v18069_v49 }
 0x890   :  { %16050 = vmatpush3.xpose.msra.mxu0 %v9491_v0  ;;  %15987 = vmatmul.mubr.f32.vlgmr.msra.gmra.mrb[20].mxu1 %v18071_v50  ;;  %v10536_v0 = vsub.f32 %v14454_v52, %v10434_v55  ;;  %v14457_v55 = vld [vmem:[%s18433_s2 + $0x70] sm:$0xff] }
 0x891   :  { %15990 = vmatpush3.xpose.msra.mxu1 %v8573_v2  ;;  %16051 = vmatprep.mubr.msk.f32.mxu0 %vm17446_vm1, %v17445_v54  ;;  %v10530_v2 = vand.u32 4294901760, %v10529_v37 }
 0x892   :  { %15991 = vmatprep.mubr.msk.f32.mxu1 %vm17446_vm1, %v17445_v54  ;;  %15994 = vmatprep.subr.mxu1 %v17445_v54  ;;  %v10537_v3 = vand.u32 4294901760, %v10536_v0  ;;  %v16920_v11 = vpack.c.bf16 %v10536_v0, %v10529_v37 }
 0x893   :  { %v10531_v5 = vsub.f32 %v10529_v37, %v10530_v2 }
 0x894   :  { %v10538_v6 = vsub.f32 %v10536_v0, %v10537_v3  ;;  %v16936_v15 = vpack.c.bf16 %v10537_v3, %v10530_v2 }
 0x895   :  { %v10532_v62 = vand.u32 4294901760, %v10531_v5 }
 0x896   :  { %v10539_v7 = vand.u32 4294901760, %v10538_v6 }
 0x897   :  { %16052 = vmatmul.mubr.f32.vlgmr.msra.gmra.mrb[16].mxu0 %v18069_v49  ;;  %v16900_v49 = vpack.c.bf16 %v10428_v48, %v10425_v47 }
 0x898   :  { %15992 = vmatmul.mubr.f32.vlgmr.msra.gmra.mrb[20].mxu1 %v18071_v50  ;;  %16092 = vmatprep.mubr.f32.mxu0 %v17559_v41  ;;  %v10515_v50 = vsub.f32 %v14451_v45, %v10425_v47  ;;  %v16912_v8 = vpack.c.bf16 %v10539_v7, %v10532_v62  ;;  %v9951_v45 = vand.u32 4294901760, %v18123_v10 }
 0x899   :  { %15996 = vmatprep.mubr.msk.f32.mxu1 %vm17446_vm1, %v17445_v54  ;;  %15995 = vmatpush3.msra.mxu1 %v18128_v19 }
 0x89a   :  { %15999 = vmatprep.subr.mxu1 %v17445_v54  ;;  %16901 = vmatprep.subr.bf16.mxu0 %v16900_v49  ;;  %v10516_v56 = vand.u32 4294901760, %v10515_v50  ;;  %v16916_v9 = vpack.c.bf16 %v10522_v51, %v10515_v50  ;;  %v10028_v47 = vsub.f32 %v18123_v10, %v9951_v45 }
 0x89b   :  { %16903 = vmatpush3.bf16.msra.mxu0 %v16900_v49 }
 0x89c   :  { %v10517_v60 = vsub.f32 %v10515_v50, %v10516_v56  ;;  %16905 = vmatprep.subr.bf16.mxu0 %v16904_v59  ;;  %v16932_v12 = vpack.c.bf16 %v10523_v57, %v10516_v56  ;;  %v10029_v48 = vand.u32 4294901760, %v10028_v47  ;;  %v14458_v56 = vld [vmem:[%s18433_s2 + $0x78] sm:$0xff]  ;;  %v10967_v57 = vand.u32 4294901760, %v14457_v55 }
 0x89e   :  { %v10518_v40 = vand.u32 4294901760, %v10517_v60  ;;  %v10030_v50 = vsub.f32 %v10028_v47, %v10029_v48 }
 0x89f   :  { %16907 = vmatpush3.bf16.msra.mxu0 %v16904_v59 }
 0x8a0   :  { %v16908_v4 = vpack.c.bf16 %v10525_v1, %v10518_v40  ;;  %v10031_v51 = vand.u32 4294901760, %v10030_v50  ;;  %v11059_v40 = vand.u32 4294901760, %v11058_v61  ;;  %v11065_v1 = vsub.f32 %v14457_v55, %v10967_v57 }
 0x8a2   :  { %16093 = vmatmul.mubr.f32.vlgmr.msra.gmra.mrb[18].mxu0 %v17561_v42  ;;  %16909 = vmatprep.subr.bf16.mxu0 %v16908_v4  ;;  %v11066_v5 = vand.u32 4294901760, %v11065_v1 }
 0x8a3   :  { %16911 = vmatpush3.bf16.msra.mxu0 %v16908_v4  ;;  %16103 = vmatprep.mubr.f32.mxu0 %v17522_v13  ;;  %v11060_v4 = vsub.f32 %v11058_v61, %v11059_v40 }
 0x8a4   :  { %16913 = vmatprep.subr.bf16.mxu0 %v16912_v8 }
 0x8a7   :  { %16915 = vmatpush3.bf16.msra.mxu0 %v16912_v8  ;;  %v11061_v8 = vand.u32 4294901760, %v11060_v4 }
 0x8a8   :  { %16917 = vmatprep.subr.bf16.mxu0 %v16916_v9 }
 0x8aa   :  { %16104 = vmatmul.mubr.f32.vlgmr.msra.gmra.mrb[18].mxu0 %v17524_v14 }
 0x8ab   :  { %16919 = vmatpush3.bf16.msra.mxu0 %v16916_v9  ;;  %16114 = vmatprep.mubr.f32.mxu0 %v17531_v20  ;;  %v11067_v9 = vsub.f32 %v11065_v1, %v11066_v5 }
 0x8ac   :  { %16921 = vmatprep.subr.bf16.mxu0 %v16920_v11 }
 0x8af   :  { %16923 = vmatpush3.bf16.msra.mxu0 %v16920_v11 }
 0x8b0   :  { %16925 = vmatprep.subr.bf16.mxu0 %v16900_v49 }
 0x8b2   :  { %16115 = vmatmul.mubr.f32.vlgmr.msra.gmra.mrb[18].mxu0 %v17534_v21 }
 0x8b3   :  { %16927 = vmatpush3.bf16.msra.mxu0 %v16900_v49  ;;  %16125 = vmatprep.mubr.f32.mxu0 %v17541_v26 }
 0x8b4   :  { %16929 = vmatprep.subr.bf16.mxu0 %v16904_v59 }
 0x8b7   :  { %16931 = vmatpush3.bf16.msra.mxu0 %v16904_v59 }
 0x8b8   :  { %16933 = vmatprep.subr.bf16.mxu0 %v16932_v12 }
 0x8ba   :  { %16126 = vmatmul.mubr.f32.vlgmr.msra.gmra.mrb[18].mxu0 %v17544_v27 }
 0x8bb   :  { %16935 = vmatpush3.bf16.msra.mxu0 %v16932_v12  ;;  %16136 = vmatprep.mubr.f32.mxu0 %v17522_v13 }
 0x8bc   :  { %16937 = vmatprep.subr.bf16.mxu0 %v16936_v15 }
 0x8bf   :  { %16939 = vmatpush3.bf16.msra.mxu0 %v16936_v15  ;;  %v11068_v15 = vand.u32 4294901760, %v11067_v9 }
 0x8c0   :  { %16941 = vmatprep.subr.bf16.mxu0 %v16900_v49 }
 0x8c2   :  { %16137 = vmatmul.mubr.f32.vlgmr.msra.gmra.mrb[18].mxu0 %v17524_v14 }
 0x8c3   :  { %16943 = vmatpush3.bf16.msra.mxu0 %v16900_v49  ;;  %16147 = vmatprep.mubr.f32.mxu0 %v17522_v13 }
 0x8c4   :  { %16945 = vmatprep.subr.bf16.mxu0 %v16904_v59 }
 0x8c7   :  { %16947 = vmatpush3.bf16.msra.mxu0 %v16904_v59  ;;  %v10970_v59 = vand.u32 4294901760, %v14458_v56 }
 0x8c9   :  { %v11072_v2 = vsub.f32 %v14458_v56, %v10970_v59  ;;  %v16952_v62 = vpack.c.bf16 %v10970_v59, %v10967_v57 }
 0x8ca   :  { %16148 = vmatmul.mubr.f32.vlgmr.msra.gmra.mrb[18].mxu0 %v17524_v14 }
 0x8cb   :  { %16224 = vmatprep.mubr.f32.mxu0 %v17559_v41  ;;  %v11073_v6 = vand.u32 4294901760, %v11072_v2 }
 0x8cd   :  { %v11074_v11 = vsub.f32 %v11072_v2, %v11073_v6 }
 0x96a   :  { %v9932_v58 = vpop.f32.mrb[16].mxu0 }
 0x96b   :  { %v9014_v22 = vpop.f32.mrb[20].mxu1  ;;  %v16053_v63 = vpop.f32.mrb[17].mxu0  ;;  %v9936_v23 = vsel %vm1658_vm2, %v9932_v58, -inf }
 0x96c   :  { %9937 = vmax.xlane.f32.xlu1 %v9936_v23  ;;  %v15993_v24 = vpop.f32.mrb[21].mxu1  ;;  %v9018_v25 = vsel %vm1658_vm2, %v9014_v22, -inf }
 0x96d   :  { %9019 = vmax.xlane.f32.xlu0 %v9018_v25 }
 0x9f9   :  { %v9938_v28 = vpop.xlane.xlu1 %9937 }
 0x9fa   :  { %v9939_v29 = vsub.f32 %v9932_v58, %v9938_v28  ;;  %v9020_v30 = vpop.xlane.xlu0 %9019  ;;  %v9110_v58 = vsub.f32 %v18125_v18, %v18128_v19 }
 0x9fb   :  { %v9021_v31 = vsub.f32 %v9014_v22, %v9020_v30 }
 0x9fc   :  { %v9940_v32 = vmul.f32 1.442695, %v9939_v29  ;;  %v9111_v24 = vand.u32 4294901760, %v9110_v58 }
 0x9fd   :  { %v9022_v33 = vmul.f32 1.442695, %v9021_v31 }
 0x9fe   :  { %17429 = vpow2.f32 %v9940_v32  ;;  %v9112_v29 = vsub.f32 %v9110_v58, %v9111_v24 }
 0x9ff   :  { %17431 = vpow2.f32 %v9022_v33 }
 0xa00   :  { %v9113_v32 = vand.u32 4294901760, %v9112_v29 }
 0xa08   :  { %v18134_v34 = vpop.eup %17429 }
 0xa09   :  { %v18136_v36 = vpop.eup %17431  ;;  %v9942_v43 = vsel %vm1658_vm2, %v18134_v34, 0.0 }
 0xa0a   :  { %9943 = vadd.xlane.f32.xlu1 %v9942_v43  ;;  %v9024_v44 = vsel %vm1658_vm2, %v18136_v36, 0.0 }
 0xa0b   :  { %9025 = vadd.xlane.f32.xlu0 %v9024_v44 }
 0xa97   :  { %v9944_v18 = vpop.xlane.xlu1 %9943 }
 0xa98   :  { %v9026_v16 = vpop.xlane.xlu0 %9025 }
 0xa99   :  { %17433 = vrcp.f32 %v9026_v16  ;;  %v11075_v16 = vand.u32 4294901760, %v11074_v11 }
 0xa9a   :  { %17435 = vrcp.f32 %v9944_v18  ;;  %v14461_v18 = vld [vmem:[%s18434_s3 + $0x70] sm:$0xff] }
 0xaa3   :  { %v17434_v17 = vpop.eup %17433 }
 0xaa4   :  { %v9028_v22 = vmul.f32 %v17434_v17, %v18136_v36  ;;  %v17436_v33 = vpop.eup %17435  ;;  %v16960_v17 = vpack.c.bf16 %v11075_v16, %v11068_v15 }
 0xaa5   :  { %v9946_v36 = vmul.f32 %v17436_v33, %v18134_v34  ;;  %v14462_v33 = vld [vmem:[%s18434_s3 + $0x78] sm:$0xff] }
 0xaa6   :  { %v9030_v63 = vsel %vm1658_vm2, %v9028_v22, 0  ;;  %v16968_v22 = vpack.c.bf16 %v11072_v2, %v11065_v1 }
 0xaa7   :  { %v9098_v23 = vand.u32 4294901760, %v9030_v63  ;;  %v9948_v43 = vsel %vm1658_vm2, %v9946_v36, 0 }
 0xaa8   :  { %v10016_v44 = vand.u32 4294901760, %v9948_v43 }
 0xaa9   :  { %v9099_v25 = vsub.f32 %v9030_v63, %v9098_v23  ;;  %v16984_v63 = vpack.c.bf16 %v11073_v6, %v11066_v5  ;;  %v14466_v6 = vld [vmem:[%s18436_s5 + $0x3] ss:$0 sm:$0xff] }
 0xaaa   :  { %v10017_v46 = vsub.f32 %v9948_v43, %v10016_v44  ;;  %v11503_v43 = vand.u32 4294901760, %v14461_v18 }
 0xaab   :  { %v9100_v28 = vand.u32 4294901760, %v9099_v25 }
 0xaac   :  { %v10018_v34 = vand.u32 4294901760, %v10017_v46 }
 0xaad   :  { %v9101_v30 = vsub.f32 %v9099_v25, %v9100_v28 }
 0xaae   :  { %v10019_v49 = vsub.f32 %v10017_v46, %v10018_v34 }
 0xaaf   :  { %v9102_v31 = vand.u32 4294901760, %v9101_v30 }
 0xab0   :  { %v10020_v10 = vand.u32 4294901760, %v10019_v49 }
 0xab1   :  { %15997 = vmatmul.mubr.f32.vlgmr.msra.gmra.mrb[22].mxu1 %v9102_v31 }
 0xab2   :  { %16000 = vmatpush3.msra.mxu1 %v9113_v32  ;;  %16001 = vmatprep.mubr.msk.f32.mxu1 %vm17446_vm1, %v17445_v54  ;;  %v18245_v32 = vpop.f32.mrb[18].mxu0 }
 0xab3   :  { %16004 = vmatprep.subr.mxu1 %v17445_v54  ;;  %v18253_v36 = vpop.f32.mrb[19].mxu0 }
 0xab9   :  { %16002 = vmatmul.mubr.f32.vlgmr.msra.gmra.mrb[22].mxu1 %v9098_v23 }
 0xaba   :  { %16005 = vmatpush3.msra.mxu1 %v9110_v58  ;;  %16006 = vmatprep.mubr.msk.f32.mxu1 %vm17446_vm1, %v17445_v54 }
 0xabb   :  { %16009 = vmatprep.subr.mxu1 %v17445_v54 }
 0xac1   :  { %16007 = vmatmul.mubr.f32.vlgmr.msra.gmra.mrb[22].mxu1 %v9099_v25 }
 0xac2   :  { %16010 = vmatpush3.msra.mxu1 %v18128_v19  ;;  %16011 = vmatprep.mubr.msk.f32.mxu1 %vm17446_vm1, %v17445_v54 }
 0xac3   :  { %16014 = vmatprep.subr.mxu1 %v17445_v54 }
 0xac9   :  { %16012 = vmatmul.mubr.f32.vlgmr.msra.gmra.mrb[22].mxu1 %v9100_v28 }
 0xaca   :  { %16015 = vmatpush3.msra.mxu1 %v9111_v24  ;;  %16016 = vmatprep.mubr.msk.f32.mxu1 %vm17446_vm1, %v17445_v54  ;;  %v14460_v24 = vld [vmem:[%s18434_s3 + $0x68] sm:$0xff] }
 0xacb   :  { %16019 = vmatprep.subr.mxu1 %v17445_v54  ;;  %v11500_v28 = vand.u32 4294901760, %v14460_v24 }
 0xacd   :  { %v11594_v31 = vsub.f32 %v14460_v24, %v11500_v28 }
 0xad1   :  { %16017 = vmatmul.mubr.f32.vlgmr.msra.gmra.mrb[22].mxu1 %v9098_v23 }
 0xad2   :  { %16020 = vmatpush3.msra.mxu1 %v18128_v19  ;;  %16021 = vmatprep.mubr.msk.f32.mxu1 %vm17446_vm1, %v17445_v54  ;;  %v14455_v19 = vld [vmem:[%s18433_s2 + $0x60] sm:$0xff] }
 0xad3   :  { %16054 = vmatprep.subr.mxu1 %v17445_v54  ;;  %v10961_v52 = vand.u32 4294901760, %v14455_v19 }
 0xad5   :  { %v11051_v60 = vsub.f32 %v14455_v19, %v10961_v52  ;;  %v16948_v37 = vpack.c.bf16 %v10964_v53, %v10961_v52 }
 0xad7   :  { %v11052_v0 = vand.u32 4294901760, %v11051_v60  ;;  %v16964_v58 = vpack.c.bf16 %v11058_v61, %v11051_v60 }
 0xad9   :  { %16022 = vmatmul.mubr.f32.vlgmr.msra.gmra.mrb[22].mxu1 %v9098_v23  ;;  %v11053_v3 = vsub.f32 %v11051_v60, %v11052_v0  ;;  %v14459_v23 = vld [vmem:[%s18434_s3 + $0x60] sm:$0xff] }
 0xada   :  { %16055 = vmatpush3.msra.mxu1 %v9951_v45  ;;  %16056 = vmatprep.mubr.msk.f32.mxu1 %vm17446_vm1, %v17445_v54  ;;  %v11497_v25 = vand.u32 4294901760, %v14459_v23 }
 0xadb   :  { %16059 = vmatprep.subr.mxu1 %v17445_v54  ;;  %v11054_v7 = vand.u32 4294901760, %v11053_v3 }
 0xadc   :  { %v18237_v29 = vpack.c.bf16 %v11500_v28, %v11497_v25  ;;  %v11587_v30 = vsub.f32 %v14459_v23, %v11497_v25 }
 0xadd   :  { %16057 = vmatmul.mubr.f32.vlgmr.msra.gmra.mrb[24].mxu1 %v10020_v10  ;;  %v16956_v12 = vpack.c.bf16 %v11061_v8, %v11054_v7 }
 0xade   :  { %16060 = vmatpush3.msra.mxu1 %v10031_v51  ;;  %16061 = vmatprep.mubr.msk.f32.mxu1 %vm17446_vm1, %v17445_v54  ;;  %v17012_v60 = vpack.c.bf16 %v11594_v31, %v11587_v30 }
 0xadf   :  { %16064 = vmatprep.subr.mxu1 %v17445_v54  ;;  %16997 = vmatprep.subr.bf16.mxu0 %v18237_v29 }
 0xae0   :  { %16999 = vmatpush3.bf16.msra.mxu0 %v18237_v29 }
 0xae5   :  { %16062 = vmatmul.mubr.f32.vlgmr.msra.gmra.mrb[24].mxu1 %v10016_v44 }
 0xae6   :  { %16065 = vmatpush3.msra.mxu1 %v10028_v47  ;;  %16066 = vmatprep.mubr.msk.f32.mxu1 %vm17446_vm1, %v17445_v54 }
 0xae7   :  { %16069 = vmatprep.subr.mxu1 %v17445_v54 }
 0xaed   :  { %16067 = vmatmul.mubr.f32.vlgmr.msra.gmra.mrb[24].mxu1 %v10017_v46  ;;  %v11595_v46 = vand.u32 4294901760, %v11594_v31 }
 0xaee   :  { %16070 = vmatpush3.msra.mxu1 %v9951_v45  ;;  %16071 = vmatprep.mubr.msk.f32.mxu1 %vm17446_vm1, %v17445_v54 }
 0xaef   :  { %16074 = vmatprep.subr.mxu1 %v17445_v54  ;;  %v11596_v49 = vsub.f32 %v11594_v31, %v11595_v46 }
 0xaf1   :  { %v11597_v19 = vand.u32 4294901760, %v11596_v49 }
 0xaf5   :  { %16072 = vmatmul.mubr.f32.vlgmr.msra.gmra.mrb[24].mxu1 %v10018_v34 }
 0xaf6   :  { %16075 = vmatpush3.msra.mxu1 %v10029_v48  ;;  %16076 = vmatprep.mubr.msk.f32.mxu1 %vm17446_vm1, %v17445_v54  ;;  %v11601_v48 = vsub.f32 %v14461_v18, %v11503_v43 }
 0xaf7   :  { %16079 = vmatprep.subr.mxu1 %v17445_v54 }
 0xaf8   :  { %v11602_v51 = vand.u32 4294901760, %v11601_v48 }
 0xafa   :  { %v11603_v52 = vsub.f32 %v11601_v48, %v11602_v51 }
 0xafc   :  { %v11604_v56 = vand.u32 4294901760, %v11603_v52 }
 0xafd   :  { %16077 = vmatmul.mubr.f32.vlgmr.msra.gmra.mrb[24].mxu1 %v10016_v44 }
 0xafe   :  { %16080 = vmatpush3.msra.mxu1 %v9951_v45  ;;  %16081 = vmatprep.mubr.msk.f32.mxu1 %vm17446_vm1, %v17445_v54  ;;  %v11588_v45 = vand.u32 4294901760, %v11587_v30 }
 0xaff   :  { %16949 = vmatprep.subr.bf16.mxu1 %v16948_v37 }
 0xb00   :  { %v11589_v34 = vsub.f32 %v11587_v30, %v11588_v45 }
 0xb02   :  { %v11590_v10 = vand.u32 4294901760, %v11589_v34 }
 0xb04   :  { %v17004_v53 = vpack.c.bf16 %v11597_v19, %v11590_v10 }
 0xb05   :  { %16082 = vmatmul.mubr.f32.vlgmr.msra.gmra.mrb[24].mxu1 %v10016_v44  ;;  %v11506_v44 = vand.u32 4294901760, %v14462_v33 }
 0xb06   :  { %16951 = vmatpush3.bf16.msra.mxu1 %v16948_v37  ;;  %16158 = vmatprep.mubr.f32.mxu1 %v17559_v41  ;;  %v16980_v41 = vpack.c.bf16 %v11059_v40, %v11052_v0  ;;  %v14464_v0 = vld [vmem:[%s18435_s4 + $0x3] ss:$0 sm:$0xff] }
 0xb07   :  { %16953 = vmatprep.subr.bf16.mxu1 %v16952_v62  ;;  %v17000_v47 = vpack.c.bf16 %v11506_v44, %v11503_v43  ;;  %v11608_v50 = vsub.f32 %v14462_v33, %v11506_v44  ;;  %v17113_v40 = vadd.f32 %v14464_v0, %v18253_v36  ;;  %v14468_v33 = vld [vmem:[%s18437_s6 + $0x3] ss:$0 sm:$0xff]  ;;  %s17447_s6 = smov 8  }
 0xb09   :  { %17001 = vmatprep.subr.bf16.mxu0 %v17000_v47  ;;  %v11609_v39 = vand.u32 4294901760, %v11608_v50  ;;  %v17016_v61 = vpack.c.bf16 %v11608_v50, %v11601_v48 }
 0xb0a   :  { %16955 = vmatpush3.bf16.msra.mxu1 %v16952_v62  ;;  %17003 = vmatpush3.bf16.msra.mxu0 %v17000_v47 }
 0xb0b   :  { %16957 = vmatprep.subr.bf16.mxu1 %v16956_v12  ;;  %v11610_v55 = vsub.f32 %v11608_v50, %v11609_v39  ;;  %17005 = vmatprep.subr.bf16.mxu0 %v17004_v53 }
 0xb0d   :  { %16159 = vmatmul.mubr.f32.vlgmr.msra.gmra.mrb[26].mxu1 %v17561_v42  ;;  %16225 = vmatmul.mubr.f32.vlgmr.msra.gmra.mrb[20].mxu0 %v17561_v42  ;;  %v11611_v57 = vand.u32 4294901760, %v11610_v55  ;;  %v17028_v42 = vpack.c.bf16 %v11595_v46, %v11588_v45 }
 0xb0e   :  { %16959 = vmatpush3.bf16.msra.mxu1 %v16956_v12  ;;  %16169 = vmatprep.mubr.f32.mxu1 %v17522_v13 }
 0xb0f   :  { %16961 = vmatprep.subr.bf16.mxu1 %v16960_v17  ;;  %16235 = vmatprep.mubr.f32.mxu0 %v17522_v13  ;;  %v17008_v59 = vpack.c.bf16 %v11611_v57, %v11604_v56 }
 0xb10   :  { %17007 = vmatpush3.bf16.msra.mxu0 %v17004_v53 }
 0xb11   :  { %17009 = vmatprep.subr.bf16.mxu0 %v17008_v59 }
 0xb12   :  { %16963 = vmatpush3.bf16.msra.mxu1 %v16960_v17 }
 0xb13   :  { %16965 = vmatprep.subr.bf16.mxu1 %v16964_v58 }
 0xb14   :  { %17011 = vmatpush3.bf16.msra.mxu0 %v17008_v59 }
 0xb15   :  { %16170 = vmatmul.mubr.f32.vlgmr.msra.gmra.mrb[26].mxu1 %v17524_v14  ;;  %17013 = vmatprep.subr.bf16.mxu0 %v17012_v60 }
 0xb16   :  { %16967 = vmatpush3.bf16.msra.mxu1 %v16964_v58  ;;  %16180 = vmatprep.mubr.f32.mxu1 %v17531_v20 }
 0xb17   :  { %16969 = vmatprep.subr.bf16.mxu1 %v16968_v22  ;;  %16236 = vmatmul.mubr.f32.vlgmr.msra.gmra.mrb[20].mxu0 %v17524_v14 }
 0xb18   :  { %17015 = vmatpush3.bf16.msra.mxu0 %v17012_v60  ;;  %16246 = vmatprep.mubr.f32.mxu0 %v17531_v20 }
 0xb19   :  { %17017 = vmatprep.subr.bf16.mxu0 %v17016_v61 }
 0xb1a   :  { %16971 = vmatpush3.bf16.msra.mxu1 %v16968_v22 }
 0xb1b   :  { %16973 = vmatprep.subr.bf16.mxu1 %v16948_v37 }
 0xb1c   :  { %17019 = vmatpush3.bf16.msra.mxu0 %v17016_v61 }
 0xb1d   :  { %16181 = vmatmul.mubr.f32.vlgmr.msra.gmra.mrb[26].mxu1 %v17534_v21  ;;  %17021 = vmatprep.subr.bf16.mxu0 %v18237_v29 }
 0xb1e   :  { %16975 = vmatpush3.bf16.msra.mxu1 %v16948_v37  ;;  %16191 = vmatprep.mubr.f32.mxu1 %v17541_v26 }
 0xb1f   :  { %16977 = vmatprep.subr.bf16.mxu1 %v16952_v62  ;;  %16247 = vmatmul.mubr.f32.vlgmr.msra.gmra.mrb[20].mxu0 %v17534_v21 }
 0xb20   :  { %17023 = vmatpush3.bf16.msra.mxu0 %v18237_v29  ;;  %16257 = vmatprep.mubr.f32.mxu0 %v17541_v26 }
 0xb21   :  { %17025 = vmatprep.subr.bf16.mxu0 %v17000_v47 }
 0xb22   :  { %16979 = vmatpush3.bf16.msra.mxu1 %v16952_v62 }
 0xb23   :  { %16981 = vmatprep.subr.bf16.mxu1 %v16980_v41 }
 0xb24   :  { %17027 = vmatpush3.bf16.msra.mxu0 %v17000_v47 }
 0xb25   :  { %16192 = vmatmul.mubr.f32.vlgmr.msra.gmra.mrb[26].mxu1 %v17544_v27  ;;  %17029 = vmatprep.subr.bf16.mxu0 %v17028_v42 }
 0xb26   :  { %16983 = vmatpush3.bf16.msra.mxu1 %v16980_v41  ;;  %16202 = vmatprep.mubr.f32.mxu1 %v17522_v13 }
 0xb27   :  { %16985 = vmatprep.subr.bf16.mxu1 %v16984_v63  ;;  %16258 = vmatmul.mubr.f32.vlgmr.msra.gmra.mrb[20].mxu0 %v17544_v27 }
 0xb28   :  { %17031 = vmatpush3.bf16.msra.mxu0 %v17028_v42  ;;  %16268 = vmatprep.mubr.f32.mxu0 %v17522_v13 }
 0xb2a   :  { %16987 = vmatpush3.bf16.msra.mxu1 %v16984_v63 }
 0xb2b   :  { %16989 = vmatprep.subr.bf16.mxu1 %v16948_v37 }
 0xb2d   :  { %16203 = vmatmul.mubr.f32.vlgmr.msra.gmra.mrb[26].mxu1 %v17524_v14 }
 0xb2e   :  { %16991 = vmatpush3.bf16.msra.mxu1 %v16948_v37  ;;  %16213 = vmatprep.mubr.f32.mxu1 %v17522_v13  ;;  %v17032_v37 = vpack.c.bf16 %v11609_v39, %v11602_v51 }
 0xb2f   :  { %16993 = vmatprep.subr.bf16.mxu1 %v16952_v62 }
 0xb30   :  { %17033 = vmatprep.subr.bf16.mxu0 %v17032_v37 }
 0xb31   :  { %17035 = vmatpush3.bf16.msra.mxu0 %v17032_v37 }
 0xb32   :  { %16995 = vmatpush3.bf16.msra.mxu1 %v16952_v62  ;;  %17037 = vmatprep.subr.bf16.mxu0 %v18237_v29 }
 0xb33   :  { %16282 = vmatprep.subr.mxu1 %v17445_v54 }
 0xb34   :  { %16269 = vmatmul.mubr.f32.vlgmr.msra.gmra.mrb[20].mxu0 %v17524_v14 }
 0xb35   :  { %16214 = vmatmul.mubr.f32.vlgmr.msra.gmra.mrb[26].mxu1 %v17524_v14  ;;  %17039 = vmatpush3.bf16.msra.mxu0 %v18237_v29 }
 0xb36   :  { %16284 = vmatprep.mubr.msk.f32.mxu1 %vm17446_vm1, %v17445_v54  ;;  %16279 = vmatprep.mubr.f32.mxu0 %v17522_v13  ;;  %v17112_v13 = vadd.f32 %v18245_v32, %v14464_v0 }
 0xb37   :  { %17041 = vmatprep.subr.bf16.mxu0 %v17000_v47 }
 0xb38   :  { %v12943_v1 = vsel %vm1658_vm2, %v17112_v13, 0 }
 0xb39   :  { %17043 = vmatpush3.bf16.msra.mxu0 %v17000_v47  ;;  %v18284_v2 = vand.u32 4294901760, %v12943_v1 }
 0xb3a   :  { %16342 = vmatprep.subr.mxu0 %v17445_v54 }
 0xb3b   :  { %v13015_v4 = vsub.f32 %v12943_v1, %v18284_v2 }
 0xb3c   :  { %16280 = vmatmul.mubr.f32.vlgmr.msra.gmra.mrb[20].mxu0 %v17524_v14  ;;  %v12025_v14 = vsel %vm1658_vm2, %v17113_v40, 0 }
 0xb3d   :  { %16344 = vmatprep.mubr.msk.f32.mxu0 %vm17446_vm1, %v17445_v54  ;;  %v18286_v3 = vand.u32 4294901760, %v12025_v14  ;;  %v13016_v62 = vand.u32 4294901760, %v13015_v4 }
 0xb3f   :  { %v12097_v5 = vsub.f32 %v12025_v14, %v18286_v3  ;;  %v13017_v16 = vsub.f32 %v13015_v4, %v13016_v62 }
 0xb41   :  { %v12098_v7 = vand.u32 4294901760, %v12097_v5  ;;  %v13018_v24 = vand.u32 4294901760, %v13017_v16 }
 0xb43   :  { %v12099_v22 = vsub.f32 %v12097_v5, %v12098_v7 }
 0xb45   :  { %v12100_v28 = vand.u32 4294901760, %v12099_v22 }
 0xbac   :  { %v18273_v20 = vpop.f32.mrb[22].mxu1 }
 0xbad   :  { %v16023_v21 = vpop.f32.mrb[23].mxu1 }
 0xbd8   :  { %v18275_v26 = vpop.f32.mrb[24].mxu1 }
 0xbd9   :  { %v16083_v27 = vpop.f32.mrb[25].mxu1 }
 0xc08   :  { %v16215_v8 = vpop.f32.mrb[26].mxu1 }
 0xc09   :  { %v17114_v9 = vadd.f32 %v16215_v8, %v14466_v6  ;;  %v11478_v11 = vpop.f32.mrb[27].mxu1 }
 0xc0a   :  { %v17115_v12 = vadd.f32 %v14466_v6, %v11478_v11 }
 0xc0b   :  { %v12946_v15 = vsel %vm1658_vm2, %v17114_v9, 0 }
 0xc0c   :  { %v12949_v17 = vand.u32 4294901760, %v12946_v15  ;;  %v12028_v58 = vsel %vm1658_vm2, %v17115_v12, 0 }
 0xc0d   :  { %v12031_v41 = vand.u32 4294901760, %v12028_v58 }
 0xc0e   :  { %v13026_v63 = vsub.f32 %v12946_v15, %v12949_v17  ;;  %16343 = vmatpush3.xpose.msra.mxu0 %v12949_v17 }
 0xc0f   :  { %v12108_v23 = vsub.f32 %v12028_v58, %v12031_v41  ;;  %16283 = vmatpush3.xpose.msra.mxu1 %v12031_v41  ;;  %16347 = vmatprep.subr.mxu0 %v17445_v54  ;;  %v16281_v36 = vpop.f32.mrb[20].mxu0 }
 0xc10   :  { %v13027_v25 = vand.u32 4294901760, %v13026_v63  ;;  %16287 = vmatprep.subr.mxu1 %v17445_v54  ;;  %v18337_v43 = vadd.f32 %v16281_v36, %v14468_v33  ;;  %v12014_v44 = vpop.f32.mrb[21].mxu0 }
 0xc11   :  { %v12109_v29 = vand.u32 4294901760, %v12108_v23  ;;  %16345 = vmatmul.mubr.f32.vlgmr.msra.gmra.mrb[22].mxu0 %v13018_v24  ;;  %v17117_v45 = vadd.f32 %v14468_v33, %v12014_v44  ;;  %v13861_v24 = vld [vmem:[%s18438_s7] sm:$0xff] }
 0xc12   :  { %16285 = vmatmul.mubr.f32.vlgmr.msra.gmra.mrb[28].mxu1 %v12100_v28  ;;  %v13028_v30 = vsub.f32 %v13026_v63, %v13027_v25  ;;  %16349 = vmatprep.mubr.msk.f32.mxu0 %vm17446_vm1, %v17445_v54  ;;  %v13409_v9 = vand.u32 4294901760, %v18337_v43  ;;  %v13863_v28 = vld [vmem:[%s18438_s7 + $0x10] sm:$0xff] }
 0xc13   :  { %v12110_v31 = vsub.f32 %v12108_v23, %v12109_v29  ;;  %16289 = vmatprep.mubr.msk.f32.mxu1 %vm17446_vm1, %v17445_v54  ;;  %v18339_v46 = vand.u32 4294901760, %v17117_v45 }
 0xc14   :  { %v13029_v32 = vand.u32 4294901760, %v13028_v30  ;;  %v13486_v12 = vsub.f32 %v18337_v43, %v13409_v9 }
 0xc15   :  { %v12111_v18 = vand.u32 4294901760, %v12110_v31  ;;  %v12568_v13 = vsub.f32 %v17117_v45, %v18339_v46  ;;  %v13885_v31 = vand.u32 4294901760, %v13863_v28 }
 0xc16   :  { %16348 = vmatpush3.xpose.msra.mxu0 %v13029_v32  ;;  %v13487_v16 = vand.u32 4294901760, %v13486_v12 }
 0xc17   :  { %16288 = vmatpush3.xpose.msra.mxu1 %v12111_v18  ;;  %16352 = vmatprep.subr.mxu0 %v17445_v54  ;;  %v12569_v40 = vand.u32 4294901760, %v12568_v13 }
 0xc18   :  { %16292 = vmatprep.subr.mxu1 %v17445_v54  ;;  %v13488_v58 = vsub.f32 %v13486_v12, %v13487_v16 }
 0xc19   :  { %16350 = vmatmul.mubr.f32.vlgmr.msra.gmra.mrb[22].mxu0 %v18284_v2 }
 0xc1a   :  { %16290 = vmatmul.mubr.f32.vlgmr.msra.gmra.mrb[28].mxu1 %v18286_v3  ;;  %16353 = vmatpush3.xpose.msra.mxu0 %v13026_v63 }
 0xc1b   :  { %16293 = vmatpush3.xpose.msra.mxu1 %v12108_v23  ;;  %16354 = vmatprep.mubr.msk.f32.mxu0 %vm17446_vm1, %v17445_v54 }
 0xc1c   :  { %16357 = vmatprep.subr.mxu0 %v17445_v54  ;;  %16294 = vmatprep.mubr.msk.f32.mxu1 %vm17446_vm1, %v17445_v54 }
 0xc1d   :  { %16297 = vmatprep.subr.mxu1 %v17445_v54 }
 0xc21   :  { %16355 = vmatmul.mubr.f32.vlgmr.msra.gmra.mrb[22].mxu0 %v13015_v4 }
 0xc22   :  { %16358 = vmatpush3.xpose.msra.mxu0 %v12949_v17  ;;  %16295 = vmatmul.mubr.f32.vlgmr.msra.gmra.mrb[28].mxu1 %v12097_v5 }
 0xc23   :  { %16298 = vmatpush3.xpose.msra.mxu1 %v12031_v41  ;;  %16359 = vmatprep.mubr.msk.f32.mxu0 %vm17446_vm1, %v17445_v54 }
 0xc24   :  { %16362 = vmatprep.subr.mxu0 %v17445_v54  ;;  %16299 = vmatprep.mubr.msk.f32.mxu1 %vm17446_vm1, %v17445_v54 }
 0xc25   :  { %16302 = vmatprep.subr.mxu1 %v17445_v54 }
 0xc29   :  { %16360 = vmatmul.mubr.f32.vlgmr.msra.gmra.mrb[22].mxu0 %v13016_v62 }
 0xc2a   :  { %16363 = vmatpush3.xpose.msra.mxu0 %v13027_v25  ;;  %16300 = vmatmul.mubr.f32.vlgmr.msra.gmra.mrb[28].mxu1 %v12098_v7  ;;  %v13862_v25 = vld [vmem:[%s18438_s7 + $0x8] sm:$0xff] }
 0xc2b   :  { %16303 = vmatpush3.xpose.msra.mxu1 %v12109_v29  ;;  %16364 = vmatprep.mubr.msk.f32.mxu0 %vm17446_vm1, %v17445_v54  ;;  %v13879_v29 = vand.u32 4294901760, %v13861_v24  ;;  %v13882_v30 = vand.u32 4294901760, %v13862_v25 }
 0xc2c   :  { %16367 = vmatprep.subr.mxu0 %v17445_v54  ;;  %16304 = vmatprep.mubr.msk.f32.mxu1 %vm17446_vm1, %v17445_v54 }
 0xc2d   :  { %16307 = vmatprep.subr.mxu1 %v17445_v54  ;;  %v18402_v18 = vpack.c.bf16 %v13882_v30, %v13879_v29  ;;  %v13969_v36 = vsub.f32 %v13861_v24, %v13879_v29  ;;  %v13976_v43 = vsub.f32 %v13862_v25, %v13882_v30 }
 0xc2f   :  { %v13970_v45 = vand.u32 4294901760, %v13969_v36 }
 0xc31   :  { %16365 = vmatmul.mubr.f32.vlgmr.msra.gmra.mrb[22].mxu0 %v18284_v2 }
 0xc32   :  { %16368 = vmatpush3.xpose.msra.mxu0 %v12949_v17  ;;  %16305 = vmatmul.mubr.f32.vlgmr.msra.gmra.mrb[28].mxu1 %v18286_v3 }
 0xc33   :  { %16308 = vmatpush3.xpose.msra.mxu1 %v12031_v41  ;;  %16369 = vmatprep.mubr.msk.f32.mxu0 %vm17446_vm1, %v17445_v54  ;;  %v13489_v41 = vand.u32 4294901760, %v13488_v58 }
 0xc34   :  { %16309 = vmatprep.mubr.msk.f32.mxu1 %vm17446_vm1, %v17445_v54  ;;  %16312 = vmatprep.subr.mxu1 %v17445_v54 }
 0xc35   :  { %17045 = vmatprep.subr.bf16.mxu0 %v18402_v18 }
 0xc39   :  { %16370 = vmatmul.mubr.f32.vlgmr.msra.gmra.mrb[22].mxu0 %v18284_v2  ;;  %v12570_v2 = vsub.f32 %v12568_v13, %v12569_v40 }
 0xc3a   :  { %16310 = vmatmul.mubr.f32.vlgmr.msra.gmra.mrb[28].mxu1 %v18286_v3  ;;  %17047 = vmatpush3.bf16.msra.mxu0 %v18402_v18 }
 0xc3b   :  { %16314 = vmatprep.mubr.msk.f32.mxu1 %vm17446_vm1, %v17445_v54  ;;  %16313 = vmatpush3.msra.mxu1 %v18339_v46  ;;  %v12571_v5 = vand.u32 4294901760, %v12570_v2 }
 0xc3c   :  { %16317 = vmatprep.subr.mxu1 %v17445_v54 }
 0xd0c   :  { %v13390_v47 = vpop.f32.mrb[22].mxu0 }
 0xd0d   :  { %v12472_v34 = vpop.f32.mrb[28].mxu1  ;;  %v16371_v48 = vpop.f32.mrb[23].mxu0  ;;  %v13394_v49 = vsel %vm1658_vm2, %v13390_v47, -inf }
 0xd0e   :  { %13395 = vmax.xlane.f32.xlu1 %v13394_v49  ;;  %v16311_v50 = vpop.f32.mrb[29].mxu1  ;;  %v12476_v10 = vsel %vm1658_vm2, %v12472_v34, -inf  ;;  %v13983_v49 = vsub.f32 %v13863_v28, %v13885_v31 }
 0xd0f   :  { %12477 = vmax.xlane.f32.xlu0 %v12476_v10 }
 0xd9b   :  { %v13396_v51 = vpop.xlane.xlu1 %13395 }
 0xd9c   :  { %v13397_v19 = vsub.f32 %v13390_v47, %v13396_v51  ;;  %v12478_v39 = vpop.xlane.xlu0 %12477 }
 0xd9d   :  { %v12479_v52 = vsub.f32 %v12472_v34, %v12478_v39  ;;  %v13971_v34 = vsub.f32 %v13969_v36, %v13970_v45 }
 0xd9e   :  { %v13398_v53 = vmul.f32 1.442695, %v13397_v19  ;;  %v13984_v19 = vand.u32 4294901760, %v13983_v49 }
 0xd9f   :  { %v12480_v55 = vmul.f32 1.442695, %v12479_v52  ;;  %v13972_v10 = vand.u32 4294901760, %v13971_v34 }
 0xda0   :  { %17437 = vpow2.f32 %v13398_v53  ;;  %v13985_v53 = vsub.f32 %v13983_v49, %v13984_v19 }
 0xda1   :  { %17439 = vpow2.f32 %v12480_v55 }
 0xdaa   :  { %v17438_v56 = vpop.eup %17437 }
 0xdab   :  { %v17440_v57 = vpop.eup %17439  ;;  %v13400_v59 = vsel %vm1658_vm2, %v17438_v56, 0.0 }
 0xdac   :  { %13401 = vadd.xlane.f32.xlu1 %v13400_v59  ;;  %v12482_v60 = vsel %vm1658_vm2, %v17440_v57, 0.0 }
 0xdad   :  { %12483 = vadd.xlane.f32.xlu0 %v12482_v60  ;;  %v17060_v60 = vpack.c.bf16 %v13976_v43, %v13969_v36 }
 0xdbd   :  { %6939 = vrot.lane.b32.xlu1 %v18060_v38, %s17447_s6 }
 0xdc1   :  { %9479 = vrot.lane.b32.xlu1 %v18273_v20, %s17448_s18 }
 0xdc3   :  { %6021 = vrot.lane.b32.xlu0 %v18058_v35, %s17447_s6 }
 0xdc5   :  { %10397 = vrot.lane.b32.xlu1 %v18275_v26, %s17448_s18 }
 0xe39   :  { %v13402_v61 = vpop.xlane.xlu1 %13401 }
 0xe3a   :  { %v12484_v42 = vpop.xlane.xlu0 %12483 }
 0xe3b   :  { %17441 = vrcp.f32 %v12484_v42 }
 0xe3c   :  { %17443 = vrcp.f32 %v13402_v61 }
 0xe3d   :  { %v6940_v37 = vpop.permute.xlu1 %6939 }
 0xe3e   :  { %6942 = vst.msk [vmem:[#allocation2 + $0x8] sm:$0xff] %vm6024_vm3, %v6940_v37  ;;  %v6022_v21 = vpop.permute.xlu0 %6021 }
 0xe3f   :  { %6025 = vst.msk [vmem:[#allocation2] sm:$0xff] %vm6024_vm3, %v6022_v21 }
 0xe41   :  { %v9480_v27 = vpop.permute.xlu1 %9479 }
 0xe42   :  { %9483 = vst.msk [vmem:[#allocation2] sm:$0xff] %vm9482_vm4, %v9480_v27 }
 0xe45   :  { %v17442_v0 = vpop.eup %17441  ;;  %v10398_v38 = vpop.permute.xlu1 %10397 }
 0xe46   :  { %v12486_v20 = vmul.f32 %v17442_v0, %v17440_v57  ;;  %10400 = vst.msk [vmem:[#allocation2 + $0x8] sm:$0xff] %vm9482_vm4, %v10398_v38  ;;  %v17444_v6 = vpop.eup %17443 }
 0xe47   :  { %v13404_v62 = vmul.f32 %v17444_v6, %v17438_v56  ;;  %v13986_v56 = vand.u32 4294901760, %v13985_v53 }
 0xe48   :  { %v12488_v35 = vsel %vm1658_vm2, %v12486_v20, 0 }
 0xe49   :  { %v12556_v26 = vand.u32 4294901760, %v12488_v35  ;;  %v13406_v7 = vsel %vm1658_vm2, %v13404_v62, 0  ;;  %v14469_v62 = vld [vmem:[%s18439_s8] ss:$0 sm:$0xff] }
 0xe4a   :  { %v13474_v8 = vand.u32 4294901760, %v13406_v7 }
 0xe4b   :  { %v12557_v1 = vsub.f32 %v12488_v35, %v12556_v26 }
 0xe4c   :  { %v13475_v11 = vsub.f32 %v13406_v7, %v13474_v8 }
 0xe4d   :  { %v12558_v14 = vand.u32 4294901760, %v12557_v1 }
 0xe4e   :  { %v13476_v15 = vand.u32 4294901760, %v13475_v11 }
 0xe4f   :  { %v12559_v3 = vsub.f32 %v12557_v1, %v12558_v14 }
 0xe50   :  { %v13477_v17 = vsub.f32 %v13475_v11, %v13476_v15 }
 0xe51   :  { %v12560_v4 = vand.u32 4294901760, %v12559_v3 }
 0xe52   :  { %v13478_v22 = vand.u32 4294901760, %v13477_v17 }
 0xe53   :  { %16315 = vmatmul.mubr.f32.vlgmr.msra.gmra.mrb[30].mxu1 %v12560_v4 }
 0xe54   :  { %16318 = vmatpush3.msra.mxu1 %v12571_v5  ;;  %16319 = vmatprep.mubr.msk.f32.mxu1 %vm17446_vm1, %v17445_v54 }
 0xe55   :  { %16322 = vmatprep.subr.mxu1 %v17445_v54 }
 0xe5b   :  { %16320 = vmatmul.mubr.f32.vlgmr.msra.gmra.mrb[30].mxu1 %v12556_v26 }
 0xe5c   :  { %16323 = vmatpush3.msra.mxu1 %v12568_v13  ;;  %16324 = vmatprep.mubr.msk.f32.mxu1 %vm17446_vm1, %v17445_v54 }
 0xe5d   :  { %16327 = vmatprep.subr.mxu1 %v17445_v54 }
 0xe63   :  { %16325 = vmatmul.mubr.f32.vlgmr.msra.gmra.mrb[30].mxu1 %v12557_v1 }
 0xe64   :  { %16328 = vmatpush3.msra.mxu1 %v18339_v46  ;;  %16329 = vmatprep.mubr.msk.f32.mxu1 %vm17446_vm1, %v17445_v54 }
 0xe65   :  { %16332 = vmatprep.subr.mxu1 %v17445_v54 }
 0xe6b   :  { %16330 = vmatmul.mubr.f32.vlgmr.msra.gmra.mrb[30].mxu1 %v12558_v14 }
 0xe6c   :  { %16333 = vmatpush3.msra.mxu1 %v12569_v40  ;;  %16334 = vmatprep.mubr.msk.f32.mxu1 %vm17446_vm1, %v17445_v54 }
 0xe6d   :  { %16337 = vmatprep.subr.mxu1 %v17445_v54 }
 0xe73   :  { %16335 = vmatmul.mubr.f32.vlgmr.msra.gmra.mrb[30].mxu1 %v12556_v26 }
 0xe74   :  { %16338 = vmatpush3.msra.mxu1 %v18339_v46  ;;  %16339 = vmatprep.mubr.msk.f32.mxu1 %vm17446_vm1, %v17445_v54  ;;  %v13977_v46 = vand.u32 4294901760, %v13976_v43 }
 0xe75   :  { %16372 = vmatprep.subr.mxu1 %v17445_v54 }
 0xe76   :  { %v13978_v48 = vsub.f32 %v13976_v43, %v13977_v46  ;;  %v17076_v42 = vpack.c.bf16 %v13977_v46, %v13970_v45 }
 0xe78   :  { %v13979_v51 = vand.u32 4294901760, %v13978_v48 }
 0xe7a   :  { %v17052_v52 = vpack.c.bf16 %v13979_v51, %v13972_v10 }
 0xe7b   :  { %16340 = vmatmul.mubr.f32.vlgmr.msra.gmra.mrb[30].mxu1 %v12556_v26 }
 0xe7c   :  { %16373 = vmatpush3.msra.mxu1 %v13409_v9  ;;  %16374 = vmatprep.mubr.msk.f32.mxu1 %vm17446_vm1, %v17445_v54 }
 0xe7d   :  { %16377 = vmatprep.subr.mxu1 %v17445_v54 }
 0xe7f   :  { %16375 = vmatmul.mubr.f32.vlgmr.msra.gmra.mrb[32].mxu1 %v13478_v22 }
 0xe80   :  { %16378 = vmatpush3.msra.mxu1 %v13489_v41  ;;  %16379 = vmatprep.mubr.msk.f32.mxu1 %vm17446_vm1, %v17445_v54 }
 0xe81   :  { %16382 = vmatprep.subr.mxu1 %v17445_v54 }
 0xe87   :  { %16380 = vmatmul.mubr.f32.vlgmr.msra.gmra.mrb[32].mxu1 %v13474_v8 }
 0xe88   :  { %16383 = vmatpush3.msra.mxu1 %v13486_v12  ;;  %16384 = vmatprep.mubr.msk.f32.mxu1 %vm17446_vm1, %v17445_v54 }
 0xe89   :  { %16387 = vmatprep.subr.mxu1 %v17445_v54 }
 0xe8f   :  { %16385 = vmatmul.mubr.f32.vlgmr.msra.gmra.mrb[32].mxu1 %v13475_v11 }
 0xe90   :  { %16388 = vmatpush3.msra.mxu1 %v13409_v9  ;;  %16389 = vmatprep.mubr.msk.f32.mxu1 %vm17446_vm1, %v17445_v54 }
 0xe91   :  { %16392 = vmatprep.subr.mxu1 %v17445_v54 }
 0xe97   :  { %16390 = vmatmul.mubr.f32.vlgmr.msra.gmra.mrb[32].mxu1 %v13476_v15 }
 0xe98   :  { %16393 = vmatpush3.msra.mxu1 %v13487_v16  ;;  %16394 = vmatprep.mubr.msk.f32.mxu1 %vm17446_vm1, %v17445_v54 }
 0xe99   :  { %16397 = vmatprep.subr.mxu1 %v17445_v54 }
 0xe9f   :  { %16395 = vmatmul.mubr.f32.vlgmr.msra.gmra.mrb[32].mxu1 %v13474_v8 }
 0xea0   :  { %16398 = vmatpush3.msra.mxu1 %v13409_v9  ;;  %16399 = vmatprep.mubr.msk.f32.mxu1 %vm17446_vm1, %v17445_v54  ;;  %v13864_v54 = vld [vmem:[%s18438_s7 + $0x18] sm:$0xff] }
 0xea1   :  { %v13888_v32 = vand.u32 4294901760, %v13864_v54 }
 0xea3   :  { %v18404_v33 = vpack.c.bf16 %v13888_v32, %v13885_v31  ;;  %v13990_v50 = vsub.f32 %v13864_v54, %v13888_v32 }
 0xea5   :  { %17049 = vmatprep.subr.bf16.mxu0 %v18404_v33  ;;  %v13991_v39 = vand.u32 4294901760, %v13990_v50  ;;  %v17064_v61 = vpack.c.bf16 %v13990_v50, %v13983_v49 }
 0xea6   :  { %17051 = vmatpush3.bf16.msra.mxu0 %v18404_v33 }
 0xea7   :  { %16400 = vmatmul.mubr.f32.vlgmr.msra.gmra.mrb[32].mxu1 %v13474_v8  ;;  %v13992_v55 = vsub.f32 %v13990_v50, %v13991_v39  ;;  %17053 = vmatprep.subr.bf16.mxu0 %v17052_v52  ;;  %v17080_v37 = vpack.c.bf16 %v13991_v39, %v13984_v19 }
 0xea9   :  { %v13993_v57 = vand.u32 4294901760, %v13992_v55 }
 0xeab   :  { %v17056_v59 = vpack.c.bf16 %v13993_v57, %v13986_v56 }
 0xf4e   :  { %v12932_v63 = vpop.f32.mrb[30].mxu1 }
 0xf4f   :  { %12937 = vrot.lane.b32.xlu0 %v12932_v63, %s17449_s19  ;;  %v16341_v23 = vpop.f32.mrb[31].mxu1 }
 0xf7a   :  { %v13850_v44 = vpop.f32.mrb[32].mxu1 }
 0xf7b   :  { %13855 = vrot.lane.b32.xlu1 %v13850_v44, %s17449_s19  ;;  %v16401_v47 = vpop.f32.mrb[33].mxu1 }
 0xfc1   :  { %v12938_v21 = vpop.permute.xlu0 %12937 }
 0xfc2   :  { %12941 = vst.msk [vmem:[#allocation2] sm:$0xff] %vm12940_vm5, %v12938_v21 }
 0xfc9   :  { %v13859_v27 = vld [vmem:[#allocation2] sm:$0xff] }
 0xfca   :  { %v13873_v0 = vsel %vm53_vm0, %v13859_v27, 0 }
 0xfcb   :  { %v13947_v38 = vand.u32 4294901760, %v13873_v0 }
 0xfcd   :  { %v13948_v13 = vsub.f32 %v13873_v0, %v13947_v38 }
 0xfcf   :  { %v13949_v20 = vand.u32 4294901760, %v13948_v13 }
 0xfd1   :  { %v13950_v35 = vsub.f32 %v13948_v13, %v13949_v20 }
 0xfd3   :  { %v13951_v26 = vand.u32 4294901760, %v13950_v35 }
 0xfd5   :  { %16410 = vmatprep.mubr.f32.mxu0 %v13951_v26 }
 0xfed   :  { %v13856_v40 = vpop.permute.xlu1 %13855 }
 0xfee   :  { %13858 = vst.msk [vmem:[#allocation2 + $0x8] sm:$0xff] %vm12940_vm5, %v13856_v40 }
 0xff5   :  { %v13860_v1 = vld [vmem:[#allocation2 + $0x8] sm:$0xff] }
 0xff6   :  { %v13876_v14 = vsel %vm53_vm0, %v13860_v1, 0 }
 0xff7   :  { %v13957_v2 = vand.u32 4294901760, %v13876_v14 }
 0xff9   :  { %v13958_v3 = vsub.f32 %v13876_v14, %v13957_v2 }
 0xffb   :  { %v13959_v4 = vand.u32 4294901760, %v13958_v3 }
 0xffd   :  { %v13960_v5 = vsub.f32 %v13958_v3, %v13959_v4 }
 0xfff   :  { %v13961_v6 = vand.u32 4294901760, %v13960_v5 }
0x1001   :  { %16411 = vmatmul.mubr.f32.vlgmr.msra.gmra.mrb[24].mxu0 %v13961_v6 }
0x1002   :  { %17055 = vmatpush3.bf16.msra.mxu0 %v17052_v52  ;;  %16421 = vmatprep.mubr.f32.mxu0 %v13947_v38 }
0x1003   :  { %17057 = vmatprep.subr.bf16.mxu0 %v17056_v59 }
0x1006   :  { %17059 = vmatpush3.bf16.msra.mxu0 %v17056_v59 }
0x1007   :  { %17061 = vmatprep.subr.bf16.mxu0 %v17060_v60 }
0x1009   :  { %16422 = vmatmul.mubr.f32.vlgmr.msra.gmra.mrb[24].mxu0 %v13957_v2 }
0x100a   :  { %17063 = vmatpush3.bf16.msra.mxu0 %v17060_v60  ;;  %16432 = vmatprep.mubr.f32.mxu0 %v13948_v13 }
0x100b   :  { %17065 = vmatprep.subr.bf16.mxu0 %v17064_v61 }
0x100e   :  { %17067 = vmatpush3.bf16.msra.mxu0 %v17064_v61 }
0x100f   :  { %17069 = vmatprep.subr.bf16.mxu0 %v18402_v18 }
0x1011   :  { %16433 = vmatmul.mubr.f32.vlgmr.msra.gmra.mrb[24].mxu0 %v13958_v3 }
0x1012   :  { %17071 = vmatpush3.bf16.msra.mxu0 %v18402_v18  ;;  %16443 = vmatprep.mubr.f32.mxu0 %v13949_v20 }
0x1013   :  { %17073 = vmatprep.subr.bf16.mxu0 %v18404_v33 }
0x1016   :  { %17075 = vmatpush3.bf16.msra.mxu0 %v18404_v33 }
0x1017   :  { %17077 = vmatprep.subr.bf16.mxu0 %v17076_v42 }
0x1019   :  { %16444 = vmatmul.mubr.f32.vlgmr.msra.gmra.mrb[24].mxu0 %v13959_v4 }
0x101a   :  { %17079 = vmatpush3.bf16.msra.mxu0 %v17076_v42  ;;  %16454 = vmatprep.mubr.f32.mxu0 %v13947_v38 }
0x101b   :  { %17081 = vmatprep.subr.bf16.mxu0 %v17080_v37 }
0x101e   :  { %17083 = vmatpush3.bf16.msra.mxu0 %v17080_v37 }
0x101f   :  { %17085 = vmatprep.subr.bf16.mxu0 %v18402_v18 }
0x1021   :  { %16455 = vmatmul.mubr.f32.vlgmr.msra.gmra.mrb[24].mxu0 %v13957_v2 }
0x1022   :  { %17087 = vmatpush3.bf16.msra.mxu0 %v18402_v18  ;;  %16465 = vmatprep.mubr.f32.mxu0 %v13947_v38 }
0x1023   :  { %17089 = vmatprep.subr.bf16.mxu0 %v18404_v33 }
0x1026   :  { %17091 = vmatpush3.bf16.msra.mxu0 %v18404_v33 }
0x1029   :  { %16466 = vmatmul.mubr.f32.vlgmr.msra.gmra.mrb[24].mxu0 %v13957_v2 }
0x10fc   :  { %v16467_v7 = vpop.f32.mrb[24].mxu0 }
0x10fd   :  { %v17118_v8 = vadd.f32 %v16467_v7, %v14469_v62  ;;  %v14396_v9 = vpop.f32.mrb[25].mxu0 }
0x10fe   :  { %v17119_v11 = vadd.f32 %v14469_v62, %v14396_v9 }
0x10ff   :  { %14407 = vst.msk [vmem:[%s18440_s9 + $0x8] sm:$0xff] %vm53_vm0, %v17118_v8 }
0x1100   :  { %14406 = vst.msk [vmem:[%s18440_s9] sm:$0xff] %vm53_vm0, %v17119_v11 }

</bundles_post_ra>
